<compile_context>
chip_gen: v7x
topology: tpu7x:2x2x1
jax: 0.10.0
libtpu: 0.0.40
codegen_flags: <defaults>
</compile_context>

<pallas_src>
import math
import functools

import jax
import jax.numpy as jnp
from jax import lax
from jax.experimental import pallas as pl
from jax.experimental.pallas import tpu as pltpu


# ---------------------------------------------------------------------------
# Kernel 1: RMSNorm -> fused QKV -> RoPE -> causal attention -> Wo -> residual.
# grid = (B,)  (one batch element per grid step, "parallel")
# ---------------------------------------------------------------------------
def _attn_block_kernel(x_ref, bias_ref, cos_ref, sin_ref, g1_ref,
                       wqkv_ref, wo_ref, o_ref, *, num_heads, head_dim, eps):
    x = x_ref[0]                                     # (S, H) f32
    S, H = x.shape
    nh, hd = num_heads, head_dim
    half = hd // 2

    # ---- attention pre-RMSNorm (f32 elementwise) --------------------------
    var = jnp.mean(x * x, axis=-1, keepdims=True)
    xn = (x * lax.rsqrt(var + eps) * g1_ref[...]).astype(jnp.bfloat16)

    # ---- fused QKV projection (one MXU matmul, bf16 in / f32 acc) ---------
    qkv = jnp.dot(xn, wqkv_ref[...], preferred_element_type=jnp.float32)  # (S, 3H)

    # ---- gather heads onto the row axis (lane-tile aligned slices) --------
    def stack_heads(col0):
        return jnp.concatenate(
            [qkv[:, col0 + h * hd: col0 + (h + 1) * hd] for h in range(nh)],
            axis=0)                                   # (nh*S, hd)

    q2 = stack_heads(0)
    k2 = stack_heads(H)
    v3 = stack_heads(2 * H).reshape(nh, S, hd)

    # ---- RoPE: rotate-half via XLU roll; the +/- sign is folded into sin --
    cos = jnp.concatenate([cos_ref[...]] * nh, axis=0)   # (nh*S, hd)
    sin = jnp.concatenate([sin_ref[...]] * nh, axis=0)   # signed sin

    def rope(t):   # t: (nh*S, hd) f32
        return cos * t + sin * pltpu.roll(t, shift=half, axis=1)

    q3 = rope(q2).astype(jnp.bfloat16).reshape(nh, S, hd)
    k3 = rope(k2).astype(jnp.bfloat16).reshape(nh, S, hd)

    # ---- batched scaled dot-product attention over all heads --------------
    scale = 1.0 / math.sqrt(hd)
    s = jnp.einsum('nqd,nkd->nqk', q3, k3,
                   preferred_element_type=jnp.float32) * scale        # (nh,S,S)

    s = s + bias_ref[0]                               # additive key-padding bias (1,S)
    row = lax.broadcasted_iota(jnp.int32, (S, S), 0)
    col = lax.broadcasted_iota(jnp.int32, (S, S), 1)
    s = jnp.where((col <= row)[None], s, -1e30)       # causal mask

    m = jnp.max(s, axis=-1, keepdims=True)
    p = jnp.exp(s - m)
    denom = jnp.sum(p, axis=-1, keepdims=True)
    p = p * pl.reciprocal(denom, approx=True)         # EUP reciprocal (free-ish)

    attn = jnp.einsum('nqk,nkd->nqd', p.astype(jnp.bfloat16),
                      v3.astype(jnp.bfloat16),
                      preferred_element_type=jnp.float32)             # (nh,S,hd)

    # heads back onto the lane axis (128-aligned concat), output proj + residual
    attn_flat = jnp.concatenate([attn[h] for h in range(nh)], axis=-1)  # (S,H)
    attn_out = jnp.dot(attn_flat.astype(jnp.bfloat16), wo_ref[...],
                       preferred_element_type=jnp.float32)
    o_ref[0] = x + attn_out


# ---------------------------------------------------------------------------
# Kernel 2: RMSNorm -> SwiGLU FFN -> residual, with streamed weight tiles.
# grid = (M // tm, I // ti): token tiles "parallel", intermediate tiles "arbitrary"
# ---------------------------------------------------------------------------
def _ffn_block_kernel(r1_ref, g2_ref, wg_ref, wu_ref, wd_ref, o_ref,
                      hn_ref, acc_ref, *, eps):
    i = pl.program_id(1)
    r1 = r1_ref[...]                                   # (tm, H) f32, resident

    @pl.when(i == 0)
    def _():
        var = jnp.mean(r1 * r1, axis=-1, keepdims=True)
        hn_ref[...] = (r1 * lax.rsqrt(var + eps) * g2_ref[...]).astype(hn_ref.dtype)
        acc_ref[...] = jnp.zeros_like(acc_ref)

    hn = hn_ref[...]                                   # (tm, H) bf16
    g = jnp.dot(hn, wg_ref[...], preferred_element_type=jnp.float32)   # (tm, ti)
    u = jnp.dot(hn, wu_ref[...], preferred_element_type=jnp.float32)
    act = (g * jax.nn.sigmoid(g) * u).astype(jnp.bfloat16)             # SiLU(gate)*up
    acc_ref[...] += jnp.dot(act, wd_ref[...], preferred_element_type=jnp.float32)

    @pl.when(i == pl.num_programs(1) - 1)
    def _():
        o_ref[...] = r1 + acc_ref[...]


# ---------------------------------------------------------------------------
# Wrapper
# ---------------------------------------------------------------------------
def llama_decoder_layer(x, attention_mask, params, *, num_heads,
                        eps=1e-5, rotary_base=10000.0, tm=128, ti=256):
    B, S, H = x.shape
    hd = H // num_heads
    wq, wk, wv, wo, wg, wu, wd, g1, g2 = params
    I = wg.shape[1]

    # rotary tables (rotate-half convention, full rotary fraction); rotate-half's
    # sign is folded into sin so the kernel uses a plain lane roll.
    pos = jnp.arange(S, dtype=jnp.float32)[:, None]
    dim = jnp.arange(0, hd, 2, dtype=jnp.float32)[None, :]
    theta = pos / (rotary_base ** (dim / hd))
    m_theta = jnp.concatenate([theta, theta], axis=-1)          # (S, hd)
    cos = jnp.cos(m_theta)
    sign = jnp.concatenate([-jnp.ones((hd // 2,), jnp.float32),
                            jnp.ones((hd // 2,), jnp.float32)])
    sin_signed = jnp.sin(m_theta) * sign[None, :]

    # key-padding additive bias, hoisted out of the kernel
    pad_bias = jnp.where(attention_mask > 0, 0.0, -1e30).astype(jnp.float32)
    pad_bias = pad_bias.reshape(B, 1, S)

    g1 = g1.reshape(1, H).astype(jnp.float32)
    g2 = g2.reshape(1, H).astype(jnp.float32)

    # bf16 weights for the MXU (all accumulation stays f32 in-kernel)
    wqkv = jnp.concatenate([wq, wk, wv], axis=1).astype(jnp.bfloat16)   # (H, 3H)
    wo_b = wo.astype(jnp.bfloat16)
    wg_b = wg.astype(jnp.bfloat16)
    wu_b = wu.astype(jnp.bfloat16)
    wd_b = wd.astype(jnp.bfloat16)
    x = x.astype(jnp.float32)

    # ---- kernel 1: attention block -----------------------------------------
    vmem1 = 2 * (2 * S * H * 4 + S * 4 + 2 * S * hd * 4 + H * 4
                 + H * 3 * H * 2 + H * H * 2) \
        + 4 * num_heads * S * S * 4 + 8 * S * H * 4
    attn_fn = functools.partial(_attn_block_kernel, num_heads=num_heads,
                                head_dim=hd, eps=eps)
    r1 = pl.pallas_call(
        attn_fn,
        out_shape=jax.ShapeDtypeStruct((B, S, H), jnp.float32),
        grid=(B,),
        in_specs=[
            pl.BlockSpec((1, S, H), lambda b: (b, 0, 0)),     # x
            pl.BlockSpec((1, 1, S), lambda b: (b, 0, 0)),     # padding bias
            pl.BlockSpec((S, hd), lambda b: (0, 0)),          # cos
            pl.BlockSpec((S, hd), lambda b: (0, 0)),          # signed sin
            pl.BlockSpec((1, H), lambda b: (0, 0)),           # attn RMSNorm weight
            pl.BlockSpec((H, 3 * H), lambda b: (0, 0)),       # fused Wqkv (bf16)
            pl.BlockSpec((H, H), lambda b: (0, 0)),           # Wo (bf16)
        ],
        out_specs=pl.BlockSpec((1, S, H), lambda b: (b, 0, 0)),
        compiler_params=pltpu.CompilerParams(
            dimension_semantics=("parallel",),
            vmem_limit_bytes=int(min(max(vmem1, 32 << 20), 120 << 20))),
    )(x, pad_bias, cos, sin_signed, g1, wqkv, wo_b)

    # ---- kernel 2: FFN block, token tiles parallel, intermediate streamed ---
    M = B * S
    tm = min(tm, M)
    ti = min(ti, I)
    assert M % tm == 0 and I % ti == 0, "token/intermediate tiling must divide"
    r1_flat = r1.reshape(M, H)

    vmem2 = 2 * (2 * tm * H * 4 + H * 4 + 2 * H * ti * 2 + ti * H * 2) \
        + tm * H * (4 + 2) + 4 * tm * ti * 4
    ffn_fn = functools.partial(_ffn_block_kernel, eps=eps)
    out = pl.pallas_call(
        ffn_fn,
        out_shape=jax.ShapeDtypeStruct((M, H), jnp.float32),
        grid=(M // tm, I // ti),
        in_specs=[
            pl.BlockSpec((tm, H), lambda m, i: (m, 0)),       # r1 rows (resident)
            pl.BlockSpec((1, H), lambda m, i: (0, 0)),        # ffn RMSNorm weight
            pl.BlockSpec((H, ti), lambda m, i: (0, i)),       # W_gate tile (bf16)
            pl.BlockSpec((H, ti), lambda m, i: (0, i)),       # W_up tile  (bf16)
            pl.BlockSpec((ti, H), lambda m, i: (i, 0)),       # W_down tile (bf16)
        ],
        out_specs=pl.BlockSpec((tm, H), lambda m, i: (m, 0)),
        scratch_shapes=[pltpu.VMEM((tm, H), jnp.bfloat16),    # normed activations
                        pltpu.VMEM((tm, H), jnp.float32)],    # f32 accumulator
        compiler_params=pltpu.CompilerParams(
            dimension_semantics=("parallel", "arbitrary"),
            vmem_limit_bytes=int(min(max(vmem2, 32 << 20), 120 << 20))),
    )(r1_flat, g2, wg_b, wu_b, wd_b)

    return out.reshape(B, S, H)


# ---------------------------------------------------------------------------
# Pure-JAX reference (f32) for correctness checking
# ---------------------------------------------------------------------------
def reference_layer(x, attention_mask, params, *, num_heads,
                    eps=1e-5, rotary_base=10000.0):
    B, S, H = x.shape
    hd = H // num_heads
    wq, wk, wv, wo, wg, wu, wd, g1, g2 = params

    def rmsnorm(t, g):
        return t * lax.rsqrt(jnp.mean(t * t, -1, keepdims=True) + eps) * g

    pos = jnp.arange(S, dtype=jnp.float32)[:, None]
    dim = jnp.arange(0, hd, 2, dtype=jnp.float32)[None, :]
    theta = pos / (rotary_base ** (dim / hd))
    m_theta = jnp.concatenate([theta, theta], axis=-1)
    sin, cos = jnp.sin(m_theta), jnp.cos(m_theta)

    xn = rmsnorm(x, g1)
    q = (xn @ wq).reshape(B, S, num_heads, hd).transpose(0, 2, 1, 3)
    k = (xn @ wk).reshape(B, S, num_heads, hd).transpose(0, 2, 1, 3)
    v = (xn @ wv).reshape(B, S, num_heads, hd).transpose(0, 2, 1, 3)

    def rope(t):
        half = hd // 2
        t_rot = jnp.concatenate([-t[..., half:], t[..., :half]], axis=-1)
        return cos * t + sin * t_rot

    q, k = rope(q), rope(k)
    scores = jnp.einsum("bhqd,bhkd->bhqk", q, k) / math.sqrt(hd)
    causal = jnp.tril(jnp.ones((S, S), bool))
    keep = causal[None, None] & (attention_mask[:, None, None, :] > 0)
    scores = jnp.where(keep, scores, -1e30)
    p = jax.nn.softmax(scores, axis=-1)
    a = jnp.einsum("bhqk,bhkd->bhqd", p, v).transpose(0, 2, 1, 3).reshape(B, S, H)
    r1 = x + a @ wo

    hn = rmsnorm(r1, g2)
    ffn = (jax.nn.silu(hn @ wg) * (hn @ wu)) @ wd
    return r1 + ffn


if __name__ == "__main__":
    B, S, H = 2, 128, 256
    num_heads = 2          # head_dim = 128 (lane-aligned, matches real LLaMA)
    intermediate = 512
    eps = 1e-5

    key = jax.random.PRNGKey(0)
    ks = jax.random.split(key, 9)
    scale = 0.05
    params = (
        scale * jax.random.normal(ks[0], (H, H), jnp.float32),             # Wq
        scale * jax.random.normal(ks[1], (H, H), jnp.float32),             # Wk
        scale * jax.random.normal(ks[2], (H, H), jnp.float32),             # Wv
        scale * jax.random.normal(ks[3], (H, H), jnp.float32),             # Wo
        scale * jax.random.normal(ks[4], (H, intermediate), jnp.float32),  # W_gate
        scale * jax.random.normal(ks[5], (H, intermediate), jnp.float32),  # W_up
        scale * jax.random.normal(ks[6], (intermediate, H), jnp.float32),  # W_down
        jnp.ones((H,), jnp.float32),                                       # attn RMSNorm
        jnp.ones((H,), jnp.float32),                                       # ffn RMSNorm
    )

    x = jax.random.normal(ks[7], (B, S, H), jnp.float32)
    # second batch element has its last 5 key positions masked out
    attention_mask = jnp.concatenate(
        [jnp.ones((1, S), jnp.int32),
         jnp.concatenate([jnp.ones((1, S - 5), jnp.int32),
                          jnp.zeros((1, 5), jnp.int32)], axis=1)], axis=0)

    out = llama_decoder_layer(x, attention_mask, params,
                              num_heads=num_heads, eps=eps)
    out = jax.block_until_ready(out)

    ref = reference_layer(x, attention_mask, params,
                          num_heads=num_heads, eps=eps)
    assert out.shape == (B, S, H)
    err = float(jnp.max(jnp.abs(out - ref)))
    # bf16 matmuls + approximate reciprocal -> compare against the f32 reference
    # with a correspondingly looser tolerance.
    assert err < 6e-2, f"max err {err}"
    print("KERNEL_OK")
</pallas_src>

<mosaic_0001>
module attributes {stable_mosaic.version = 11 : i64} {
  func.func @_attn_block_kernel(%arg0: i32, %arg1: memref<1x128x256xf32, #tpu.memory_space<vmem>>, %arg2: memref<1x1x128xf32, #tpu.memory_space<vmem>>, %arg3: memref<128x128xf32, #tpu.memory_space<vmem>>, %arg4: memref<128x128xf32, #tpu.memory_space<vmem>>, %arg5: memref<1x256xf32, #tpu.memory_space<vmem>>, %arg6: memref<256x768xbf16, #tpu.memory_space<vmem>>, %arg7: memref<256x256xbf16, #tpu.memory_space<vmem>>, %arg8: memref<1x128x256xf32, #tpu.memory_space<vmem>>) attributes {dimension_semantics = [#tpu.dimension_semantics<parallel>], iteration_bounds = array<i64: 2>, scalar_prefetch = 0 : i64, scratch_operands = 0 : i64, tpu.core_type = #tpu.core_type<tc>, window_params = [{transform_indices = @transform_0, window_bounds = array<i64: 1, 128, 256>}, {transform_indices = @transform_1, window_bounds = array<i64: 1, 1, 128>}, {pipeline_mode = #tpu.pipeline_mode<synchronous>, transform_indices = @transform_2, window_bounds = array<i64: 128, 128>}, {pipeline_mode = #tpu.pipeline_mode<synchronous>, transform_indices = @transform_3, window_bounds = array<i64: 128, 128>}, {pipeline_mode = #tpu.pipeline_mode<synchronous>, transform_indices = @transform_4, window_bounds = array<i64: 1, 256>}, {pipeline_mode = #tpu.pipeline_mode<synchronous>, transform_indices = @transform_5, window_bounds = array<i64: 256, 768>}, {pipeline_mode = #tpu.pipeline_mode<synchronous>, transform_indices = @transform_6, window_bounds = array<i64: 256, 256>}, {transform_indices = @transform_7, window_bounds = array<i64: 1, 128, 256>}]} {
    %c0 = arith.constant 0 : index
    %c0_0 = arith.constant 0 : index
    %c0_1 = arith.constant 0 : index
    %0 = vector.load %arg1[%c0, %c0_0, %c0_1] : memref<1x128x256xf32, #tpu.memory_space<vmem>>, vector<1x128x256xf32>
    %1 = vector.shape_cast %0 : vector<1x128x256xf32> to vector<128x256xf32>
    %2 = arith.mulf %1, %1 : vector<128x256xf32>
    %cst = arith.constant dense<0.000000e+00> : vector<128xf32>
    %3 = vector.multi_reduction <add>, %2, %cst [1] : vector<128x256xf32> to vector<128xf32>
    %4 = vector.shape_cast %3 : vector<128xf32> to vector<128x1xf32>
    %cst_2 = arith.constant 2.560000e+02 : f32
    %5 = vector.broadcast %cst_2 : f32 to vector<128x1xf32>
    %6 = arith.divf %4, %5 : vector<128x1xf32>
    %cst_3 = arith.constant 9.99999974E-6 : f32
    %7 = vector.broadcast %cst_3 : f32 to vector<128x1xf32>
    %8 = arith.addf %6, %7 : vector<128x1xf32>
    %9 = math.rsqrt %8 : vector<128x1xf32>
    %10 = vector.broadcast %9 : vector<128x1xf32> to vector<128x256xf32>
    %11 = arith.mulf %1, %10 : vector<128x256xf32>
    %c0_4 = arith.constant 0 : index
    %c0_5 = arith.constant 0 : index
    %12 = vector.load %arg5[%c0_4, %c0_5] : memref<1x256xf32, #tpu.memory_space<vmem>>, vector<1x256xf32>
    %13 = vector.broadcast %12 : vector<1x256xf32> to vector<128x256xf32>
    %14 = arith.mulf %11, %13 : vector<128x256xf32>
    %15 = arith.truncf %14 : vector<128x256xf32> to vector<128x256xbf16>
    %c0_6 = arith.constant 0 : index
    %c0_7 = arith.constant 0 : index
    %16 = vector.load %arg6[%c0_6, %c0_7] : memref<256x768xbf16, #tpu.memory_space<vmem>>, vector<256x768xbf16>
    %cst_8 = arith.constant dense<0.000000e+00> : vector<128x768xf32>
    %17 = tpu.matmul %15, %16, %cst_8 {dimension_numbers = #tpu.dot_dimension_numbers<[1], [0], [0], [1], [0, 0, 1, 1], [], []>} : vector<128x256xbf16>, vector<256x768xbf16>, vector<128x768xf32> -> vector<128x768xf32>
    %18 = vector.extract_strided_slice %17 {offsets = [0, 0], sizes = [128, 128], strides = [1, 1]} : vector<128x768xf32> to vector<128x128xf32>
    %19 = vector.extract_strided_slice %17 {offsets = [0, 128], sizes = [128, 128], strides = [1, 1]} : vector<128x768xf32> to vector<128x128xf32>
    %20 = tpu.concatenate %18, %19 in 0 : vector<128x128xf32>, vector<128x128xf32> -> vector<256x128xf32>
    %21 = vector.extract_strided_slice %17 {offsets = [0, 256], sizes = [128, 128], strides = [1, 1]} : vector<128x768xf32> to vector<128x128xf32>
    %22 = vector.extract_strided_slice %17 {offsets = [0, 384], sizes = [128, 128], strides = [1, 1]} : vector<128x768xf32> to vector<128x128xf32>
    %23 = tpu.concatenate %21, %22 in 0 : vector<128x128xf32>, vector<128x128xf32> -> vector<256x128xf32>
    %24 = vector.extract_strided_slice %17 {offsets = [0, 512], sizes = [128, 128], strides = [1, 1]} : vector<128x768xf32> to vector<128x128xf32>
    %25 = vector.extract_strided_slice %17 {offsets = [0, 640], sizes = [128, 128], strides = [1, 1]} : vector<128x768xf32> to vector<128x128xf32>
    %26 = tpu.concatenate %24, %25 in 0 : vector<128x128xf32>, vector<128x128xf32> -> vector<256x128xf32>
    %27 = vector.shape_cast %26 : vector<256x128xf32> to vector<2x128x128xf32>
    %c0_9 = arith.constant 0 : index
    %c0_10 = arith.constant 0 : index
    %28 = vector.load %arg3[%c0_9, %c0_10] : memref<128x128xf32, #tpu.memory_space<vmem>>, vector<128x128xf32>
    %29 = tpu.concatenate %28, %28 in 0 : vector<128x128xf32>, vector<128x128xf32> -> vector<256x128xf32>
    %c0_11 = arith.constant 0 : index
    %c0_12 = arith.constant 0 : index
    %30 = vector.load %arg4[%c0_11, %c0_12] : memref<128x128xf32, #tpu.memory_space<vmem>>, vector<128x128xf32>
    %31 = tpu.concatenate %30, %30 in 0 : vector<128x128xf32>, vector<128x128xf32> -> vector<256x128xf32>
    %32 = arith.mulf %29, %20 : vector<256x128xf32>
    %c64_i32 = arith.constant 64 : i32
    %33 = tpu.dynamic_rotate %20 by %c64_i32 dim 1 : vector<256x128xf32>, i32 -> vector<256x128xf32>
    %34 = arith.mulf %31, %33 : vector<256x128xf32>
    %35 = arith.addf %32, %34 : vector<256x128xf32>
    %36 = arith.truncf %35 : vector<256x128xf32> to vector<256x128xbf16>
    %37 = vector.shape_cast %36 : vector<256x128xbf16> to vector<2x128x128xbf16>
    %38 = arith.mulf %29, %23 : vector<256x128xf32>
    %c64_i32_13 = arith.constant 64 : i32
    %39 = tpu.dynamic_rotate %23 by %c64_i32_13 dim 1 : vector<256x128xf32>, i32 -> vector<256x128xf32>
    %40 = arith.mulf %31, %39 : vector<256x128xf32>
    %41 = arith.addf %38, %40 : vector<256x128xf32>
    %42 = arith.truncf %41 : vector<256x128xf32> to vector<256x128xbf16>
    %43 = vector.shape_cast %42 : vector<256x128xbf16> to vector<2x128x128xbf16>
    "tpu.trace_start"() <{level = 10 : i32, message = "nqd,nkd->nqk"}> : () -> ()
    %cst_14 = arith.constant dense<0.000000e+00> : vector<2x128x128xf32>
    %44 = tpu.matmul %37, %43, %cst_14 {dimension_numbers = #tpu.dot_dimension_numbers<[2], [2], [1], [1], [0, 0, 0, 1, 1, 1], [0], [0]>} : vector<2x128x128xbf16>, vector<2x128x128xbf16>, vector<2x128x128xf32> -> vector<2x128x128xf32>
    "tpu.trace_stop"() : () -> ()
    %cst_15 = arith.constant 0.0883883461 : f32
    %45 = vector.broadcast %cst_15 : f32 to vector<2x128x128xf32>
    %46 = arith.mulf %44, %45 : vector<2x128x128xf32>
    %c0_16 = arith.constant 0 : index
    %c0_17 = arith.constant 0 : index
    %c0_18 = arith.constant 0 : index
    %47 = vector.load %arg2[%c0_16, %c0_17, %c0_18] : memref<1x1x128xf32, #tpu.memory_space<vmem>>, vector<1x1x128xf32>
    %48 = vector.shape_cast %47 : vector<1x1x128xf32> to vector<1x128xf32>
    %49 = vector.shape_cast %48 : vector<1x128xf32> to vector<1x1x128xf32>
    %50 = vector.broadcast %49 : vector<1x1x128xf32> to vector<2x128x128xf32>
    %51 = arith.addf %46, %50 : vector<2x128x128xf32>
    %52 = tpu.iota {dimensions = array<i32: 0>} : vector<128x128xi32>
    %53 = tpu.iota {dimensions = array<i32: 1>} : vector<128x128xi32>
    %54 = arith.cmpi sle, %53, %52 : vector<128x128xi32>
    %55 = vector.shape_cast %54 : vector<128x128xi1> to vector<1x128x128xi1>
    %cst_19 = arith.constant -1.000000e+30 : f32
    %56 = vector.shape_cast %55 : vector<1x128x128xi1> to vector<1x128x128xi1>
    %57 = vector.broadcast %56 : vector<1x128x128xi1> to vector<2x128x128xi1>
    %58 = vector.broadcast %cst_19 : f32 to vector<2x128x128xf32>
    %59 = arith.select %57, %51, %58 : vector<2x128x128xi1>, vector<2x128x128xf32>
    %cst_20 = arith.constant dense<0xFF800000> : vector<2x128xf32>
    %60 = vector.multi_reduction <maximumf>, %59, %cst_20 [2] : vector<2x128x128xf32> to vector<2x128xf32>
    %61 = vector.shape_cast %60 : vector<2x128xf32> to vector<2x128x1xf32>
    %62 = vector.broadcast %61 : vector<2x128x1xf32> to vector<2x128x128xf32>
    %63 = arith.subf %59, %62 : vector<2x128x128xf32>
    %64 = math.exp %63 : vector<2x128x128xf32>
    %cst_21 = arith.constant dense<0.000000e+00> : vector<2x128xf32>
    %65 = vector.multi_reduction <add>, %64, %cst_21 [2] : vector<2x128x128xf32> to vector<2x128xf32>
    %66 = vector.shape_cast %65 : vector<2x128xf32> to vector<2x128x1xf32>
    %67 = tpu.reciprocal %66 {approx = true} : vector<2x128x1xf32> -> vector<2x128x1xf32>
    %68 = vector.broadcast %67 : vector<2x128x1xf32> to vector<2x128x128xf32>
    %69 = arith.mulf %64, %68 : vector<2x128x128xf32>
    %70 = arith.truncf %69 : vector<2x128x128xf32> to vector<2x128x128xbf16>
    %71 = arith.truncf %27 : vector<2x128x128xf32> to vector<2x128x128xbf16>
    "tpu.trace_start"() <{level = 10 : i32, message = "nqk,nkd->nqd"}> : () -> ()
    %cst_22 = arith.constant dense<0.000000e+00> : vector<2x128x128xf32>
    %72 = tpu.matmul %70, %71, %cst_22 {dimension_numbers = #tpu.dot_dimension_numbers<[2], [1], [1], [2], [0, 0, 0, 1, 1, 2], [0], [0]>} : vector<2x128x128xbf16>, vector<2x128x128xbf16>, vector<2x128x128xf32> -> vector<2x128x128xf32>
    "tpu.trace_stop"() : () -> ()
    %73 = vector.extract_strided_slice %72 {offsets = [0, 0, 0], sizes = [1, 128, 128], strides = [1, 1, 1]} : vector<2x128x128xf32> to vector<1x128x128xf32>
    %74 = vector.shape_cast %73 : vector<1x128x128xf32> to vector<128x128xf32>
    %75 = vector.extract_strided_slice %72 {offsets = [1, 0, 0], sizes = [1, 128, 128], strides = [1, 1, 1]} : vector<2x128x128xf32> to vector<1x128x128xf32>
    %76 = vector.shape_cast %75 : vector<1x128x128xf32> to vector<128x128xf32>
    %77 = tpu.concatenate %74, %76 in 1 : vector<128x128xf32>, vector<128x128xf32> -> vector<128x256xf32>
    %78 = arith.truncf %77 : vector<128x256xf32> to vector<128x256xbf16>
    %c0_23 = arith.constant 0 : index
    %c0_24 = arith.constant 0 : index
    %79 = vector.load %arg7[%c0_23, %c0_24] : memref<256x256xbf16, #tpu.memory_space<vmem>>, vector<256x256xbf16>
    %cst_25 = arith.constant dense<0.000000e+00> : vector<128x256xf32>
    %80 = tpu.matmul %78, %79, %cst_25 {dimension_numbers = #tpu.dot_dimension_numbers<[1], [0], [0], [1], [0, 0, 1, 1], [], []>} : vector<128x256xbf16>, vector<256x256xbf16>, vector<128x256xf32> -> vector<128x256xf32>
    %81 = arith.addf %1, %80 : vector<128x256xf32>
    %c0_26 = arith.constant 0 : index
    %c0_27 = arith.constant 0 : index
    %c0_28 = arith.constant 0 : index
    %82 = vector.load %arg8[%c0_26, %c0_27, %c0_28] : memref<1x128x256xf32, #tpu.memory_space<vmem>>, vector<1x128x256xf32>
    %83 = vector.shape_cast %82 : vector<1x128x256xf32> to vector<128x256xf32>
    %84 = vector.shape_cast %81 : vector<128x256xf32> to vector<1x128x256xf32>
    tpu.vector_store %arg8[%c0_26, %c0_27, %c0_28], %84 {strides = array<i32>} : memref<1x128x256xf32, #tpu.memory_space<vmem>>, vector<1x128x256xf32>,
    return
  }
  func.func @transform_0(%arg0: i32) -> (i32, i32, i32) {
    %c0_i32 = arith.constant 0 : i32
    %c0_i32_0 = arith.constant 0 : i32
    %c0_i32_1 = arith.constant 0 : i32
    return %arg0, %c0_i32, %c0_i32_0 : i32, i32, i32
  }
  func.func @transform_1(%arg0: i32) -> (i32, i32, i32) {
    %c0_i32 = arith.constant 0 : i32
    %c0_i32_0 = arith.constant 0 : i32
    %c0_i32_1 = arith.constant 0 : i32
    return %arg0, %c0_i32, %c0_i32_0 : i32, i32, i32
  }
  func.func @transform_2(%arg0: i32) -> (i32, i32) {
    %c0_i32 = arith.constant 0 : i32
    %c0_i32_0 = arith.constant 0 : i32
    %c0_i32_1 = arith.constant 0 : i32
    return %c0_i32, %c0_i32_0 : i32, i32
  }
  func.func @transform_3(%arg0: i32) -> (i32, i32) {
    %c0_i32 = arith.constant 0 : i32
    %c0_i32_0 = arith.constant 0 : i32
    %c0_i32_1 = arith.constant 0 : i32
    return %c0_i32, %c0_i32_0 : i32, i32
  }
  func.func @transform_4(%arg0: i32) -> (i32, i32) {
    %c0_i32 = arith.constant 0 : i32
    %c0_i32_0 = arith.constant 0 : i32
    %c0_i32_1 = arith.constant 0 : i32
    return %c0_i32, %c0_i32_0 : i32, i32
  }
  func.func @transform_5(%arg0: i32) -> (i32, i32) {
    %c0_i32 = arith.constant 0 : i32
    %c0_i32_0 = arith.constant 0 : i32
    %c0_i32_1 = arith.constant 0 : i32
    return %c0_i32, %c0_i32_0 : i32, i32
  }
  func.func @transform_6(%arg0: i32) -> (i32, i32) {
    %c0_i32 = arith.constant 0 : i32
    %c0_i32_0 = arith.constant 0 : i32
    %c0_i32_1 = arith.constant 0 : i32
    return %c0_i32, %c0_i32_0 : i32, i32
  }
  func.func @transform_7(%arg0: i32) -> (i32, i32, i32) {
    %c0_i32 = arith.constant 0 : i32
    %c0_i32_0 = arith.constant 0 : i32
    %c0_i32_1 = arith.constant 0 : i32
    return %arg0, %c0_i32, %c0_i32_0 : i32, i32, i32
  }
}

</mosaic_0001>

<bundles_post_ra>
// kernel: tpu_custom_call.1
= control target key start
LH: loop header
LB: loop body
LE: loop exit
PB: predicated region body
PF: predicated region fallthrough
CT: control target
= control target key end

     0   :  { %s6133_s0 = inlined_call_operand.hbm [shape: f32[2,128,256], index: 0, kind: input, shape index: {}]   ;;  %s6134_s1 = inlined_call_operand.vmem [shape: f32[2,1,128], index: 1, kind: input, shape index: {}]   ;;  %s6135_s2 = inlined_call_operand.hbm [shape: f32[128,128], index: 2, kind: input, shape index: {}]   ;;  %s6136_s3 = inlined_call_operand.hbm [shape: f32[128,128], index: 3, kind: input, shape index: {}]   ;;  %s6137_s4 = inlined_call_operand.vmem [shape: f32[1,256], index: 4, kind: input, shape index: {}]   ;;  %s6138_s5 = inlined_call_operand.hbm [shape: bf16[256,768], index: 5, kind: input, shape index: {}]   ;;  %s6139_s6 = inlined_call_operand.hbm [shape: bf16[256,256], index: 6, kind: input, shape index: {}]   ;;  %s6140_s7 = inlined_call_operand.hbm [shape: f32[2,128,256], index: 7, kind: output, shape index: {}]  }
   0x1   :  { %6191 = sst [smem:[#allocation57_spill]] %s6135_s2 }
   0x2   :  { %12 = vsyncpa [#allocation3], 0 }
   0x3   :  { %14 = vsyncpa [#allocation3 + $0x1], 0 }
   0x4   :  { %15 = vsyncpa [#allocation6], 0 }
   0x5   :  { %16 = vsyncpa [#allocation9], 0 }
   0x6   :  { %17 = vsyncpa [#allocation4], 0 }
   0x7   :  { %19 = vsyncpa [#allocation4 + $0x1], 0  ;;  %s4417_s24 = smov 0   ;;  %s4419_s25 = smov 0  }
   0x8   :  { %s4421_s26 = smov 0   ;;  %s4423_s27 = smov 0  }
   0x9 LB: > { %s4438_s28 = sadd.s32 4294967295, %s4360_s27   ;;  %s3319_s29 = sadd.s32 4294967294, %s4360_s27   ;;  %s4360_s27 = sphi %s4423_s27, %s6298_s27   ;;  %s4356_s26 = sphi %s4421_s26, %s6297_s26   ;;  %s4352_s25 = sphi %s4419_s25, %s6296_s25   ;;  %s4348_s24 = sphi %s4417_s24, %s6295_s24  }
   0xa   : > { %p45_p0 = scmp.ne.s32.totalorder %s4352_s25, %s4348_s24  ;;  %p6141_p1 = scmp.eq.s32.totalorder %s4438_s28, 0 }
   0xb   : > { %p206_p3 = scmp.eq.s32.totalorder %s3319_s29, 1  ;;  %p3320_p5 = scmp.ge.s32.totalorder %s4360_s27, 1 }
   0xc   : > { %p4447_p4 = por %p6141_p1, %p45_p0  ;;  %p213_p7 = scmp.lt.s32.totalorder %s4360_s27, 3 }
   0xd   : > { %p4452_p6 = por %p206_p3, %p45_p0  ;;  %s4362_s10 = smov [#allocation5]  }
   0xe   : > { %s6192_s30 = scalar_select %p4447_p4, 1, 0 }
   0xf   : > { %s6193_s8 = scalar_select %p4452_p6, 1, 0 }
  0x10   : > { %p4457_p8 = pnand %p3320_p5, %p213_p7  ;;  %s225_s11 = sshll.u32 %s4362_s10, 4  ;;  %s4461_s11 = int_to_ptr.vmem [resolvable:$true] %s225_s11 }
  0x11   : > { %s4363_s13 = smov [#allocation8]   ;;  %s6196_s2 = sld [smem:[#allocation57_spill]] }
  0x12   : > { %s6194_s9 = scalar_select %p4457_p8, 1, 0 }
  0x13   : > { %p3684_p9 = pneg %p4457_p8  ;;  %s254_s14 = sshll.u32 %s4363_s13, 4  ;;  %s4472_s14 = int_to_ptr.vmem [resolvable:$true] %s254_s14 }
  0x15   : > { %p4468_p11 = pnand %p3684_p9, %p6141_p1 }
  0x17   : > { %s4144_s17 = scalar_lea.hbm %s6196_s2, 2048  ;;  %p4482_p13 = pneg %p4468_p11 }
  0x18   : > { %p4145_p12 = scmp.ne.s32.totalorder %s6196_s2, %s4144_s17  ;;  %p4151_p5 = scmp.lt.u32.totalorder %s4144_s17, %s6196_s2 }
  0x1a   : > { %p4147_p0 = pnand %p4482_p13, %p4145_p12 }
  0x1c   : > { %p4148_p3 = pneg %p4147_p0 }
  0x1e   : > { %p4153_p7 = pnand %p4151_p5, %p4148_p3 }
  0x20   : > { %4156 = shalt.err (!%p4153_p7)
}
  0x21   : > { %s4157_s23 = scalar_lea.vmem %s4461_s11, 2048  ;;  %p4165_p2 = scmp.lt.s32.totalorder %s4461_s11, %s4461_s11 }
  0x22   : > { %p4158_p9 = scmp.ne.s32.totalorder %s4461_s11, %s4157_s23  ;;  %p4166_p6 = scmp.lt.s32.totalorder %s4157_s23, %s4157_s23 }
  0x24   : > { %p4160_p10 = pnand %p4158_p9, %p4482_p13  ;;  %p4167_p12 = por %p4166_p6, %p4165_p2 }
  0x26   : > { %p4161_p1 = pneg %p4160_p10 }
  0x28   : > { %p4168_p0 = pnand %p4167_p12, %p4161_p1 }
  0x2a   : > { %4171 = shalt.err (!%p4168_p0)
}
  0x2b   : > { %s6142_s29 = smov 128   ;;  %s6144_s10 = smov 8  }
  0x2c   : > { %3687 = dma.hbm_to_vmem [thread:$0]  (!%p4468_p11), %s6196_s2, 2048, %s4461_s11, [#allocation6], %s6142_s29, %s6142_s29, %s6144_s10  }
  0x2d   : > { %s4172_s18 = scalar_lea.hbm %s6138_s5, 12288 }
  0x2e   : > { %p4173_p1 = scmp.ne.s32.totalorder %s6138_s5, %s4172_s18  ;;  %p4179_p10 = scmp.lt.u32.totalorder %s4172_s18, %s6138_s5 }
  0x30   : > { %p4175_p2 = pnand %p4173_p1, %p4482_p13 }
  0x32   : > { %p4176_p6 = pneg %p4175_p2 }
  0x34   : > { %p4181_p3 = pnand %p4179_p10, %p4176_p6 }
  0x36   : > { %4184 = shalt.err (!%p4181_p3)
}
  0x37   : > { %s4185_s11 = scalar_lea.vmem %s4472_s14, 12288  ;;  %p4193_p12 = scmp.lt.s32.totalorder %s4472_s14, %s4472_s14 }
  0x38   : > { %p4186_p5 = scmp.ne.s32.totalorder %s4472_s14, %s4185_s11  ;;  %p4194_p0 = scmp.lt.s32.totalorder %s4185_s11, %s4185_s11 }
  0x3a   : > { %p4188_p7 = pnand %p4186_p5, %p4482_p13  ;;  %p4195_p1 = por %p4194_p0, %p4193_p12 }
  0x3c   : > { %p4189_p9 = pneg %p4188_p7 }
  0x3e   : > { %p4196_p2 = pnand %p4195_p1, %p4189_p9 }
  0x40   : > { %4199 = shalt.err (!%p4196_p2)
}
  0x41   : > { %s4366_s13 = smov 384   ;;  %s4367_s15 = smov 24  }
  0x42   : > { %3693 = dma.hbm_to_vmem [thread:$0]  (!%p4468_p11), %s6138_s5, 12288, %s4472_s14, [#allocation9], %s4366_s13, %s4366_s13, %s4367_s15  }
  0x43   : > { %s4368_s18 = smov [#allocation7]   ;;  %s4369_s21 = smov [#allocation10]  }
  0x44   : > { %s238_s19 = sshll.u32 %s4368_s18, 4  ;;  %s267_s22 = sshll.u32 %s4369_s21, 4  ;;  %s239_s19 = int_to_ptr.vmem [resolvable:$true] %s238_s19  ;;  %s4529_s22 = int_to_ptr.vmem [resolvable:$true] %s267_s22 }
  0x45   : > { %s4200_s29 = scalar_lea.hbm %s6136_s3, 2048 }
  0x46   : > { %p4201_p6 = scmp.ne.s32.totalorder %s6136_s3, %s4200_s29  ;;  %p4207_p5 = scmp.lt.u32.totalorder %s4200_s29, %s6136_s3 }
  0x48   : > { %p4203_p10 = pnand %p4201_p6, %p4482_p13 }
  0x4a   : > { %p4204_p3 = pneg %p4203_p10 }
  0x4c   : > { %p4209_p7 = pnand %p4207_p5, %p4204_p3 }
  0x4e   : > { %4212 = shalt.err (!%p4209_p7)
}
  0x4f   : > { %s4213_s13 = scalar_lea.vmem %s239_s19, 2048  ;;  %p4221_p1 = scmp.lt.s32.totalorder %s239_s19, %s239_s19 }
  0x50   : > { %p4214_p9 = scmp.ne.s32.totalorder %s239_s19, %s4213_s13  ;;  %p4222_p2 = scmp.lt.s32.totalorder %s4213_s13, %s4213_s13 }
  0x52   : > { %p4216_p12 = pnand %p4214_p9, %p4482_p13  ;;  %p4223_p4 = por %p4222_p2, %p4221_p1 }
  0x54   : > { %p4217_p0 = pneg %p4216_p12 }
  0x56   : > { %p4224_p8 = pnand %p4223_p4, %p4217_p0 }
  0x58   : > { %4227 = shalt.err (!%p4224_p8)
}
  0x59   : > { %s6198_s2 = smov 8   ;;  %s6199_s10 = smov 128  }
  0x5a   : > { %3690 = dma.hbm_to_vmem [thread:$0]  (!%p4468_p11), %s6136_s3, 2048, %s239_s19, [#allocation6], %s6199_s10, %s6199_s10, %s6198_s2  }
  0x5b   : > { %s4228_s21 = scalar_lea.hbm %s6139_s6, 4096 }
  0x5c   : > { %p4229_p6 = scmp.ne.s32.totalorder %s6139_s6, %s4228_s21  ;;  %p4235_p10 = scmp.lt.u32.totalorder %s4228_s21, %s6139_s6 }
  0x5e   : > { %p4231_p4 = pnand %p4229_p6, %p4482_p13 }
  0x60   : > { %p4232_p8 = pneg %p4231_p4 }
  0x62   : > { %p4237_p3 = pnand %p4235_p10, %p4232_p8 }
  0x64   : > { %4240 = shalt.err (!%p4237_p3)
}
  0x65   : > { %s4241_s19 = scalar_lea.vmem %s4529_s22, 4096  ;;  %p4249_p12 = scmp.lt.s32.totalorder %s4529_s22, %s4529_s22 }
  0x66   : > { %p4242_p5 = scmp.ne.s32.totalorder %s4529_s22, %s4241_s19  ;;  %p4250_p0 = scmp.lt.s32.totalorder %s4241_s19, %s4241_s19 }
  0x68   : > { %p4244_p7 = pnand %p4242_p5, %p4482_p13  ;;  %p4251_p1 = por %p4250_p0, %p4249_p12 }
  0x6a   : > { %p4245_p9 = pneg %p4244_p7 }
  0x6c   : > { %p4252_p2 = pnand %p4251_p1, %p4245_p9 }
  0x6e   : > { %4255 = shalt.err (!%p4252_p2)
}
  0x6f   : > { %3696 = dma.hbm_to_vmem [thread:$0]  (!%p4468_p11), %s6139_s6, 4096, %s4529_s22, [#allocation9], %s6199_s10, %s6199_s10, %s6198_s2  }
  0x70   : > { %s4579_s12 = sadd.s32 1, %s4360_s27   ;;  %s32_s29 = sadd.s32 1, %s4356_s26 }
  0x71   : > { %s29_s20 = ssub.s32 %s4360_s27, %s4579_s12  ;;  %p39_p6 = scmp.ne.s32.totalorder %s4356_s26, %s4352_s25 }
  0x72   : > { %p30_p13 = scmp.eq.s32.totalorder %s29_s20, 0  ;;  %p40_p4 = scmp.eq.s32.totalorder %s4360_s27, 0 }
  0x73   : > { %p6200_p10 = scmp.eq.s32.totalorder %s4438_s28, 1  ;;  %p3709_p5 = scmp.lt.s32.totalorder %s4360_s27, 2 }
  0x74   : > { %s4588_s17 = scalar_select %p30_p13, %s4356_s26, %s32_s29  }
  0x75   : > { %p41_p8 = por %p40_p4, %p39_p6  ;;  %p4592_p3 = por %p6200_p10, %p39_p6 }
  0x76   : > { %s281_s21 = sand.u32 1, %s4356_s26   ;;  %s3470_s22 = sshll.u32 %s4360_s27, 12 }
  0x77   : > { %s3326_s23 = sshll.u32 %s281_s21, 8  ;;  %s4602_s11 = scalar_lea.hbm %s6133_s0, %s3470_s22 }
  0x78   : > { %s285_s16 = scalar_lea.vmem [#allocation2], %s3326_s23  ;;  %p4606_p11 = pnand %p3709_p5, %p41_p8 }
  0x79   : > { %s292_s14 = sshll.u32 %s285_s16, 4  ;;  %s4610_s13 = scalar_lea.sflag [#allocation3], %s281_s21  ;;  %s4604_s14 = int_to_ptr.vmem [resolvable:$true] %s292_s14 }
  0x7a   : > { %s4256_s15 = scalar_lea.hbm %s4602_s11, 4096  ;;  %p4258_p9 = pneg %p4606_p11 }
  0x7b   : > { %p4257_p7 = scmp.ne.s32.totalorder %s4602_s11, %s4256_s15  ;;  %s4261_s23 = scalar_lea.hbm %s6133_s0, 8192 }
  0x7c   : > { %p4262_p1 = scmp.lt.u32.totalorder %s4602_s11, %s6133_s0  ;;  %p4263_p2 = scmp.lt.u32.totalorder %s4261_s23, %s4256_s15 }
  0x7d   : > { %p4259_p12 = pnand %p4258_p9, %p4257_p7  ;;  %p4265_p6 = scmp.lt.u32.totalorder %s4256_s15, %s4602_s11 }
  0x7e   : > { %p4264_p13 = por %p4263_p2, %p4262_p1 }
  0x7f   : > { %p4260_p0 = pneg %p4259_p12 }
  0x80   : > { %p4266_p4 = por %p4265_p6, %p4264_p13 }
  0x82   : > { %p4267_p8 = pnand %p4266_p4, %p4260_p0 }
  0x84   : > { %4270 = shalt.err (!%p4267_p8)
}
  0x85   : > { %s4271_s21 = scalar_lea.vmem %s4604_s14, 4096  ;;  %s4370_s10 = smov [#allocation2]  }
  0x86   : > { %p4272_p10 = scmp.ne.s32.totalorder %s4604_s14, %s4271_s21  ;;  %s4276_s16 = sshll.u32 %s4370_s10, 4  ;;  %s4277_s16 = int_to_ptr.vmem [resolvable:$false] %s4276_s16 }
  0x87   : > { %s4278_s20 = scalar_lea.vmem %s4277_s16, 8192  ;;  %p4279_p12 = scmp.lt.s32.totalorder %s4604_s14, %s4277_s16 }
  0x88   : > { %p4274_p5 = pnand %p4272_p10, %p4258_p9  ;;  %p4280_p1 = scmp.lt.s32.totalorder %s4278_s20, %s4271_s21 }
  0x8a   : > { %p4275_p7 = pneg %p4274_p5  ;;  %p4281_p2 = por %p4280_p1, %p4279_p12 }
  0x8c   : > { %p4282_p13 = pnand %p4281_p2, %p4275_p7 }
  0x8e   : > { %4285 = shalt.err (!%p4282_p13)
}
  0x8f   : > { %s4371_s15 = smov 256   ;;  %s4372_s29 = smov 16  }
  0x90   : > { %3700 = dma.hbm_to_vmem [thread:$0]  (!%p4606_p11), %s4602_s11, 4096, %s4604_s14, %s4610_s13, %s4371_s15, %s4371_s15, %s4372_s29  }
  0x91   : > { %p6203_p9 = scmp.ne.s32.totalorder %s6194_s9, 0 }
  0x93   : > { %310 = sbr.rel (%p6203_p9) target bundleno = 1884 (0x75c), region = 48 }
  0x9a   : > { %s4641_s23 = sand.u32 1, %s4352_s25   ;;  %p6204_p0 = scmp.ne.s32.totalorder %s6192_s30, 0 }
  0x9b   : > { %s3330_s22 = sshll.u32 %s4641_s23, 8  ;;  %s313_s2 = scalar_lea.sflag [#allocation3], %s4641_s23 }
  0x9c   : > { %s4647_s21 = scalar_lea.vmem [#allocation2], %s3330_s22 }
  0x9d   : > { %4331 = dma.done.wait (%p6204_p0), %s313_s2, 4096  }
  0x9e   : > { %4333 = vsyncadd (%p6204_p0), %s313_s2, 4294963200  ;;  %p6205_p11 = scmp.eq.s32.totalorder %s4438_s28, 0 }
  0xa0   : > { %4335 = dma.done.wait (%p6205_p11), [#allocation6], 4096   ;;  %p6206_p6 = pmov %p6205_p11 }
  0xa2   : > { %4337 = vsyncadd (%p6206_p6), [#allocation6], 4294963200  ;;  %p6207_p4 = pmov %p6206_p6 }
  0xa4   : > { %4339 = dma.done.wait (%p6207_p4), [#allocation9], 16384   ;;  %p6208_p8 = pmov %p6207_p4 }
  0xa5   : > { %v4662_v0 = vld [vmem:[%s4647_s21] sm:$0xff]  ;;  %v4665_v1 = vld [vmem:[%s4647_s21 + $0x8] sm:$0xff]  ;;  %v4680_v7 = vld [vmem:[%s4647_s21 + $0x10] sm:$0xff]  ;;  %s4373_s11 = smov 64   ;;  %p366_p10 = scmp.lt.s32.totalorder %s4438_s28, 1 }
  0xa6   : > { %4341 = vsyncadd (%p6208_p8), [#allocation9], 4294950912  ;;  %v4668_v2 = vld [vmem:[%s4647_s21 + $0x20] sm:$0xff]  ;;  %v402_v3 = vmul.f32 %v4662_v0, %v4662_v0  ;;  %v403_v4 = vmul.f32 %v4665_v1, %v4665_v1  ;;  %v4675_v5 = vld [vmem:[%s4647_s21 + $0x28] sm:$0xff]  ;;  %v404_v10 = vmul.f32 %v4680_v7, %v4680_v7  ;;  %s6018_s16 = scalar_lea.vmem [#allocation11], %s3330_s22  ;;  %s3471_s20 = sshll.u32 %s4438_s28, 12 }
  0xa7   : > { %v406_v6 = vmul.f32 %v4668_v2, %v4668_v2  ;;  %v4683_v8 = vld [vmem:[%s4647_s21 + $0x18] sm:$0xff]  ;;  %v407_v9 = vmul.f32 %v4675_v5, %v4675_v5  ;;  %v4692_v12 = vld [vmem:[%s4647_s21 + $0x30] sm:$0xff]  ;;  %v4708_v19 = vld [vmem:[%s4647_s21 + $0x40] sm:$0xff]  ;;  %s367_s14 = scalar_select %p366_p10, %s4438_s28, 1 }
  0xa8   : > { %v405_v11 = vmul.f32 %v4683_v8, %v4683_v8  ;;  %v4695_v13 = vld [vmem:[%s4647_s21 + $0x38] sm:$0xff]  ;;  %v4698_v14 = vld [vmem:[%s4647_s21 + $0x50] sm:$0xff]  ;;  %v434_v15 = vadd.f32 %v403_v4, %v402_v3  ;;  %v408_v16 = vmul.f32 %v4692_v12, %v4692_v12  ;;  %v4711_v20 = vld [vmem:[%s4647_s21 + $0x48] sm:$0xff]  ;;  %v410_v23 = vmul.f32 %v4708_v19, %v4708_v19  ;;  %s3199_s15 = sshll.u32 %s6018_s16, 4  ;;  %s6083_s2 = scalar_lea.hbm %s6140_s7, %s3471_s20  ;;  %s6085_s15 = int_to_ptr.vmem [resolvable:$true] %s3199_s15 }
  0xa9   : > { %v409_v17 = vmul.f32 %v4695_v13, %v4695_v13  ;;  %v4705_v18 = vld [vmem:[%s4647_s21 + $0x58] sm:$0xff]  ;;  %v440_v21 = vadd.f32 %v407_v9, %v406_v6  ;;  %v411_v24 = vmul.f32 %v4711_v20, %v4711_v20  ;;  %v412_v26 = vmul.f32 %v4698_v14, %v4698_v14  ;;  %v4722_v28 = vld [vmem:[%s4647_s21 + $0x60] sm:$0xff]  ;;  %v4725_v29 = vld [vmem:[%s4647_s21 + $0x68] sm:$0xff]  ;;  %s368_s10 = scalar_lea.vmem %s6134_s1, %s367_s14  ;;  %s3186_s28 = scalar_lea.sflag [#allocation4], %s4641_s23 }
  0xaa   : > { %435 = vadd.xlane.f32.xlu0 %v434_v15  ;;  %v437_v22 = vadd.f32 %v405_v11, %v404_v10  ;;  %v413_v27 = vmul.f32 %v4705_v18, %v4705_v18  ;;  %v4728_v30 = vld [vmem:[%s4647_s21 + $0x70] sm:$0xff]  ;;  %v4731_v31 = vld [vmem:[%s4647_s21 + $0x78] sm:$0xff]  ;;  %v414_v33 = vmul.f32 %v4722_v28, %v4722_v28  ;;  %v415_v34 = vmul.f32 %v4725_v29, %v4725_v29  ;;  %v4748_v40 = vld [vmem:[%s4647_s21 + $0x80] sm:$0xff]  ;;  %s4286_s30 = scalar_lea.vmem %s6085_s15, 4096  ;;  %s4374_s9 = smov [#allocation11]  }
  0xab   : > { %441 = vadd.xlane.f32.xlu1 %v440_v21  ;;  %v443_v25 = vadd.f32 %v409_v17, %v408_v16  ;;  %v446_v32 = vadd.f32 %v411_v24, %v410_v23  ;;  %v4738_v35 = vld [vmem:[%s4647_s21 + $0x90] sm:$0xff]  ;;  %v4741_v36 = vld [vmem:[%s4647_s21 + $0x98] sm:$0xff]  ;;  %v416_v38 = vmul.f32 %v4728_v30, %v4728_v30  ;;  %v417_v39 = vmul.f32 %v4731_v31, %v4731_v31  ;;  %v4751_v41 = vld [vmem:[%s4647_s21 + $0x88] sm:$0xff]  ;;  %p4287_p5 = scmp.ne.s32.totalorder %s6085_s15, %s4286_s30 }
  0xac   : > { %v449_v37 = vadd.f32 %v413_v27, %v412_v26  ;;  %v3760_v42 = vld [vmem:[#allocation8 + $0x4] ss:$24 sps:$4 sm:$0xff]   ;;  %v4757_v44 = vld [vmem:[%s4647_s21 + $0xa8] sm:$0xff]  ;;  %v3764_v46 = vld [vmem:[#allocation8] ss:$24 sps:$4 sm:$0xff]   ;;  %v452_v47 = vadd.f32 %v415_v34, %v414_v33  ;;  %v418_v48 = vmul.f32 %v4748_v40, %v4748_v40  ;;  %v419_v49 = vmul.f32 %v4751_v41, %v4751_v41 }
  0xad   : > { %v4754_v43 = vld [vmem:[%s4647_s21 + $0xa0] sm:$0xff]  ;;  %v3762_v45 = vld [vmem:[#allocation8 + $0x14] ss:$24 sps:$4 sm:$0xff]   ;;  %v4767_v51 = vld [vmem:[%s4647_s21 + $0xb8] sm:$0xff]  ;;  %1199 = vmatprep.subr.bf16.mxu1 %v3760_v42  ;;  %v455_v53 = vadd.f32 %v417_v39, %v416_v38  ;;  %v420_v54 = vmul.f32 %v4738_v35, %v4738_v35  ;;  %v421_v55 = vmul.f32 %v4741_v36, %v4741_v36  ;;  %v423_v3 = vmul.f32 %v4757_v44, %v4757_v44  ;;  %p4288_p7 = pnand %p4287_p5, %p4592_p3 }
  0xae   : > { %438 = vadd.xlane.f32.xlu0 %v437_v22  ;;  %v4764_v50 = vld [vmem:[%s4647_s21 + $0xb0] sm:$0xff]  ;;  %1425 = vmatprep.subr.bf16.mxu0 %v3762_v45  ;;  %v3768_v57 = vld [vmem:[#allocation8 + $0x44] ss:$24 sps:$4 sm:$0xff]   ;;  %v3771_v59 = vld [vmem:[#allocation8 + $0x40] ss:$24 sps:$4 sm:$0xff]   ;;  %v458_v62 = vadd.f32 %v419_v49, %v418_v48  ;;  %v422_v63 = vmul.f32 %v4754_v43, %v4754_v43  ;;  %v425_v15 = vmul.f32 %v4767_v51, %v4767_v51 }
  0xaf   : > { %444 = vadd.xlane.f32.xlu1 %v443_v25  ;;  %v3765_v52 = vld [vmem:[#allocation8 + $0x10] ss:$24 sps:$4 sm:$0xff]   ;;  %v3766_v56 = vld [vmem:[#allocation8 + $0x34] ss:$24 sps:$4 sm:$0xff]   ;;  %1200 = vmatpush1.bf16.msra.mxu1 %v3764_v46  ;;  %v4774_v60 = vld [vmem:[%s4647_s21 + $0xc0] sm:$0xff]  ;;  %v461_v10 = vadd.f32 %v421_v55, %v420_v54  ;;  %v424_v11 = vmul.f32 %v4764_v50, %v4764_v50  ;;  %p4289_p12 = pneg %p4288_p7 }
  0xb0   : > { %1426 = vmatpush1.bf16.msra.mxu0 %v3765_v52  ;;  %v3770_v58 = vld [vmem:[#allocation8 + $0x30] ss:$24 sps:$4 sm:$0xff]   ;;  %1201 = vmatprep.subr.bf16.mxu1 %v3766_v56  ;;  %v3772_v61 = vld [vmem:[#allocation8 + $0x64] ss:$24 sps:$4 sm:$0xff]   ;;  %v3774_v9 = vld [vmem:[#allocation8 + $0x74] ss:$24 sps:$4 sm:$0xff]   ;;  %v464_v24 = vadd.f32 %v423_v3, %v422_v63  ;;  %v426_v25 = vmul.f32 %v4774_v60, %v4774_v60 }
  0xb1   : > { %v4781_v4 = vld [vmem:[%s4647_s21 + $0xd0] sm:$0xff]  ;;  %v4784_v6 = vld [vmem:[%s4647_s21 + $0xd8] sm:$0xff]  ;;  %1427 = vmatprep.subr.bf16.mxu0 %v3768_v57  ;;  %v4791_v16 = vld [vmem:[%s4647_s21 + $0xc8] sm:$0xff]  ;;  %v467_v34 = vadd.f32 %v425_v15, %v424_v11 }
  0xb2   : > { %447 = vadd.xlane.f32.xlu0 %v446_v32  ;;  %v3776_v17 = vld [vmem:[#allocation8 + $0x60] ss:$24 sps:$4 sm:$0xff]   ;;  %v3777_v21 = vld [vmem:[#allocation8 + $0x70] ss:$24 sps:$4 sm:$0xff]   ;;  %v3778_v22 = vld [vmem:[#allocation8 + $0x94] ss:$24 sps:$4 sm:$0xff]   ;;  %v427_v26 = vmul.f32 %v4791_v16, %v4791_v16  ;;  %v429_v38 = vmul.f32 %v4784_v6, %v4784_v6 }
  0xb3   : > { %450 = vadd.xlane.f32.xlu1 %v449_v37  ;;  %1202 = vmatpush1.bf16.msra.mxu1 %v3770_v58  ;;  %v3780_v23 = vld [vmem:[#allocation8 + $0xa4] ss:$24 sps:$4 sm:$0xff]   ;;  %v4798_v27 = vld [vmem:[%s4647_s21 + $0xf0] sm:$0xff]  ;;  %v428_v37 = vmul.f32 %v4781_v4, %v4781_v4  ;;  %v4811_v39 = vld [vmem:[%s4647_s21 + $0xe8] sm:$0xff] }
  0xb4   : > { %1428 = vmatpush1.bf16.msra.mxu0 %v3771_v59  ;;  %1203 = vmatprep.subr.bf16.mxu1 %v3772_v61  ;;  %v4801_v32 = vld [vmem:[%s4647_s21 + $0xf8] sm:$0xff]  ;;  %v4804_v33 = vld [vmem:[%s4647_s21 + $0xe0] sm:$0xff]  ;;  %v3782_v42 = vld [vmem:[#allocation8 + $0x90] ss:$24 sps:$4 sm:$0xff]   ;;  %v470_v48 = vadd.f32 %v427_v26, %v426_v25  ;;  %v431_v52 = vmul.f32 %v4811_v39, %v4811_v39  ;;  %v432_v54 = vmul.f32 %v4798_v27, %v4798_v27 }
  0xb5   : > { %1429 = vmatprep.subr.bf16.mxu0 %v3774_v9  ;;  %v3783_v45 = vld [vmem:[#allocation8 + $0xa0] ss:$24 sps:$4 sm:$0xff]   ;;  %v3784_v46 = vld [vmem:[#allocation8 + $0xc4] ss:$24 sps:$4 sm:$0xff]   ;;  %v430_v49 = vmul.f32 %v4804_v33, %v4804_v33  ;;  %v433_v55 = vmul.f32 %v4801_v32, %v4801_v32  ;;  %v3789_v57 = vld [vmem:[#allocation8 + $0xd0] ss:$24 sps:$4 sm:$0xff]  }
  0xb6   : > { %453 = vadd.xlane.f32.xlu0 %v452_v47  ;;  %v3786_v47 = vld [vmem:[#allocation8 + $0xd4] ss:$24 sps:$4 sm:$0xff]   ;;  %v3788_v56 = vld [vmem:[#allocation8 + $0xc0] ss:$24 sps:$4 sm:$0xff]   ;;  %v3792_v59 = vld [vmem:[#allocation8 + $0x104] ss:$24 sps:$4 sm:$0xff]  }
  0xb7   : > { %456 = vadd.xlane.f32.xlu1 %v455_v53  ;;  %1204 = vmatpush1.bf16.msra.mxu1 %v3776_v17  ;;  %v473_v53 = vadd.f32 %v429_v38, %v428_v37  ;;  %v3790_v58 = vld [vmem:[#allocation8 + $0xf4] ss:$24 sps:$4 sm:$0xff]   ;;  %v476_v61 = vadd.f32 %v431_v52, %v430_v49  ;;  %v3794_v63 = vld [vmem:[#allocation8 + $0xf0] ss:$24 sps:$4 sm:$0xff]   ;;  %v3795_v3 = vld [vmem:[#allocation8 + $0x100] ss:$24 sps:$4 sm:$0xff]  }
  0xb8   : > { %1430 = vmatpush1.bf16.msra.mxu0 %v3777_v21  ;;  %1205 = vmatprep.subr.bf16.mxu1 %v3778_v22  ;;  %v3796_v9 = vld [vmem:[#allocation8 + $0x124] ss:$24 sps:$4 sm:$0xff]   ;;  %v3800_v11 = vld [vmem:[#allocation8 + $0x120] ss:$24 sps:$4 sm:$0xff]   ;;  %v3801_v15 = vld [vmem:[#allocation8 + $0x130] ss:$24 sps:$4 sm:$0xff]  }
  0xb9   : > { %1431 = vmatprep.subr.bf16.mxu0 %v3780_v23  ;;  %v3802_v17 = vld [vmem:[#allocation8 + $0x154] ss:$24 sps:$4 sm:$0xff]   ;;  %v3804_v21 = vld [vmem:[#allocation8 + $0x164] ss:$24 sps:$4 sm:$0xff]   ;;  %v3806_v22 = vld [vmem:[#allocation8 + $0x150] ss:$24 sps:$4 sm:$0xff]  }
  0xba   : > { %459 = vadd.xlane.f32.xlu0 %v458_v62  ;;  %v479_v62 = vadd.f32 %v433_v55, %v432_v54  ;;  %v3807_v23 = vld [vmem:[#allocation8 + $0x160] ss:$24 sps:$4 sm:$0xff]   ;;  %v3810_v25 = vld [vmem:[#allocation8 + $0x194] ss:$24 sps:$4 sm:$0xff]   ;;  %v3816_v38 = vld [vmem:[#allocation8 + $0x1c4] ss:$24 sps:$4 sm:$0xff]  }
  0xbb   : > { %462 = vadd.xlane.f32.xlu1 %v461_v10  ;;  %1206 = vmatpush1.bf16.msra.mxu1 %v3782_v42  ;;  %v3798_v10 = vld [vmem:[#allocation8 + $0x134] ss:$24 sps:$4 sm:$0xff]   ;;  %v3812_v26 = vld [vmem:[#allocation8 + $0x180] ss:$24 sps:$4 sm:$0xff]   ;;  %v3818_v42 = vld [vmem:[#allocation8 + $0x1b0] ss:$24 sps:$4 sm:$0xff]  }
  0xbc   : > { %1432 = vmatpush1.bf16.msra.mxu0 %v3783_v45  ;;  %1207 = vmatprep.subr.bf16.mxu1 %v3784_v46  ;;  %v3814_v37 = vld [vmem:[#allocation8 + $0x1b4] ss:$24 sps:$4 sm:$0xff]   ;;  %v3819_v45 = vld [vmem:[#allocation8 + $0x1c0] ss:$24 sps:$4 sm:$0xff]   ;;  %v3820_v46 = vld [vmem:[#allocation8 + $0x1e4] ss:$24 sps:$4 sm:$0xff]  }
  0xbd   : > { %1433 = vmatprep.subr.bf16.mxu0 %v3786_v47  ;;  %v3822_v47 = vld [vmem:[#allocation8 + $0x1f4] ss:$24 sps:$4 sm:$0xff]   ;;  %v3825_v49 = vld [vmem:[#allocation8 + $0x1f0] ss:$24 sps:$4 sm:$0xff]   ;;  %v3831_v55 = vld [vmem:[#allocation8 + $0x220] ss:$24 sps:$4 sm:$0xff]  }
  0xbe   : > { %465 = vadd.xlane.f32.xlu0 %v464_v24  ;;  %v3808_v24 = vld [vmem:[#allocation8 + $0x184] ss:$24 sps:$4 sm:$0xff]   ;;  %v3826_v52 = vld [vmem:[#allocation8 + $0x214] ss:$24 sps:$4 sm:$0xff]   ;;  %v3830_v54 = vld [vmem:[#allocation8 + $0x210] ss:$24 sps:$4 sm:$0xff]  }
  0xbf   : > { %468 = vadd.xlane.f32.xlu1 %v467_v34  ;;  %1208 = vmatpush1.bf16.msra.mxu1 %v3788_v56  ;;  %v3813_v34 = vld [vmem:[#allocation8 + $0x190] ss:$24 sps:$4 sm:$0xff]   ;;  %v3832_v56 = vld [vmem:[#allocation8 + $0x244] ss:$24 sps:$4 sm:$0xff]  }
  0xc0   : > { %1434 = vmatpush1.bf16.msra.mxu0 %v3789_v57  ;;  %1209 = vmatprep.subr.bf16.mxu1 %v3790_v58  ;;  %v3834_v57 = vld [vmem:[#allocation8 + $0x254] ss:$24 sps:$4 sm:$0xff]   ;;  %v3836_v58 = vld [vmem:[#allocation8 + $0x240] ss:$24 sps:$4 sm:$0xff]  }
  0xc1   : > { %1435 = vmatprep.subr.bf16.mxu0 %v3792_v59  ;;  %v3837_v59 = vld [vmem:[#allocation8 + $0x250] ss:$24 sps:$4 sm:$0xff]  }
  0xc2   : > { %471 = vadd.xlane.f32.xlu0 %v470_v48  ;;  %v3824_v48 = vld [vmem:[#allocation8 + $0x1e0] ss:$24 sps:$4 sm:$0xff]  }
  0xc3   : > { %474 = vadd.xlane.f32.xlu1 %v473_v53  ;;  %1210 = vmatpush1.bf16.msra.mxu1 %v3794_v63  ;;  %v3828_v53 = vld [vmem:[#allocation8 + $0x224] ss:$24 sps:$4 sm:$0xff]   ;;  %v3842_v63 = vld [vmem:[#allocation8 + $0x270] ss:$24 sps:$4 sm:$0xff]  }
  0xc4   : > { %1436 = vmatpush1.bf16.msra.mxu0 %v3795_v3  ;;  %1211 = vmatprep.subr.bf16.mxu1 %v3796_v9  ;;  %v3843_v3 = vld [vmem:[#allocation8 + $0x280] ss:$24 sps:$4 sm:$0xff]   ;;  %v3844_v9 = vld [vmem:[#allocation8 + $0x2a4] ss:$24 sps:$4 sm:$0xff]  }
  0xc5   : > { %1437 = vmatprep.subr.bf16.mxu0 %v3798_v10  ;;  %v3846_v10 = vld [vmem:[#allocation8 + $0x2b4] ss:$24 sps:$4 sm:$0xff]  }
  0xc6   : > { %477 = vadd.xlane.f32.xlu0 %v476_v61  ;;  %v3838_v61 = vld [vmem:[#allocation8 + $0x274] ss:$24 sps:$4 sm:$0xff]  }
  0xc7   : > { %480 = vadd.xlane.f32.xlu1 %v479_v62  ;;  %1212 = vmatpush1.bf16.msra.mxu1 %v3800_v11  ;;  %v3840_v62 = vld [vmem:[#allocation8 + $0x284] ss:$24 sps:$4 sm:$0xff]   ;;  %v3848_v11 = vld [vmem:[#allocation8 + $0x2a0] ss:$24 sps:$4 sm:$0xff]  }
  0xc8   : > { %1438 = vmatpush1.bf16.msra.mxu0 %v3801_v15  ;;  %1213 = vmatprep.subr.bf16.mxu1 %v3802_v17  ;;  %v3849_v15 = vld [vmem:[#allocation8 + $0x2b0] ss:$24 sps:$4 sm:$0xff]   ;;  %v3850_v17 = vld [vmem:[#allocation8 + $0x2d4] ss:$24 sps:$4 sm:$0xff]  }
  0xc9   : > { %1439 = vmatprep.subr.bf16.mxu0 %v3804_v21  ;;  %v3852_v21 = vld [vmem:[#allocation8 + $0x2e4] ss:$24 sps:$4 sm:$0xff]  }
  0xcb   : > { %1214 = vmatpush1.bf16.msra.mxu1 %v3806_v22  ;;  %v3854_v22 = vld [vmem:[#allocation8 + $0x2d0] ss:$24 sps:$4 sm:$0xff]  }
  0xcc   : > { %1440 = vmatpush1.bf16.msra.mxu0 %v3807_v23  ;;  %1215 = vmatprep.subr.bf16.mxu1 %v3808_v24  ;;  %v3855_v23 = vld [vmem:[#allocation8 + $0x2e0] ss:$24 sps:$4 sm:$0xff]   ;;  %v3858_v24 = vld [vmem:[#allocation8 + $0xc] ss:$24 sps:$4 sm:$0xff]  }
  0xcd   : > { %1441 = vmatprep.subr.bf16.mxu0 %v3810_v25 }
  0xcf   : > { %1216 = vmatpush1.bf16.msra.mxu1 %v3812_v26 }
  0xd0   : > { %1442 = vmatpush1.bf16.msra.mxu0 %v3813_v34  ;;  %1217 = vmatprep.subr.bf16.mxu1 %v3814_v37 }
  0xd1   : > { %1443 = vmatprep.subr.bf16.mxu0 %v3816_v38 }
  0xd3   : > { %1218 = vmatpush1.bf16.msra.mxu1 %v3818_v42 }
  0xd4   : > { %1444 = vmatpush1.bf16.msra.mxu0 %v3819_v45  ;;  %1219 = vmatprep.subr.bf16.mxu1 %v3820_v46 }
  0xd5   : > { %1445 = vmatprep.subr.bf16.mxu0 %v3822_v47 }
  0xd7   : > { %1220 = vmatpush1.bf16.msra.mxu1 %v3824_v48  ;;  %v6148_v48 = vlaneseq }
  0xd8   : > { %1446 = vmatpush1.bf16.msra.mxu0 %v3825_v49  ;;  %1221 = vmatprep.subr.bf16.mxu1 %v3826_v52 }
  0xd9   : > { %1447 = vmatprep.subr.bf16.mxu0 %v3828_v53 }
  0xdb   : > { %1222 = vmatpush1.bf16.msra.mxu1 %v3830_v54 }
  0xdc   : > { %1448 = vmatpush1.bf16.msra.mxu0 %v3831_v55  ;;  %1223 = vmatprep.subr.bf16.mxu1 %v3832_v56 }
  0xdd   : > { %1449 = vmatprep.subr.bf16.mxu0 %v3834_v57  ;;  %v4822_v57 = vshrl.u32 %v6148_v48, 7 }
  0xdf   : > { %1224 = vmatpush1.bf16.msra.mxu1 %v3836_v58  ;;  %6209 = vst [vmem:[#allocation16_spill] sm:$0xff] %v4822_v57 }
  0xe0   : > { %1450 = vmatpush1.bf16.msra.mxu0 %v3837_v59  ;;  %1225 = vmatprep.subr.bf16.mxu1 %v3838_v61 }
  0xe1   : > { %1451 = vmatprep.subr.bf16.mxu0 %v3840_v62 }
  0xe3   : > { %1226 = vmatpush1.bf16.msra.mxu1 %v3842_v63  ;;  %v571_v63 = vsub.s32 1, %v4822_v57 }
  0xe4   : > { %1452 = vmatpush1.bf16.msra.mxu0 %v3843_v3  ;;  %1227 = vmatprep.subr.bf16.mxu1 %v3844_v9 }
  0xe5   : > { %1453 = vmatprep.subr.bf16.mxu0 %v3846_v10  ;;  %v563_v10 = vld [vmem:[%s6137_s4] sm:$0x3] }
  0xe7   : > { %1228 = vmatpush1.bf16.msra.mxu1 %v3848_v11  ;;  %v567_v11 = vsub.s32 0, %v4822_v57 }
  0xe8   : > { %1454 = vmatpush1.bf16.msra.mxu0 %v3849_v15  ;;  %1229 = vmatprep.subr.bf16.mxu1 %v3850_v17 }
  0xe9   : > { %1455 = vmatprep.subr.bf16.mxu0 %v3852_v21 }
  0xeb   : > { %1230 = vmatpush1.bf16.msra.mxu1 %v3854_v22 }
  0xec   : > { %1456 = vmatpush1.bf16.msra.mxu0 %v3855_v23  ;;  %1312 = vmatprep.subr.bf16.mxu1 %v3858_v24 }
 0x137   : > { %v436_v25 = vpop.xlane.xlu0 %435 }
 0x138   : > { %v483_v26 = vmul.f32 0.00390625, %v436_v25  ;;  %v442_v34 = vpop.xlane.xlu1 %441 }
 0x139   : > { %v485_v37 = vmul.f32 0.00390625, %v442_v34 }
 0x13a   : > { %v499_v38 = vadd.f32 1e-05, %v483_v26  ;;  %v4830_v26 = vrot.slane %v563_v10, %v571_v63 }
 0x13b   : > { %v501_v42 = vadd.f32 1e-05, %v485_v37  ;;  %v439_v45 = vpop.xlane.xlu0 %438 }
 0x13c   : > { %3952 = vrsqrt.f32 %v499_v38  ;;  %v484_v46 = vmul.f32 0.00390625, %v439_v45  ;;  %v445_v47 = vpop.xlane.xlu1 %444 }
 0x13d   : > { %3954 = vrsqrt.f32 %v501_v42  ;;  %v486_v49 = vmul.f32 0.00390625, %v445_v47  ;;  %v4834_v42 = vrot.slane %v563_v10, %v567_v11 }
 0x13e   : > { %v500_v52 = vadd.f32 1e-05, %v484_v46 }
 0x13f   : > { %v502_v53 = vadd.f32 1e-05, %v486_v49  ;;  %v448_v54 = vpop.xlane.xlu0 %447 }
 0x140   : > { %3956 = vrsqrt.f32 %v500_v52  ;;  %v451_v55 = vpop.xlane.xlu1 %450  ;;  %v487_v56 = vmul.f32 0.00390625, %v448_v54 }
 0x141   : > { %3958 = vrsqrt.f32 %v502_v53  ;;  %v488_v58 = vmul.f32 0.00390625, %v451_v55 }
 0x142   : > { %v503_v59 = vadd.f32 1e-05, %v487_v56 }
 0x143   : > { %v504_v61 = vadd.f32 1e-05, %v488_v58  ;;  %v454_v62 = vpop.xlane.xlu0 %453 }
 0x144   : > { %3960 = vrsqrt.f32 %v503_v59  ;;  %v457_v3 = vpop.xlane.xlu1 %456  ;;  %v489_v9 = vmul.f32 0.00390625, %v454_v62 }
 0x145   : > { %3962 = vrsqrt.f32 %v504_v61  ;;  %v490_v15 = vmul.f32 0.00390625, %v457_v3 }
 0x146   : > { %v3953_v17 = vpop.eup %3952  ;;  %v505_v21 = vadd.f32 1e-05, %v489_v9 }
 0x147   : > { %v3955_v22 = vpop.eup %3954  ;;  %v506_v23 = vadd.f32 1e-05, %v490_v15  ;;  %v460_v24 = vpop.xlane.xlu0 %459  ;;  %v532_v25 = vmul.f32 %v3953_v17, %v4665_v1  ;;  %v531_v38 = vmul.f32 %v3953_v17, %v4662_v0  ;;  %v3861_v15 = vld [vmem:[#allocation8 + $0x3c] ss:$24 sps:$4 sm:$0xff]  }
 0x148   : > { %v536_v34 = vmul.f32 %v3955_v22, %v4675_v5  ;;  %v463_v37 = vpop.xlane.xlu1 %462  ;;  %3964 = vrsqrt.f32 %v505_v21  ;;  %v491_v45 = vmul.f32 0.00390625, %v460_v24  ;;  %v535_v17 = vmul.f32 %v3955_v22, %v4668_v2  ;;  %v3859_v2 = vld [vmem:[#allocation8 + $0x38] ss:$24 sps:$4 sm:$0xff]  }
 0x149   : > { %3966 = vrsqrt.f32 %v506_v23  ;;  %v492_v47 = vmul.f32 0.00390625, %v463_v37  ;;  %v576_v1 = vmul.f32 %v4830_v26, %v532_v25  ;;  %v575_v55 = vmul.f32 %v4834_v42, %v531_v38  ;;  %v3864_v38 = vld [vmem:[#allocation8 + $0x6c] ss:$24 sps:$4 sm:$0xff]  }
 0x14a   : > { %v3957_v46 = vpop.eup %3956  ;;  %v580_v5 = vmul.f32 %v4830_v26, %v536_v34  ;;  %v507_v58 = vadd.f32 1e-05, %v491_v45  ;;  %v579_v34 = vmul.f32 %v4834_v42, %v535_v17 }
 0x14b   : > { %v3959_v49 = vpop.eup %3958  ;;  %v534_v52 = vmul.f32 %v3957_v46, %v4683_v8  ;;  %v533_v53 = vmul.f32 %v3957_v46, %v4680_v7  ;;  %v508_v62 = vadd.f32 1e-05, %v492_v47  ;;  %v466_v8 = vpop.xlane.xlu0 %465 }
 0x14c   : > { %v538_v54 = vmul.f32 %v3959_v49, %v4695_v13  ;;  %v3856_v13 = vld [vmem:[#allocation8 + $0x8] ss:$24 sps:$4 sm:$0xff]   ;;  %v469_v10 = vpop.xlane.xlu1 %468  ;;  %v537_v21 = vmul.f32 %v3959_v49, %v4692_v12  ;;  %3968 = vrsqrt.f32 %v507_v58  ;;  %v493_v24 = vmul.f32 0.00390625, %v466_v8 }
 0x14d   : > { %v578_v0 = vmul.f32 %v4830_v26, %v534_v52  ;;  %v577_v56 = vmul.f32 %v4834_v42, %v533_v53  ;;  %3970 = vrsqrt.f32 %v508_v62  ;;  %v3862_v53 = vld [vmem:[#allocation8 + $0x68] ss:$24 sps:$4 sm:$0xff]  }
 0x14e   : > { %v3961_v59 = vpop.eup %3960  ;;  %v582_v61 = vmul.f32 %v4830_v26, %v538_v54  ;;  %v581_v37 = vmul.f32 %v4834_v42, %v537_v21  ;;  %v509_v45 = vadd.f32 1e-05, %v493_v24 }
 0x14f   : > { %v3963_v63 = vpop.eup %3962  ;;  %v4845_v7 = vpack.c.bf16 %v578_v0, %v576_v1  ;;  %v4847_v3 = vpack.c.bf16 %v577_v56, %v575_v55  ;;  %v540_v9 = vmul.f32 %v3961_v59, %v4711_v20  ;;  %v494_v20 = vmul.f32 0.00390625, %v469_v10  ;;  %v472_v0 = vpop.xlane.xlu0 %471  ;;  %v3867_v56 = vld [vmem:[#allocation8 + $0x9c] ss:$24 sps:$4 sm:$0xff]  }
 0x150   : > { %v4850_v11 = vpack.c.bf16 %v582_v61, %v580_v5  ;;  %v542_v23 = vmul.f32 %v3963_v63, %v4705_v18  ;;  %v539_v46 = vmul.f32 %v3961_v59, %v4708_v19  ;;  %v541_v47 = vmul.f32 %v3963_v63, %v4698_v14  ;;  %v475_v52 = vpop.xlane.xlu1 %474  ;;  %v3870_v63 = vld [vmem:[#allocation8 + $0xcc] ss:$24 sps:$4 sm:$0xff]  }
 0x151   : > { %1231 = vmatprep.mubr.bf16.mxu1 %v4845_v7  ;;  %1457 = vmatprep.mubr.bf16.mxu0 %v4845_v7  ;;  %v584_v12 = vmul.f32 %v4830_v26, %v540_v9  ;;  %v510_v49 = vadd.f32 1e-05, %v494_v20  ;;  %v4871_v55 = vpack.c.bf16 %v581_v37, %v579_v34  ;;  %3972 = vrsqrt.f32 %v509_v45  ;;  %v3876_v45 = vld [vmem:[#allocation8 + $0x12c] ss:$24 sps:$4 sm:$0xff]  }
 0x152   : > { %1232 = vmatmul.mubr.bf16.vlgmr.msra.gmra.mrb[0].mxu1 %v4847_v3  ;;  %1458 = vmatmul.mubr.bf16.vlgmr.msra.gmra.mrb[0].mxu0 %v4847_v3  ;;  %v3965_v25 = vpop.eup %3964  ;;  %v586_v18 = vmul.f32 %v4830_v26, %v542_v23  ;;  %v496_v58 = vmul.f32 0.00390625, %v475_v52  ;;  %v583_v14 = vmul.f32 %v4834_v42, %v539_v46  ;;  %v585_v19 = vmul.f32 %v4834_v42, %v541_v47  ;;  %v3868_v23 = vld [vmem:[#allocation8 + $0xc8] ss:$24 sps:$4 sm:$0xff]  }
 0x153   : > { %1313 = vmatpush1.bf16.msra.mxu1 %v3856_v13  ;;  %1241 = vmatprep.mubr.bf16.mxu1 %v4850_v11  ;;  %v3967_v22 = vpop.eup %3966  ;;  %v544_v54 = vmul.f32 %v3965_v25, %v4725_v29  ;;  %3974 = vrsqrt.f32 %v510_v49  ;;  %v495_v59 = vmul.f32 0.00390625, %v472_v0  ;;  %v543_v10 = vmul.f32 %v3965_v25, %v4722_v28 }
 0x154   : > { %1467 = vmatprep.mubr.bf16.mxu0 %v4850_v11  ;;  %1314 = vmatprep.subr.bf16.mxu1 %v3861_v15  ;;  %v4867_v1 = vpack.c.bf16 %v586_v18, %v584_v12  ;;  %v546_v5 = vmul.f32 %v3967_v22, %v4731_v31  ;;  %v3865_v31 = vld [vmem:[#allocation8 + $0x98] ss:$24 sps:$4 sm:$0xff]   ;;  %v512_v13 = vadd.f32 1e-05, %v496_v58  ;;  %v4881_v9 = vpack.c.bf16 %v585_v19, %v583_v14  ;;  %v481_v21 = vpop.xlane.xlu1 %480  ;;  %v478_v12 = vpop.xlane.xlu0 %477  ;;  %v3873_v18 = vld [vmem:[#allocation8 + $0xfc] ss:$24 sps:$4 sm:$0xff]  }
 0x155   : > { %v588_v61 = vmul.f32 %v4830_v26, %v544_v54  ;;  %v545_v15 = vmul.f32 %v3967_v22, %v4728_v30  ;;  %v511_v17 = vadd.f32 1e-05, %v495_v59  ;;  %v498_v34 = vmul.f32 0.00390625, %v481_v21  ;;  %v3874_v54 = vld [vmem:[#allocation8 + $0x128] ss:$24 sps:$4 sm:$0xff]  }
 0x156   : > { %v3969_v29 = vpop.eup %3968  ;;  %v590_v62 = vmul.f32 %v4830_v26, %v546_v5  ;;  %3976 = vrsqrt.f32 %v512_v13  ;;  %v587_v28 = vmul.f32 %v4834_v42, %v543_v10  ;;  %v497_v25 = vmul.f32 0.00390625, %v478_v12  ;;  %v3879_v58 = vld [vmem:[#allocation8 + $0x15c] ss:$24 sps:$4 sm:$0xff]   ;;  %v3877_v19 = vld [vmem:[#allocation8 + $0x158] ss:$24 sps:$4 sm:$0xff]  }
 0x157   : > { %1315 = vmatpush1.bf16.msra.mxu1 %v3859_v2  ;;  %v3971_v8 = vpop.eup %3970  ;;  %v548_v20 = vmul.f32 %v3969_v29, %v4751_v41  ;;  %v589_v30 = vmul.f32 %v4834_v42, %v545_v15  ;;  %3978 = vrsqrt.f32 %v511_v17  ;;  %v3871_v41 = vld [vmem:[#allocation8 + $0xf8] ss:$24 sps:$4 sm:$0xff]   ;;  %v514_v46 = vadd.f32 1e-05, %v498_v34  ;;  %v3885_v15 = vld [vmem:[#allocation8 + $0x1bc] ss:$24 sps:$4 sm:$0xff]  }
 0x158   : > { %1316 = vmatprep.subr.bf16.mxu1 %v3864_v38  ;;  %v4885_v24 = vpack.c.bf16 %v590_v62, %v588_v61  ;;  %v550_v2 = vmul.f32 %v3971_v8, %v4741_v36  ;;  %v547_v49 = vmul.f32 %v3969_v29, %v4748_v40  ;;  %v549_v52 = vmul.f32 %v3971_v8, %v4738_v35  ;;  %v3882_v29 = vld [vmem:[#allocation8 + $0x18c] ss:$24 sps:$4 sm:$0xff]   ;;  %v3880_v8 = vld [vmem:[#allocation8 + $0x188] ss:$24 sps:$4 sm:$0xff]  }
 0x159   : > { %v592_v36 = vmul.f32 %v4830_v26, %v548_v20  ;;  %v4897_v47 = vpack.c.bf16 %v589_v30, %v587_v28  ;;  %3980 = vrsqrt.f32 %v514_v46  ;;  %v3888_v20 = vld [vmem:[#allocation8 + $0x1ec] ss:$24 sps:$4 sm:$0xff]   ;;  %v3886_v34 = vld [vmem:[#allocation8 + $0x1e8] ss:$24 sps:$4 sm:$0xff]  }
 0x15a   : > { %1242 = vmatmul.mubr.bf16.gmra.mrb[4].mxu1 %v4871_v55  ;;  %1468 = vmatmul.mubr.bf16.gmra.mrb[4].mxu0 %v4871_v55  ;;  %v594_v37 = vmul.f32 %v4830_v26, %v550_v2  ;;  %v591_v40 = vmul.f32 %v4834_v42, %v547_v49  ;;  %v593_v35 = vmul.f32 %v4834_v42, %v549_v52  ;;  %v3892_v46 = vld [vmem:[#allocation8 + $0x248] ss:$24 sps:$4 sm:$0xff]   ;;  %v3897_v52 = vld [vmem:[#allocation8 + $0x27c] ss:$24 sps:$4 sm:$0xff]  }
 0x15b   : > { %1317 = vmatpush1.bf16.msra.mxu1 %v3862_v53  ;;  %1251 = vmatprep.mubr.bf16.mxu1 %v4867_v1  ;;  %v3973_v22 = vpop.eup %3972  ;;  %v513_v53 = vadd.f32 1e-05, %v497_v25 }
 0x15c   : > { %1318 = vmatprep.subr.bf16.mxu1 %v3867_v56  ;;  %1477 = vmatprep.mubr.bf16.mxu0 %v4867_v1  ;;  %v4901_v5 = vpack.c.bf16 %v594_v37, %v592_v36  ;;  %v552_v0 = vmul.f32 %v3973_v22, %v4757_v44  ;;  %v551_v61 = vmul.f32 %v3973_v22, %v4754_v43  ;;  %v3891_v22 = vld [vmem:[#allocation8 + $0x21c] ss:$24 sps:$4 sm:$0xff]   ;;  %v3889_v37 = vld [vmem:[#allocation8 + $0x218] ss:$24 sps:$4 sm:$0xff]  }
 0x15d   : > { %v3975_v38 = vpop.eup %3974  ;;  %3982 = vrsqrt.f32 %v513_v53 }
 0x15e   : > { %v554_v56 = vmul.f32 %v3975_v38, %v4767_v51  ;;  %v596_v44 = vmul.f32 %v4830_v26, %v552_v0  ;;  %v553_v62 = vmul.f32 %v3975_v38, %v4764_v50  ;;  %v595_v17 = vmul.f32 %v4834_v42, %v551_v61  ;;  %v3883_v50 = vld [vmem:[#allocation8 + $0x1b8] ss:$24 sps:$4 sm:$0xff]   ;;  %v3900_v0 = vld [vmem:[#allocation8 + $0x2ac] ss:$24 sps:$4 sm:$0xff]  }
 0x15f   : > { %1319 = vmatpush1.bf16.msra.mxu1 %v3865_v31  ;;  %v4913_v31 = vpack.c.bf16 %v593_v35, %v591_v40 }
 0x160   : > { %1320 = vmatprep.subr.bf16.mxu1 %v3870_v63  ;;  %v3977_v14 = vpop.eup %3976  ;;  %v598_v51 = vmul.f32 %v4830_v26, %v554_v56  ;;  %v597_v43 = vmul.f32 %v4834_v42, %v553_v62  ;;  %v3903_v56 = vld [vmem:[#allocation8 + $0x2dc] ss:$24 sps:$4 sm:$0xff]  }
 0x161   : > { %v3979_v59 = vpop.eup %3978  ;;  %v558_v10 = vmul.f32 %v3977_v14, %v4784_v6 }
 0x162   : > { %1252 = vmatmul.mubr.bf16.gmra.mrb[8].mxu1 %v4881_v9  ;;  %1478 = vmatmul.mubr.bf16.gmra.mrb[8].mxu0 %v4881_v9  ;;  %v4917_v63 = vpack.c.bf16 %v598_v51, %v596_v44  ;;  %v556_v13 = vmul.f32 %v3979_v59, %v4791_v16  ;;  %v617_v2 = vpack.c.bf16 %v597_v43, %v595_v17 }
 0x163   : > { %1321 = vmatpush1.bf16.msra.mxu1 %v3868_v23  ;;  %1261 = vmatprep.mubr.bf16.mxu1 %v4885_v24  ;;  %v3981_v21 = vpop.eup %3980  ;;  %v602_v16 = vmul.f32 %v4830_v26, %v558_v10  ;;  %v555_v12 = vmul.f32 %v3979_v59, %v4774_v60 }
 0x164   : > { %1322 = vmatprep.subr.bf16.mxu1 %v3873_v18  ;;  %1487 = vmatprep.mubr.bf16.mxu0 %v4885_v24  ;;  %v600_v23 = vmul.f32 %v4830_v26, %v556_v13  ;;  %v557_v18 = vmul.f32 %v3977_v14, %v4781_v4  ;;  %v562_v25 = vmul.f32 %v3981_v21, %v4801_v32 }
 0x166   : > { %v620_v28 = vpack.c.bf16 %v602_v16, %v600_v23  ;;  %v601_v36 = vmul.f32 %v4834_v42, %v557_v18  ;;  %v606_v4 = vmul.f32 %v4830_v26, %v562_v25 }
 0x167   : > { %1323 = vmatpush1.bf16.msra.mxu1 %v3871_v41  ;;  %v3983_v6 = vpop.eup %3982  ;;  %v599_v41 = vmul.f32 %v4834_v42, %v555_v12 }
 0x168   : > { %1324 = vmatprep.subr.bf16.mxu1 %v3876_v45  ;;  %v560_v30 = vmul.f32 %v3983_v6, %v4811_v39  ;;  %v3894_v39 = vld [vmem:[#allocation8 + $0x24c] ss:$24 sps:$4 sm:$0xff]   ;;  %v559_v32 = vmul.f32 %v3983_v6, %v4804_v33  ;;  %v561_v45 = vmul.f32 %v3981_v21, %v4798_v27  ;;  %v3898_v27 = vld [vmem:[#allocation8 + $0x2a8] ss:$24 sps:$4 sm:$0xff]  }
 0x169   : > { %v619_v38 = vpack.c.bf16 %v601_v36, %v599_v41 }
 0x16a   : > { %1262 = vmatmul.mubr.bf16.gmra.mrb[12].mxu1 %v4897_v47  ;;  %1488 = vmatmul.mubr.bf16.gmra.mrb[12].mxu0 %v4897_v47  ;;  %v604_v60 = vmul.f32 %v4830_v26, %v560_v30  ;;  %v603_v53 = vmul.f32 %v4834_v42, %v559_v32  ;;  %v3895_v26 = vld [vmem:[#allocation8 + $0x278] ss:$24 sps:$4 sm:$0xff]  }
 0x16b   : > { %1325 = vmatpush1.bf16.msra.mxu1 %v3874_v54  ;;  %1271 = vmatprep.mubr.bf16.mxu1 %v4901_v5  ;;  %v605_v54 = vmul.f32 %v4834_v42, %v561_v45 }
 0x16c   : > { %1326 = vmatprep.subr.bf16.mxu1 %v3879_v58  ;;  %1497 = vmatprep.mubr.bf16.mxu0 %v4901_v5  ;;  %v622_v49 = vpack.c.bf16 %v606_v4, %v604_v60  ;;  %v3901_v58 = vld [vmem:[#allocation8 + $0x2d8] ss:$24 sps:$4 sm:$0xff]  }
 0x16d   : > { %v621_v33 = vpack.c.bf16 %v605_v54, %v603_v53 }
 0x16f   : > { %1327 = vmatpush1.bf16.msra.mxu1 %v3877_v19 }
 0x170   : > { %1328 = vmatprep.subr.bf16.mxu1 %v3882_v29 }
 0x172   : > { %1272 = vmatmul.mubr.bf16.gmra.mrb[16].mxu1 %v4913_v31  ;;  %1498 = vmatmul.mubr.bf16.gmra.mrb[16].mxu0 %v4913_v31 }
 0x173   : > { %1329 = vmatpush1.bf16.msra.mxu1 %v3880_v8  ;;  %1281 = vmatprep.mubr.bf16.mxu1 %v4917_v63 }
 0x174   : > { %1330 = vmatprep.subr.bf16.mxu1 %v3885_v15  ;;  %1507 = vmatprep.mubr.bf16.mxu0 %v4917_v63 }
 0x177   : > { %1331 = vmatpush1.bf16.msra.mxu1 %v3883_v50 }
 0x178   : > { %1332 = vmatprep.subr.bf16.mxu1 %v3888_v20 }
 0x17a   : > { %1282 = vmatmul.mubr.bf16.gmra.mrb[20].mxu1 %v617_v2  ;;  %1508 = vmatmul.mubr.bf16.gmra.mrb[20].mxu0 %v617_v2 }
 0x17b   : > { %1333 = vmatpush1.bf16.msra.mxu1 %v3886_v34  ;;  %1291 = vmatprep.mubr.bf16.mxu1 %v620_v28 }
 0x17c   : > { %1334 = vmatprep.subr.bf16.mxu1 %v3891_v22  ;;  %1517 = vmatprep.mubr.bf16.mxu0 %v620_v28 }
 0x17f   : > { %1335 = vmatpush1.bf16.msra.mxu1 %v3889_v37 }
 0x180   : > { %1336 = vmatprep.subr.bf16.mxu1 %v3894_v39 }
 0x182   : > { %1292 = vmatmul.mubr.bf16.gmra.mrb[24].mxu1 %v619_v38  ;;  %1518 = vmatmul.mubr.bf16.gmra.mrb[24].mxu0 %v619_v38 }
 0x183   : > { %1337 = vmatpush1.bf16.msra.mxu1 %v3892_v46  ;;  %1301 = vmatprep.mubr.bf16.mxu1 %v622_v49 }
 0x184   : > { %1338 = vmatprep.subr.bf16.mxu1 %v3897_v52  ;;  %1527 = vmatprep.mubr.bf16.mxu0 %v622_v49 }
 0x187   : > { %1339 = vmatpush1.bf16.msra.mxu1 %v3895_v26 }
 0x188   : > { %1340 = vmatprep.subr.bf16.mxu1 %v3900_v0 }
 0x18a   : > { %1302 = vmatmul.mubr.bf16.gmra.mrb[28].mxu1 %v621_v33  ;;  %1528 = vmatmul.mubr.bf16.gmra.mrb[28].mxu0 %v621_v33 }
 0x18b   : > { %1341 = vmatpush1.bf16.msra.mxu1 %v3898_v27  ;;  %1344 = vmatprep.mubr.bf16.mxu1 %v4845_v7 }
 0x18c   : > { %1342 = vmatprep.subr.bf16.mxu1 %v3903_v56 }
 0x18f   : > { %1343 = vmatpush1.bf16.msra.mxu1 %v3901_v58 }
 0x192   : > { %1345 = vmatmul.mubr.bf16.vlgmr.msra.gmra.mrb[32].mxu1 %v4847_v3 }
 0x193   : > { %1354 = vmatprep.mubr.bf16.mxu1 %v4850_v11 }
 0x19a   : > { %1355 = vmatmul.mubr.bf16.gmra.mrb[36].mxu1 %v4871_v55 }
 0x19b   : > { %1364 = vmatprep.mubr.bf16.mxu1 %v4867_v1 }
 0x1a2   : > { %1365 = vmatmul.mubr.bf16.gmra.mrb[40].mxu1 %v4881_v9 }
 0x1a3   : > { %1374 = vmatprep.mubr.bf16.mxu1 %v4885_v24 }
 0x1aa   : > { %1375 = vmatmul.mubr.bf16.gmra.mrb[44].mxu1 %v4897_v47 }
 0x1ab   : > { %1384 = vmatprep.mubr.bf16.mxu1 %v4901_v5 }
 0x1b2   : > { %1385 = vmatmul.mubr.bf16.gmra.mrb[48].mxu1 %v4913_v31 }
 0x1b3   : > { %1394 = vmatprep.mubr.bf16.mxu1 %v4917_v63 }
 0x1ba   : > { %1395 = vmatmul.mubr.bf16.gmra.mrb[52].mxu1 %v617_v2 }
 0x1bb   : > { %1404 = vmatprep.mubr.bf16.mxu1 %v620_v28 }
 0x1c2   : > { %1405 = vmatmul.mubr.bf16.gmra.mrb[56].mxu1 %v619_v38 }
 0x1c3   : > { %1414 = vmatprep.mubr.bf16.mxu1 %v622_v49 }
 0x1ca   : > { %1415 = vmatmul.mubr.bf16.gmra.mrb[60].mxu1 %v621_v33 }
 0x225   : > { %v4952_v42 = vpop.f32.mrb[0].mxu1  ;;  %v1459_v7 = vpop.f32.mrb[0].mxu0 }
 0x226   : > { %v4954_v3 = vpop.f32.mrb[1].mxu1  ;;  %v1461_v11 = vpop.f32.mrb[1].mxu0 }
 0x227   : > { %6210 = vst [vmem:[#allocation17_spill] sm:$0xff] %v4954_v3  ;;  %v4956_v1 = vpop.f32.mrb[2].mxu1  ;;  %v1463_v55 = vpop.f32.mrb[2].mxu0 }
 0x228   : > { %v4958_v9 = vpack.c.bf16 %v1463_v55, %v1459_v7  ;;  %v1465_v24 = vpop.f32.mrb[3].mxu0  ;;  %1604 = vrot.lane.b32.xlu1 %v4956_v1, %s4373_s11  ;;  %v4962_v47 = vpop.f32.mrb[3].mxu1 }
 0x229   : > { %6212 = vst [vmem:[#allocation19_spill] sm:$0xff] %v4962_v47  ;;  %v4964_v5 = vpack.c.bf16 %v1465_v24, %v1461_v11 }
 0x22a   : > { %6211 = vst [vmem:[#allocation18_spill] sm:$0xff] %v4958_v9 }
 0x22b   : > { %6213 = vst [vmem:[#allocation20_spill] sm:$0xff] %v4964_v5 }
 0x22d   : > { %v4966_v40 = vpop.f32.mrb[4].mxu1  ;;  %v1469_v35 = vpop.f32.mrb[4].mxu0 }
 0x22e   : > { %v4968_v14 = vpop.f32.mrb[5].mxu1  ;;  %v1471_v19 = vpop.f32.mrb[5].mxu0 }
 0x22f   : > { %6214 = vst [vmem:[#allocation21_spill] sm:$0xff] %v4968_v14  ;;  %v4970_v44 = vpop.f32.mrb[6].mxu1  ;;  %v1473_v51 = vpop.f32.mrb[6].mxu0 }
 0x230   : > { %v4972_v59 = vpack.c.bf16 %v1473_v51, %v1469_v35  ;;  %v4974_v29 = vpop.f32.mrb[7].mxu1  ;;  %v1475_v31 = vpop.f32.mrb[7].mxu0 }
 0x231   : > { %6216 = vst [vmem:[#allocation23_spill] sm:$0xff] %v4974_v29  ;;  %v4976_v61 = vpack.c.bf16 %v1475_v31, %v1471_v19 }
 0x232   : > { %6215 = vst [vmem:[#allocation22_spill] sm:$0xff] %v4972_v59 }
 0x233   : > { %6217 = vst [vmem:[#allocation24_spill] sm:$0xff] %v4976_v61 }
 0x235   : > { %v4978_v62 = vpop.f32.mrb[8].mxu1  ;;  %v1479_v8 = vpop.f32.mrb[8].mxu0 }
 0x236   : > { %v4980_v63 = vpop.f32.mrb[9].mxu1  ;;  %v1481_v13 = vpop.f32.mrb[9].mxu0 }
 0x237   : > { %6218 = vst [vmem:[#allocation25_spill] sm:$0xff] %v4980_v63  ;;  %v4982_v10 = vpop.f32.mrb[10].mxu1  ;;  %v1483_v15 = vpop.f32.mrb[10].mxu0 }
 0x238   : > { %v4984_v17 = vpack.c.bf16 %v1483_v15, %v1479_v8  ;;  %v4986_v43 = vpop.f32.mrb[11].mxu1  ;;  %v1485_v21 = vpop.f32.mrb[11].mxu0  ;;  %v5038_v8 = vld [vmem:[#allocation5 + $0x70] sm:$0xff] }
 0x239   : > { %6220 = vst [vmem:[#allocation27_spill] sm:$0xff] %v4986_v43  ;;  %v4988_v50 = vpack.c.bf16 %v1485_v21, %v1481_v13  ;;  %6240 = vst [vmem:[#allocation47_spill] sm:$0xff] %v5038_v8 }
 0x23a   : > { %6219 = vst [vmem:[#allocation26_spill] sm:$0xff] %v4984_v17 }
 0x23b   : > { %6221 = vst [vmem:[#allocation28_spill] sm:$0xff] %v4988_v50 }
 0x23d   : > { %v4990_v23 = vpop.f32.mrb[12].mxu1  ;;  %v1489_v16 = vpop.f32.mrb[12].mxu0 }
 0x23e   : > { %v4992_v6 = vpop.f32.mrb[13].mxu1  ;;  %v1491_v20 = vpop.f32.mrb[13].mxu0 }
 0x23f   : > { %6222 = vst [vmem:[#allocation29_spill] sm:$0xff] %v4992_v6  ;;  %v4994_v2 = vpop.f32.mrb[14].mxu1  ;;  %v1493_v12 = vpop.f32.mrb[14].mxu0 }
 0x240   : > { %v4996_v18 = vpack.c.bf16 %v1493_v12, %v1489_v16  ;;  %v4998_v34 = vpop.f32.mrb[15].mxu1  ;;  %v1495_v28 = vpop.f32.mrb[15].mxu0 }
 0x241   : > { %6224 = vst [vmem:[#allocation31_spill] sm:$0xff] %v4998_v34  ;;  %v5000_v30 = vpack.c.bf16 %v1495_v28, %v1491_v20  ;;  %v5044_v20 = vld [vmem:[#allocation5 + $0x78] sm:$0xff] }
 0x242   : > { %6223 = vst [vmem:[#allocation30_spill] sm:$0xff] %v4996_v18  ;;  %6242 = vst [vmem:[#allocation49_spill] sm:$0xff] %v5044_v20 }
 0x243   : > { %6225 = vst [vmem:[#allocation32_spill] sm:$0xff] %v5000_v30 }
 0x245   : > { %v5002_v25 = vpop.f32.mrb[16].mxu1  ;;  %v1499_v22 = vpop.f32.mrb[16].mxu0 }
 0x246   : > { %v5004_v41 = vpop.f32.mrb[17].mxu1  ;;  %v1501_v36 = vpop.f32.mrb[17].mxu0 }
 0x247   : > { %6226 = vst [vmem:[#allocation33_spill] sm:$0xff] %v5004_v41  ;;  %v5006_v37 = vpop.f32.mrb[18].mxu1  ;;  %v1503_v60 = vpop.f32.mrb[18].mxu0 }
 0x248   : > { %v5008_v4 = vpack.c.bf16 %v1503_v60, %v1499_v22  ;;  %v5010_v39 = vpop.f32.mrb[19].mxu1  ;;  %v1505_v38 = vpop.f32.mrb[19].mxu0 }
 0x249   : > { %6228 = vst [vmem:[#allocation35_spill] sm:$0xff] %v5010_v39  ;;  %v5012_v32 = vpack.c.bf16 %v1505_v38, %v1501_v36 }
 0x24a   : > { %6227 = vst [vmem:[#allocation34_spill] sm:$0xff] %v5008_v4 }
 0x24b   : > { %6229 = vst [vmem:[#allocation36_spill] sm:$0xff] %v5012_v32 }
 0x24d   : > { %v5014_v45 = vpop.f32.mrb[20].mxu1  ;;  %v1509_v46 = vpop.f32.mrb[20].mxu0 }
 0x24e   : > { %v5016_v49 = vpop.f32.mrb[21].mxu1  ;;  %v1511_v52 = vpop.f32.mrb[21].mxu0 }
 0x24f   : > { %6230 = vst [vmem:[#allocation37_spill] sm:$0xff] %v5016_v49  ;;  %v5018_v53 = vpop.f32.mrb[22].mxu1  ;;  %v1513_v54 = vpop.f32.mrb[22].mxu0 }
 0x250   : > { %v5020_v26 = vpack.c.bf16 %v1513_v54, %v1509_v46  ;;  %v5022_v0 = vpop.f32.mrb[23].mxu1  ;;  %v1515_v33 = vpop.f32.mrb[23].mxu0 }
 0x251   : > { %6232 = vst [vmem:[#allocation39_spill] sm:$0xff] %v5022_v0  ;;  %v5024_v27 = vpack.c.bf16 %v1515_v33, %v1511_v52 }
 0x252   : > { %6231 = vst [vmem:[#allocation38_spill] sm:$0xff] %v5020_v26 }
 0x253   : > { %6233 = vst [vmem:[#allocation40_spill] sm:$0xff] %v5024_v27 }
 0x255   : > { %v5026_v56 = vpop.f32.mrb[24].mxu1  ;;  %v1519_v58 = vpop.f32.mrb[24].mxu0 }
 0x256   : > { %6234 = vst [vmem:[#allocation41_spill] sm:$0xff] %v5026_v56  ;;  %v5028_v7 = vpop.f32.mrb[25].mxu1  ;;  %v1521_v11 = vpop.f32.mrb[25].mxu0 }
 0x257   : > { %6235 = vst [vmem:[#allocation42_spill] sm:$0xff] %v5028_v7  ;;  %v5030_v55 = vpop.f32.mrb[26].mxu1  ;;  %v1523_v24 = vpop.f32.mrb[26].mxu0 }
 0x258   : > { %6236 = vst [vmem:[#allocation43_spill] sm:$0xff] %v5030_v55  ;;  %v5032_v35 = vpack.c.bf16 %v1523_v24, %v1519_v58  ;;  %v5034_v19 = vpop.f32.mrb[27].mxu1  ;;  %v1525_v51 = vpop.f32.mrb[27].mxu0 }
 0x259   : > { %6238 = vst [vmem:[#allocation45_spill] sm:$0xff] %v5034_v19  ;;  %v5036_v31 = vpack.c.bf16 %v1525_v51, %v1521_v11 }
 0x25a   : > { %6237 = vst [vmem:[#allocation44_spill] sm:$0xff] %v5032_v35 }
 0x25b   : > { %6239 = vst [vmem:[#allocation46_spill] sm:$0xff] %v5036_v31 }
 0x25d   : > { %v5040_v13 = vpop.f32.mrb[28].mxu1  ;;  %v1529_v15 = vpop.f32.mrb[28].mxu0 }
 0x25e   : > { %6241 = vst [vmem:[#allocation48_spill] sm:$0xff] %v5040_v13  ;;  %v5042_v21 = vpop.f32.mrb[29].mxu1  ;;  %v1531_v16 = vpop.f32.mrb[29].mxu0 }
 0x25f   : > { %v5048_v12 = vmul.f32 %v5038_v8, %v5042_v21  ;;  %v5050_v28 = vpop.f32.mrb[30].mxu1  ;;  %v1533_v22 = vpop.f32.mrb[30].mxu0 }
 0x260   : > { %6244 = vst [vmem:[#allocation51_spill] sm:$0xff] %v5050_v28  ;;  %v5052_v36 = vpack.c.bf16 %v1533_v22, %v1529_v15  ;;  %v5054_v60 = vpop.f32.mrb[31].mxu1  ;;  %v1535_v38 = vpop.f32.mrb[31].mxu0 }
 0x261   : > { %6243 = vst [vmem:[#allocation50_spill] sm:$0xff] %v5048_v12  ;;  %v5058_v46 = vmul.f32 %v5044_v20, %v5054_v60  ;;  %v5060_v52 = vpack.c.bf16 %v1535_v38, %v1531_v16 }
 0x262   : > { %6245 = vst [vmem:[#allocation52_spill] sm:$0xff] %v5052_v36 }
 0x263   : > { %6246 = vst [vmem:[#allocation53_spill] sm:$0xff] %v5058_v46  ;;  %6247 = vst [vmem:[#allocation54_spill] sm:$0xff] %v5060_v52 }
 0x265   : > { %v5062_v54 = vpop.f32.mrb[32].mxu1 }
 0x266   : > { %1778 = vrot.lane.b32.xlu0 %v5062_v54, %s4373_s11  ;;  %v5066_v33 = vpop.f32.mrb[33].mxu1 }
 0x267   : > { %v5068_v58 = vpop.f32.mrb[34].mxu1 }
 0x268   : > { %1780 = vrot.lane.b32.xlu1 %v5068_v58, %s4373_s11  ;;  %v5072_v11 = vpop.f32.mrb[35].mxu1 }
 0x26a   : > { %1602 = vrot.lane.b32.xlu0 %v4952_v42, %s4373_s11 }
 0x26c   : > { %1812 = vrot.lane.b32.xlu1 %v5072_v11, %s4373_s11 }
 0x26d   : > { %v5078_v24 = vpop.f32.mrb[36].mxu1 }
 0x26e   : > { %1810 = vrot.lane.b32.xlu0 %v5066_v33, %s4373_s11  ;;  %v5082_v51 = vpop.f32.mrb[37].mxu1 }
 0x26f   : > { %v5084_v15 = vpop.f32.mrb[38].mxu1 }
 0x270   : > { %1782 = vrot.lane.b32.xlu1 %v5078_v24, %s4373_s11  ;;  %v5088_v16 = vpop.f32.mrb[39].mxu1 }
 0x272   : > { %1814 = vrot.lane.b32.xlu0 %v5082_v51, %s4373_s11 }
 0x274   : > { %1784 = vrot.lane.b32.xlu1 %v5084_v15, %s4373_s11 }
 0x275   : > { %v5094_v22 = vpop.f32.mrb[40].mxu1 }
 0x276   : > { %1786 = vrot.lane.b32.xlu0 %v5094_v22, %s4373_s11  ;;  %v5098_v38 = vpop.f32.mrb[41].mxu1 }
 0x277   : > { %v5100_v48 = vpop.f32.mrb[42].mxu1 }
 0x278   : > { %1816 = vrot.lane.b32.xlu1 %v5088_v16, %s4373_s11  ;;  %v5104_v52 = vpop.f32.mrb[43].mxu1 }
 0x27a   : > { %1818 = vrot.lane.b32.xlu0 %v5098_v38, %s4373_s11 }
 0x27c   : > { %1788 = vrot.lane.b32.xlu1 %v5100_v48, %s4373_s11 }
 0x27d   : > { %v5110_v31 = vpop.f32.mrb[44].mxu1 }
 0x27e   : > { %1790 = vrot.lane.b32.xlu0 %v5110_v31, %s4373_s11  ;;  %v5114_v27 = vpop.f32.mrb[45].mxu1 }
 0x27f   : > { %v5116_v32 = vpop.f32.mrb[46].mxu1 }
 0x280   : > { %1820 = vrot.lane.b32.xlu1 %v5104_v52, %s4373_s11  ;;  %v5120_v30 = vpop.f32.mrb[47].mxu1 }
 0x282   : > { %1822 = vrot.lane.b32.xlu0 %v5114_v27, %s4373_s11 }
 0x284   : > { %1792 = vrot.lane.b32.xlu1 %v5116_v32, %s4373_s11 }
 0x285   : > { %v5126_v50 = vpop.f32.mrb[48].mxu1 }
 0x286   : > { %1794 = vrot.lane.b32.xlu0 %v5126_v50, %s4373_s11  ;;  %v5130_v61 = vpop.f32.mrb[49].mxu1 }
 0x287   : > { %v5132_v57 = vpop.f32.mrb[50].mxu1 }
 0x288   : > { %1824 = vrot.lane.b32.xlu1 %v5120_v30, %s4373_s11  ;;  %v5136_v46 = vpop.f32.mrb[51].mxu1 }
 0x28a   : > { %1606 = vrot.lane.b32.xlu0 %v4966_v40, %s4373_s11 }
 0x28c   : > { %1796 = vrot.lane.b32.xlu1 %v5132_v57, %s4373_s11 }
 0x28d   : > { %v5142_v12 = vpop.f32.mrb[52].mxu1 }
 0x28e   : > { %1798 = vrot.lane.b32.xlu0 %v5142_v12, %s4373_s11  ;;  %v5146_v5 = vpop.f32.mrb[53].mxu1 }
 0x28f   : > { %v5148_v36 = vpop.f32.mrb[54].mxu1 }
 0x290   : > { %1608 = vrot.lane.b32.xlu1 %v4970_v44, %s4373_s11  ;;  %v5152_v35 = vpop.f32.mrb[55].mxu1 }
 0x292   : > { %1826 = vrot.lane.b32.xlu0 %v5130_v61, %s4373_s11 }
 0x294   : > { %1800 = vrot.lane.b32.xlu1 %v5148_v36, %s4373_s11 }
 0x295   : > { %v5158_v26 = vpop.f32.mrb[56].mxu1 }
 0x296   : > { %1802 = vrot.lane.b32.xlu0 %v5158_v26, %s4373_s11  ;;  %v5162_v4 = vpop.f32.mrb[57].mxu1 }
 0x297   : > { %v5164_v18 = vpop.f32.mrb[58].mxu1 }
 0x298   : > { %1828 = vrot.lane.b32.xlu1 %v5136_v46, %s4373_s11  ;;  %v5168_v17 = vpop.f32.mrb[59].mxu1 }
 0x29a   : > { %1610 = vrot.lane.b32.xlu0 %v4978_v62, %s4373_s11 }
 0x29c   : > { %1804 = vrot.lane.b32.xlu1 %v5164_v18, %s4373_s11 }
 0x29d   : > { %v5174_v59 = vpop.f32.mrb[60].mxu1 }
 0x29e   : > { %1806 = vrot.lane.b32.xlu0 %v5174_v59, %s4373_s11  ;;  %v5178_v9 = vpop.f32.mrb[61].mxu1 }
 0x29f   : > { %6248 = vst [vmem:[#allocation55_spill] sm:$0xff] %v5178_v9  ;;  %v5180_v20 = vpop.f32.mrb[62].mxu1 }
 0x2a0   : > { %1612 = vrot.lane.b32.xlu1 %v4982_v10, %s4373_s11  ;;  %v5184_v8 = vpop.f32.mrb[63].mxu1 }
 0x2a1   : > { %6249 = vst [vmem:[#allocation56_spill] sm:$0xff] %v5184_v8 }
 0x2a2   : > { %1614 = vrot.lane.b32.xlu0 %v4990_v23, %s4373_s11 }
 0x2a4   : > { %1808 = vrot.lane.b32.xlu1 %v5180_v20, %s4373_s11 }
 0x2a6   : > { %1830 = vrot.lane.b32.xlu0 %v5146_v5, %s4373_s11 }
 0x2a8   : > { %1616 = vrot.lane.b32.xlu1 %v4994_v2, %s4373_s11 }
 0x2aa   : > { %1618 = vrot.lane.b32.xlu0 %v5002_v25, %s4373_s11 }
 0x2ac   : > { %1832 = vrot.lane.b32.xlu1 %v5152_v35, %s4373_s11 }
 0x2ae   : > { %1622 = vrot.lane.b32.xlu0 %v5014_v45, %s4373_s11 }
 0x2b0   : > { %1620 = vrot.lane.b32.xlu1 %v5006_v37, %s4373_s11 }
 0x2b2   : > { %1834 = vrot.lane.b32.xlu0 %v5162_v4, %s4373_s11 }
 0x2b4   : > { %1624 = vrot.lane.b32.xlu1 %v5018_v53, %s4373_s11 }
 0x2b6   : > { %1626 = vrot.lane.b32.xlu0 %v5026_v56, %s4373_s11 }
 0x2b8   : > { %1836 = vrot.lane.b32.xlu1 %v5168_v17, %s4373_s11 }
 0x2ba   : > { %1630 = vrot.lane.b32.xlu0 %v5040_v13, %s4373_s11 }
 0x2bc   : > { %1628 = vrot.lane.b32.xlu1 %v5030_v55, %s4373_s11 }
 0x2be   : > { %1838 = vrot.lane.b32.xlu0 %v5178_v9, %s4373_s11 }
 0x2c0   : > { %1632 = vrot.lane.b32.xlu1 %v5050_v28, %s4373_s11 }
 0x2c2   : > { %1634 = vrot.lane.b32.xlu0 %v4954_v3, %s4373_s11 }
 0x2c4   : > { %1840 = vrot.lane.b32.xlu1 %v5184_v8, %s4373_s11 }
 0x2c6   : > { %1638 = vrot.lane.b32.xlu0 %v4968_v14, %s4373_s11  ;;  %v1605_v14 = vpop.permute.xlu1 %1604 }
 0x2c8   : > { %1636 = vrot.lane.b32.xlu1 %v4962_v47, %s4373_s11  ;;  %v5242_v47 = vld [vmem:[#allocation7 + $0x8] sm:$0xff] }
 0x2c9   : > { %v1667_v8 = vmul.f32 %v1605_v14, %v5242_v47 }
 0x2ca   : > { %1642 = vrot.lane.b32.xlu0 %v4980_v63, %s4373_s11  ;;  %v5240_v63 = vld [vmem:[#allocation7] sm:$0xff] }
 0x2cc   : > { %1640 = vrot.lane.b32.xlu1 %v4974_v29, %s4373_s11 }
 0x2ce   : > { %1646 = vrot.lane.b32.xlu0 %v4992_v6, %s4373_s11  ;;  %v5246_v6 = vld [vmem:[#allocation5] sm:$0xff] }
 0x2cf   : > { %v1570_v9 = vmul.f32 %v5246_v6, %v4952_v42 }
 0x2d0   : > { %1644 = vrot.lane.b32.xlu1 %v4986_v43, %s4373_s11 }
 0x2d2   : > { %1650 = vrot.lane.b32.xlu0 %v5004_v41, %s4373_s11  ;;  %v5249_v41 = vld [vmem:[#allocation5 + $0x8] sm:$0xff] }
 0x2d4   : > { %1648 = vrot.lane.b32.xlu1 %v4998_v34, %s4373_s11  ;;  %v1747_v34 = vmul.f32 %v5249_v41, %v5068_v58 }
 0x2d6   : > { %1654 = vrot.lane.b32.xlu0 %v5016_v49, %s4373_s11  ;;  %v1746_v49 = vmul.f32 %v5246_v6, %v5062_v54 }
 0x2d8   : > { %v1779_v29 = vpop.permute.xlu0 %1778  ;;  %1652 = vrot.lane.b32.xlu1 %v5010_v39, %s4373_s11 }
 0x2d9   : > { %v1842_v43 = vmul.f32 %v1779_v29, %v5240_v63 }
 0x2da   : > { %v1781_v3 = vpop.permute.xlu1 %1780  ;;  %1658 = vrot.lane.b32.xlu0 %v5028_v7, %s4373_s11  ;;  %v1571_v7 = vmul.f32 %v5249_v41, %v4956_v1  ;;  %v1762_v1 = vmul.f32 %v5246_v6, %v5066_v33  ;;  %v5283_v33 = vld [vmem:[#allocation5 + $0x10] sm:$0xff] }
 0x2db   : > { %v1843_v39 = vmul.f32 %v1781_v3, %v5242_v47  ;;  %v1874_v28 = vadd.f32 %v1842_v43, %v1746_v49  ;;  %v1763_v43 = vmul.f32 %v5249_v41, %v5072_v11  ;;  %v5276_v49 = vld [vmem:[#allocation7 + $0x10] sm:$0xff] }
 0x2dc   : > { %v1603_v29 = vpop.permute.xlu0 %1602  ;;  %1656 = vrot.lane.b32.xlu1 %v5022_v0, %s4373_s11  ;;  %v1699_v14 = vadd.f32 %v1667_v8, %v1571_v7 }
 0x2dd   : > { %v1875_v13 = vadd.f32 %v1843_v39, %v1747_v34  ;;  %v1666_v54 = vmul.f32 %v1603_v29, %v5240_v63  ;;  %v1748_v29 = vmul.f32 %v5283_v33, %v5078_v24 }
 0x2de   : > { %v1813_v55 = vpop.permute.xlu1 %1812  ;;  %1662 = vrot.lane.b32.xlu0 %v5042_v21, %s4373_s11 }
 0x2df   : > { %v1698_v3 = vadd.f32 %v1666_v54, %v1570_v9  ;;  %v1859_v58 = vmul.f32 %v1813_v55, %v5242_v47  ;;  %v1906_v42 = vpack.c.bf16 %v1875_v13, %v1874_v28  ;;  %v5280_v13 = vld [vmem:[#allocation7 + $0x18] sm:$0xff] }
 0x2e0   : > { %v1811_v56 = vpop.permute.xlu0 %1810  ;;  %1660 = vrot.lane.b32.xlu1 %v5034_v19, %s4373_s11 }
 0x2e1   : > { %v1858_v34 = vmul.f32 %v1811_v56, %v5240_v63  ;;  %3536 = vmatprep.subr.bf16.mxu1 %v1906_v42  ;;  %v1730_v39 = vpack.c.bf16 %v1699_v14, %v1698_v3  ;;  %v1891_v7 = vadd.f32 %v1859_v58, %v1763_v43  ;;  %v5285_v56 = vld [vmem:[#allocation5 + $0x18] sm:$0xff] }
 0x2e2   : > { %3537 = vmatpush3.bf16.xpose.msra.mxu1 %v1906_v42  ;;  %v1783_v9 = vpop.permute.xlu1 %1782  ;;  %v1749_v54 = vmul.f32 %v5285_v56, %v5084_v15  ;;  %v1765_v24 = vmul.f32 %v5285_v56, %v5088_v16 }
 0x2e3   : > { %v1890_v55 = vadd.f32 %v1858_v34, %v1762_v1  ;;  %3552 = vmatprep.mubr.bf16.mxu1 %v1730_v39  ;;  %v1844_v21 = vmul.f32 %v1783_v9, %v5276_v49  ;;  %v5293_v1 = vld [vmem:[#allocation7 + $0x20] sm:$0xff]  ;;  %v1764_v34 = vmul.f32 %v5283_v33, %v5082_v51 }
 0x2e4   : > { %v1815_v8 = vpop.permute.xlu0 %1814  ;;  %1664 = vrot.lane.b32.xlu1 %v5054_v60, %s4373_s11  ;;  %s4290_s11 = sshll.u32 %s4374_s9, 4  ;;  %s4291_s11 = int_to_ptr.vmem [resolvable:$false] %s4290_s11 }
 0x2e5   : > { %v1914_v28 = vpack.c.bf16 %v1891_v7, %v1890_v55  ;;  %v1876_v3 = vadd.f32 %v1844_v21, %v1748_v29  ;;  %v1860_v58 = vmul.f32 %v1815_v8, %v5276_v49  ;;  %v5300_v7 = vld [vmem:[#allocation7 + $0x28] sm:$0xff]  ;;  %s4292_s14 = scalar_lea.vmem %s4291_s11, 8192  ;;  %p4293_p1 = scmp.lt.s32.totalorder %s6085_s15, %s4291_s11 }
 0x2e6   : > { %v1785_v11 = vpop.permute.xlu1 %1784  ;;  %p4294_p2 = scmp.lt.s32.totalorder %s4292_s14, %s4286_s30 }
 0x2e7   : > { %v1845_v14 = vmul.f32 %v1785_v11, %v5280_v13  ;;  %3568 = vmatprep.subr.bf16.mxu0 %v1914_v28  ;;  %v1892_v55 = vadd.f32 %v1860_v58, %v1764_v34  ;;  %v5305_v11 = vld [vmem:[#allocation5 + $0x28] sm:$0xff] }
 0x2e8   : > { %3569 = vmatpush3.bf16.xpose.msra.mxu0 %v1914_v28  ;;  %v1787_v60 = vpop.permute.xlu0 %1786  ;;  %v5303_v28 = vld [vmem:[#allocation5 + $0x20] sm:$0xff]  ;;  %v1751_v29 = vmul.f32 %v5305_v11, %v5100_v48  ;;  %p4295_p13 = por %p4294_p2, %p4293_p1 }
 0x2e9   : > { %v1877_v42 = vadd.f32 %v1845_v14, %v1749_v54  ;;  %v1846_v21 = vmul.f32 %v1787_v60, %v5293_v1  ;;  %v1750_v16 = vmul.f32 %v5303_v28, %v5094_v22  ;;  %v1767_v22 = vmul.f32 %v5305_v11, %v5104_v52 }
 0x2ea   : > { %v1817_v43 = vpop.permute.xlu1 %1816  ;;  %p4296_p9 = pnand %p4295_p13, %p4289_p12 }
 0x2eb   : > { %v1861_v15 = vmul.f32 %v1817_v43, %v5280_v13  ;;  %v1907_v39 = vpack.c.bf16 %v1877_v42, %v1876_v3  ;;  %v1878_v58 = vadd.f32 %v1846_v21, %v1750_v16  ;;  %v5313_v43 = vld [vmem:[#allocation7 + $0x30] sm:$0xff]  ;;  %v5325_v16 = vld [vmem:[#allocation5 + $0x38] sm:$0xff] }
 0x2ec   : > { %v1819_v9 = vpop.permute.xlu0 %1818 }
 0x2ed   : > { %v1893_v8 = vadd.f32 %v1861_v15, %v1765_v24  ;;  %3538 = vmatprep.subr.bf16.mxu1 %v1907_v39  ;;  %v1862_v60 = vmul.f32 %v1819_v9, %v5293_v1  ;;  %v1766_v24 = vmul.f32 %v5303_v28, %v5098_v38 }
 0x2ee   : > { %3539 = vmatpush3.bf16.xpose.msra.mxu1 %v1907_v39  ;;  %v1789_v51 = vpop.permute.xlu1 %1788 }
 0x2ef   : > { %v1847_v54 = vmul.f32 %v1789_v51, %v5300_v7  ;;  %v1915_v14 = vpack.c.bf16 %v1893_v8, %v1892_v55  ;;  %v5320_v55 = vld [vmem:[#allocation7 + $0x38] sm:$0xff]  ;;  %v1894_v21 = vadd.f32 %v1862_v60, %v1766_v24  ;;  %v5323_v51 = vld [vmem:[#allocation5 + $0x30] sm:$0xff] }
 0x2f0   : > { %v1791_v3 = vpop.permute.xlu0 %1790  ;;  %v1752_v52 = vmul.f32 %v5323_v51, %v5110_v31  ;;  %v1769_v31 = vmul.f32 %v5325_v16, %v5120_v30 }
 0x2f1   : > { %v1879_v42 = vadd.f32 %v1847_v54, %v1751_v29  ;;  %3570 = vmatprep.subr.bf16.mxu0 %v1915_v14  ;;  %v1848_v9 = vmul.f32 %v1791_v3, %v5313_v43  ;;  %v1753_v29 = vmul.f32 %v5325_v16, %v5116_v32 }
 0x2f2   : > { %3571 = vmatpush3.bf16.xpose.msra.mxu0 %v1915_v14  ;;  %v1821_v34 = vpop.permute.xlu1 %1820 }
 0x2f3   : > { %v1863_v48 = vmul.f32 %v1821_v34, %v5300_v7  ;;  %v1908_v15 = vpack.c.bf16 %v1879_v42, %v1878_v58  ;;  %v1880_v60 = vadd.f32 %v1848_v9, %v1752_v52  ;;  %v5333_v34 = vld [vmem:[#allocation7 + $0x40] sm:$0xff]  ;;  %v5345_v52 = vld [vmem:[#allocation5 + $0x48] sm:$0xff] }
 0x2f4   : > { %v1823_v39 = vpop.permute.xlu0 %1822 }
 0x2f5   : > { %v1895_v8 = vadd.f32 %v1863_v48, %v1767_v22  ;;  %3540 = vmatprep.subr.bf16.mxu1 %v1908_v15  ;;  %v1864_v3 = vmul.f32 %v1823_v39, %v5313_v43  ;;  %v1768_v22 = vmul.f32 %v5323_v51, %v5114_v27 }
 0x2f6   : > { %3541 = vmatpush3.bf16.xpose.msra.mxu1 %v1908_v15  ;;  %v1793_v38 = vpop.permute.xlu1 %1792 }
 0x2f7   : > { %v1849_v54 = vmul.f32 %v1793_v38, %v5320_v55  ;;  %v1916_v14 = vpack.c.bf16 %v1895_v8, %v1894_v21  ;;  %v5340_v21 = vld [vmem:[#allocation7 + $0x48] sm:$0xff]  ;;  %v1896_v9 = vadd.f32 %v1864_v3, %v1768_v22  ;;  %v5343_v38 = vld [vmem:[#allocation5 + $0x40] sm:$0xff] }
 0x2f8   : > { %v1795_v58 = vpop.permute.xlu0 %1794  ;;  %v1754_v30 = vmul.f32 %v5343_v38, %v5126_v50  ;;  %v1573_v50 = vmul.f32 %v5285_v56, %v4970_v44 }
 0x2f9   : > { %v1881_v42 = vadd.f32 %v1849_v54, %v1753_v29  ;;  %3572 = vmatprep.subr.bf16.mxu0 %v1916_v14  ;;  %v1850_v39 = vmul.f32 %v1795_v58, %v5333_v34  ;;  %v1755_v29 = vmul.f32 %v5345_v52, %v5132_v57 }
 0x2fa   : > { %3573 = vmatpush3.bf16.xpose.msra.mxu0 %v1916_v14  ;;  %v1825_v24 = vpop.permute.xlu1 %1824 }
 0x2fb   : > { %v1865_v32 = vmul.f32 %v1825_v24, %v5320_v55  ;;  %v1909_v48 = vpack.c.bf16 %v1881_v42, %v1880_v60  ;;  %v1882_v3 = vadd.f32 %v1850_v39, %v1754_v30  ;;  %v5353_v24 = vld [vmem:[#allocation7 + $0x50] sm:$0xff]  ;;  %v5369_v30 = vld [vmem:[#allocation5 + $0x58] sm:$0xff] }
 0x2fc   : > { %v1607_v15 = vpop.permute.xlu0 %1606 }
 0x2fd   : > { %v1897_v8 = vadd.f32 %v1865_v32, %v1769_v31  ;;  %3542 = vmatprep.subr.bf16.mxu1 %v1909_v48  ;;  %v1668_v58 = vmul.f32 %v1607_v15, %v5276_v49  ;;  %v1572_v31 = vmul.f32 %v5283_v33, %v4966_v40 }
 0x2fe   : > { %3543 = vmatpush3.bf16.xpose.msra.mxu1 %v1909_v48  ;;  %v1797_v27 = vpop.permute.xlu1 %1796 }
 0x2ff   : > { %v1851_v54 = vmul.f32 %v1797_v27, %v5340_v21  ;;  %v1917_v14 = vpack.c.bf16 %v1897_v8, %v1896_v9  ;;  %v5360_v9 = vld [vmem:[#allocation7 + $0x58] sm:$0xff]  ;;  %v5362_v39 = vadd.f32 %v1668_v58, %v1572_v31  ;;  %v5367_v27 = vld [vmem:[#allocation5 + $0x50] sm:$0xff] }
 0x300   : > { %v1799_v60 = vpop.permute.xlu0 %1798  ;;  %v1756_v44 = vmul.f32 %v5367_v27, %v5142_v12  ;;  %v1771_v12 = vmul.f32 %v5345_v52, %v5136_v46 }
 0x301   : > { %v1883_v42 = vadd.f32 %v1851_v54, %v1755_v29  ;;  %3574 = vmatprep.subr.bf16.mxu0 %v1917_v14  ;;  %v1852_v15 = vmul.f32 %v1799_v60, %v5353_v24  ;;  %v1757_v29 = vmul.f32 %v5369_v30, %v5148_v36  ;;  %v5386_v54 = vld [vmem:[#allocation7 + $0x68] sm:$0xff] }
 0x302   : > { %3575 = vmatpush3.bf16.xpose.msra.mxu0 %v1917_v14  ;;  %v1609_v22 = vpop.permute.xlu1 %1608 }
 0x303   : > { %v1669_v57 = vmul.f32 %v1609_v22, %v5280_v13  ;;  %v1910_v32 = vpack.c.bf16 %v1883_v42, %v1882_v3  ;;  %v1884_v3 = vadd.f32 %v1852_v15, %v1756_v44  ;;  %v5379_v22 = vld [vmem:[#allocation7 + $0x60] sm:$0xff] }
 0x304   : > { %v1827_v48 = vpop.permute.xlu0 %1826  ;;  %v5389_v44 = vld [vmem:[#allocation5 + $0x60] sm:$0xff] }
 0x305   : > { %v5365_v8 = vadd.f32 %v1669_v57, %v1573_v50  ;;  %3544 = vmatprep.subr.bf16.mxu1 %v1910_v32  ;;  %v1866_v58 = vmul.f32 %v1827_v48, %v5333_v34  ;;  %v1770_v50 = vmul.f32 %v5343_v38, %v5130_v61  ;;  %v1758_v46 = vmul.f32 %v5389_v44, %v5158_v26 }
 0x306   : > { %3545 = vmatpush3.bf16.xpose.msra.mxu1 %v1910_v32  ;;  %v1801_v40 = vpop.permute.xlu1 %1800  ;;  %v1575_v26 = vmul.f32 %v5305_v11, %v4982_v10 }
 0x307   : > { %v1853_v14 = vmul.f32 %v1801_v40, %v5360_v9  ;;  %v1898_v40 = vadd.f32 %v1866_v58, %v1770_v50 }
 0x308   : > { %v1803_v60 = vpop.permute.xlu0 %1802 }
 0x309   : > { %v1885_v42 = vadd.f32 %v1853_v14, %v1757_v29  ;;  %v1854_v15 = vmul.f32 %v1803_v60, %v5379_v22  ;;  %v5391_v29 = vld [vmem:[#allocation5 + $0x68] sm:$0xff] }
 0x30a   : > { %v1829_v31 = vpop.permute.xlu1 %1828  ;;  %v1759_v14 = vmul.f32 %v5391_v29, %v5164_v18 }
 0x30b   : > { %v1867_v36 = vmul.f32 %v1829_v31, %v5340_v21  ;;  %v1911_v57 = vpack.c.bf16 %v1885_v42, %v1884_v3  ;;  %v1886_v31 = vadd.f32 %v1854_v15, %v1758_v46 }
 0x30c   : > { %v1611_v32 = vpop.permute.xlu0 %1610 }
 0x30d   : > { %v1899_v48 = vadd.f32 %v1867_v36, %v1771_v12  ;;  %3546 = vmatprep.subr.bf16.mxu1 %v1911_v57  ;;  %v1670_v60 = vmul.f32 %v1611_v32, %v5293_v1  ;;  %v5399_v12 = vld [vmem:[#allocation7 + $0x70] sm:$0xff] }
 0x30e   : > { %3547 = vmatpush3.bf16.xpose.msra.mxu1 %v1911_v57  ;;  %v1805_v61 = vpop.permute.xlu1 %1804  ;;  %v1574_v57 = vmul.f32 %v5303_v28, %v4978_v62  ;;  %v6251_v62 = vld [vmem:[#allocation49_spill] sm:$0xff] }
 0x30f   : > { %v1855_v3 = vmul.f32 %v1805_v61, %v5386_v54  ;;  %v1918_v42 = vpack.c.bf16 %v1899_v48, %v1898_v40  ;;  %v5406_v48 = vld [vmem:[#allocation7 + $0x78] sm:$0xff]  ;;  %v1761_v19 = vmul.f32 %v6251_v62, %v5180_v20 }
 0x310   : > { %v1807_v58 = vpop.permute.xlu0 %1806  ;;  %v1702_v15 = vadd.f32 %v1670_v60, %v1574_v57 }
 0x311   : > { %v1887_v50 = vadd.f32 %v1855_v3, %v1759_v14  ;;  %3576 = vmatprep.subr.bf16.mxu0 %v1918_v42  ;;  %v1856_v32 = vmul.f32 %v1807_v58, %v5399_v12  ;;  %v6250_v3 = vld [vmem:[#allocation47_spill] sm:$0xff]  ;;  %v1576_v58 = vmul.f32 %v5323_v51, %v4990_v23  ;;  %v1773_v23 = vmul.f32 %v5369_v30, %v5152_v35 }
 0x312   : > { %3577 = vmatpush3.bf16.xpose.msra.mxu0 %v1918_v42  ;;  %v1613_v36 = vpop.permute.xlu1 %1612  ;;  %v1760_v42 = vmul.f32 %v6250_v3, %v5174_v59 }
 0x313   : > { %v1671_v18 = vmul.f32 %v1613_v36, %v5300_v7  ;;  %v1912_v61 = vpack.c.bf16 %v1887_v50, %v1886_v31 }
 0x314   : > { %v1615_v40 = vpop.permute.xlu0 %1614  ;;  %v1888_v50 = vadd.f32 %v1856_v32, %v1760_v42 }
 0x315   : > { %v1703_v46 = vadd.f32 %v1671_v18, %v1575_v26  ;;  %3548 = vmatprep.subr.bf16.mxu1 %v1912_v61  ;;  %v1672_v0 = vmul.f32 %v1615_v40, %v5313_v43  ;;  %v1577_v26 = vmul.f32 %v5325_v16, %v4994_v2  ;;  %v6252_v2 = vld [vmem:[#allocation18_spill] sm:$0xff] }
 0x316   : > { %3549 = vmatpush3.bf16.xpose.msra.mxu1 %v1912_v61  ;;  %v1809_v14 = vpop.permute.xlu1 %1808 }
 0x317   : > { %v1857_v10 = vmul.f32 %v1809_v14, %v5406_v48  ;;  %v1732_v36 = vpack.c.bf16 %v1703_v46, %v1702_v15  ;;  %v1704_v20 = vadd.f32 %v1672_v0, %v1576_v58 }
 0x318   : > { %v1831_v31 = vpop.permute.xlu0 %1830 }
 0x319   : > { %v1889_v60 = vadd.f32 %v1857_v10, %v1761_v19  ;;  %v1868_v14 = vmul.f32 %v1831_v31, %v5353_v24  ;;  %v1772_v19 = vmul.f32 %v5367_v27, %v5146_v5  ;;  %v1579_v5 = vmul.f32 %v5345_v52, %v5006_v37 }
 0x31a   : > { %v1617_v57 = vpop.permute.xlu1 %1616  ;;  %v1581_v37 = vmul.f32 %v5369_v30, %v5018_v53 }
 0x31b   : > { %v1673_v59 = vmul.f32 %v1617_v57, %v5320_v55  ;;  %v1913_v18 = vpack.c.bf16 %v1889_v60, %v1888_v50  ;;  %v1900_v10 = vadd.f32 %v1868_v14, %v1772_v19  ;;  %v1578_v60 = vmul.f32 %v5343_v38, %v5002_v25 }
 0x31c   : > { %v1619_v61 = vpop.permute.xlu0 %1618  ;;  %v1580_v25 = vmul.f32 %v5367_v27, %v5014_v45  ;;  %v1775_v45 = vmul.f32 %v5391_v29, %v5168_v17 }
 0x31d   : > { %v1705_v15 = vadd.f32 %v1673_v59, %v1577_v26  ;;  %3550 = vmatprep.subr.bf16.mxu1 %v1913_v18  ;;  %v1674_v0 = vmul.f32 %v1619_v61, %v5333_v34 }
 0x31e   : > { %v1833_v32 = vpop.permute.xlu1 %1832  ;;  %3551 = vmatpush3.bf16.xpose.msra.mxu1 %v1913_v18 }
 0x31f   : > { %v1869_v40 = vmul.f32 %v1833_v32, %v5360_v9  ;;  %3600 = vmatprep.subr.bf16.mxu1 %v6252_v2  ;;  %v1733_v46 = vpack.c.bf16 %v1705_v15, %v1704_v20  ;;  %v1706_v26 = vadd.f32 %v1674_v0, %v1578_v60  ;;  %v6253_v20 = vpack.c.bf16 %v5365_v8, %v5362_v39  ;;  %v6254_v32 = vld [vmem:[#allocation22_spill] sm:$0xff] }
 0x320   : > { %v1623_v42 = vpop.permute.xlu0 %1622 }
 0x321   : > { %v1901_v31 = vadd.f32 %v1869_v40, %v1773_v23  ;;  %v1676_v59 = vmul.f32 %v1623_v42, %v5353_v24  ;;  %v6255_v42 = vld [vmem:[#allocation26_spill] sm:$0xff] }
 0x322   : > { %v1621_v50 = vpop.permute.xlu1 %1620 }
 0x323   : > { %v1675_v57 = vmul.f32 %v1621_v50, %v5340_v21  ;;  %v1919_v35 = vpack.c.bf16 %v1901_v31, %v1900_v10  ;;  %v1708_v39 = vadd.f32 %v1676_v59, %v1580_v25  ;;  %v6259_v25 = vld [vmem:[#allocation48_spill] sm:$0xff] }
 0x324   : > { %v1835_v58 = vpop.permute.xlu0 %1834 }
 0x325   : > { %v1707_v18 = vadd.f32 %v1675_v57, %v1579_v5  ;;  %3553 = vmatmul.mubr.bf16.vlgmr.msra.gmra.mrb[64].mxu1 %v6253_v20  ;;  %3578 = vmatprep.subr.bf16.mxu0 %v1919_v35  ;;  %v1870_v8 = vmul.f32 %v1835_v58, %v5379_v22  ;;  %v6256_v5 = vld [vmem:[#allocation41_spill] sm:$0xff]  ;;  %v6257_v57 = vld [vmem:[#allocation43_spill] sm:$0xff] }
 0x326   : > { %3579 = vmatpush3.bf16.xpose.msra.mxu0 %v1919_v35  ;;  %v1625_v61 = vpop.permute.xlu1 %1624  ;;  %3556 = vmatprep.mubr.bf16.mxu1 %v1732_v36  ;;  %v1774_v36 = vmul.f32 %v5389_v44, %v5162_v4  ;;  %v1582_v4 = vmul.f32 %v5389_v44, %v6256_v5  ;;  %v1583_v17 = vmul.f32 %v5391_v29, %v6257_v57 }
 0x327   : > { %v1677_v14 = vmul.f32 %v1625_v61, %v5360_v9  ;;  %3601 = vmatpush3.bf16.msra.mxu1 %v6252_v2  ;;  %v1734_v15 = vpack.c.bf16 %v1707_v18, %v1706_v26  ;;  %v6258_v26 = vld [vmem:[#allocation30_spill] sm:$0xff] }
 0x328   : > { %3602 = vmatprep.subr.bf16.mxu1 %v6254_v32  ;;  %v1627_v19 = vpop.permute.xlu0 %1626  ;;  %v1902_v0 = vadd.f32 %v1870_v8, %v1774_v36 }
 0x329   : > { %v1709_v23 = vadd.f32 %v1677_v14, %v1581_v37  ;;  %v1678_v31 = vmul.f32 %v1627_v19, %v5379_v22  ;;  %v1584_v37 = vmul.f32 %v6250_v3, %v6259_v25  ;;  %v6260_v14 = vld [vmem:[#allocation51_spill] sm:$0xff] }
 0x32a   : > { %v1837_v40 = vpop.permute.xlu1 %1836 }
 0x32b   : > { %v1871_v53 = vmul.f32 %v1837_v40, %v5386_v54  ;;  %3603 = vmatpush3.bf16.msra.mxu1 %v6254_v32  ;;  %v1735_v2 = vpack.c.bf16 %v1709_v23, %v1708_v39  ;;  %v1710_v18 = vadd.f32 %v1678_v31, %v1582_v4  ;;  %v6261_v39 = vld [vmem:[#allocation34_spill] sm:$0xff] }
 0x32c   : > { %3604 = vmatprep.subr.bf16.mxu1 %v6255_v42  ;;  %v1631_v10 = vpop.permute.xlu0 %1630 }
 0x32d   : > { %v1903_v50 = vadd.f32 %v1871_v53, %v1775_v45  ;;  %3557 = vmatmul.mubr.bf16.gmra.mrb[68].mxu1 %v1733_v46  ;;  %v1680_v20 = vmul.f32 %v1631_v10, %v5399_v12  ;;  %v6262_v53 = vld [vmem:[#allocation55_spill] sm:$0xff]  ;;  %v6263_v10 = vld [vmem:[#allocation56_spill] sm:$0xff] }
 0x32e   : > { %v1629_v60 = vpop.permute.xlu1 %1628  ;;  %3560 = vmatprep.mubr.bf16.mxu1 %v1734_v15  ;;  %v1585_v15 = vmul.f32 %v6251_v62, %v6260_v14 }
 0x32f   : > { %v1679_v35 = vmul.f32 %v1629_v60, %v5386_v54  ;;  %3605 = vmatpush3.bf16.msra.mxu1 %v6255_v42  ;;  %v1920_v58 = vpack.c.bf16 %v1903_v50, %v1902_v0  ;;  %v1712_v23 = vadd.f32 %v1680_v20, %v1584_v37  ;;  %v1776_v42 = vmul.f32 %v6250_v3, %v6262_v53  ;;  %v6264_v60 = vld [vmem:[#allocation38_spill] sm:$0xff]  ;;  %v6266_v3 = vld [vmem:[#allocation19_spill] sm:$0xff]  ;;  %v6273_v53 = vld [vmem:[#allocation20_spill] sm:$0xff] }
 0x330   : > { %3606 = vmatprep.subr.bf16.mxu1 %v6258_v26  ;;  %v1839_v59 = vpop.permute.xlu0 %1838  ;;  %v1777_v0 = vmul.f32 %v6251_v62, %v6263_v10 }
 0x331   : > { %v1711_v46 = vadd.f32 %v1679_v35, %v1583_v17  ;;  %3580 = vmatprep.subr.bf16.mxu0 %v1920_v58  ;;  %v1872_v40 = vmul.f32 %v1839_v59, %v5399_v12  ;;  %v6265_v35 = vld [vmem:[#allocation17_spill] sm:$0xff] }
 0x332   : > { %3581 = vmatpush3.bf16.xpose.msra.mxu0 %v1920_v58  ;;  %v1633_v61 = vpop.permute.xlu1 %1632  ;;  %v1586_v58 = vmul.f32 %v5246_v6, %v6265_v35  ;;  %v6268_v6 = vld [vmem:[#allocation21_spill] sm:$0xff] }
 0x333   : > { %v1681_v32 = vmul.f32 %v1633_v61, %v5406_v48  ;;  %3607 = vmatpush3.bf16.msra.mxu1 %v6258_v26  ;;  %v1736_v19 = vpack.c.bf16 %v1711_v46, %v1710_v18  ;;  %v1904_v4 = vadd.f32 %v1872_v40, %v1776_v42  ;;  %v1587_v26 = vmul.f32 %v5249_v41, %v6266_v3  ;;  %v6267_v18 = vld [vmem:[#allocation44_spill] sm:$0xff]  ;;  %v6269_v41 = vld [vmem:[#allocation23_spill] sm:$0xff]  ;;  %v6271_v40 = vld [vmem:[#allocation25_spill] sm:$0xff] }
 0x334   : > { %3608 = vmatprep.subr.bf16.mxu1 %v6261_v39  ;;  %v1635_v8 = vpop.permute.xlu0 %1634  ;;  %v1588_v37 = vmul.f32 %v5283_v33, %v6268_v6  ;;  %v1589_v14 = vmul.f32 %v5285_v56, %v6269_v41  ;;  %v1590_v33 = vmul.f32 %v5303_v28, %v6271_v40  ;;  %v6277_v3 = vld [vmem:[#allocation35_spill] sm:$0xff] }
 0x335   : > { %v1713_v36 = vadd.f32 %v1681_v32, %v1585_v15  ;;  %3561 = vmatmul.mubr.bf16.gmra.mrb[72].mxu1 %v1735_v2  ;;  %v1682_v57 = vmul.f32 %v1635_v8, %v5240_v63  ;;  %v6270_v32 = vld [vmem:[#allocation52_spill] sm:$0xff] }
 0x336   : > { %3564 = vmatprep.mubr.bf16.mxu1 %v1736_v19  ;;  %v1841_v45 = vpop.permute.xlu1 %1840 }
 0x337   : > { %3609 = vmatpush3.bf16.msra.mxu1 %v6261_v39  ;;  %v1873_v31 = vmul.f32 %v1841_v45, %v5406_v48  ;;  %v1737_v50 = vpack.c.bf16 %v1713_v36, %v1712_v23  ;;  %v1714_v46 = vadd.f32 %v1682_v57, %v1586_v58  ;;  %v6272_v36 = vld [vmem:[#allocation27_spill] sm:$0xff] }
 0x338   : > { %3610 = vmatprep.subr.bf16.mxu1 %v6264_v60  ;;  %v1639_v5 = vpop.permute.xlu0 %1638  ;;  %v1591_v56 = vmul.f32 %v5305_v11, %v6272_v36 }
 0x339   : > { %v1905_v2 = vadd.f32 %v1873_v31, %v1777_v0  ;;  %v1684_v61 = vmul.f32 %v1639_v5, %v5276_v49 }
 0x33a   : > { %v1637_v17 = vpop.permute.xlu1 %1636 }
 0x33b   : > { %3611 = vmatpush3.bf16.msra.mxu1 %v6264_v60  ;;  %v1683_v62 = vmul.f32 %v1637_v17, %v5242_v47  ;;  %v1921_v59 = vpack.c.bf16 %v1905_v2, %v1904_v4  ;;  %v1716_v49 = vadd.f32 %v1684_v61, %v1588_v37  ;;  %v6275_v60 = vld [vmem:[#allocation31_spill] sm:$0xff] }
 0x33c   : > { %3612 = vmatprep.subr.bf16.mxu1 %v6267_v18  ;;  %v1643_v20 = vpop.permute.xlu0 %1642  ;;  %v1593_v11 = vmul.f32 %v5325_v16, %v6275_v60  ;;  %v6279_v61 = vld [vmem:[#allocation39_spill] sm:$0xff] }
 0x33d   : > { %v1715_v63 = vadd.f32 %v1683_v62, %v1587_v26  ;;  %3565 = vmatmul.mubr.bf16.gmra.mrb[76].mxu1 %v1737_v50  ;;  %3582 = vmatprep.subr.bf16.mxu0 %v1921_v59  ;;  %v1686_v39 = vmul.f32 %v1643_v20, %v5293_v1  ;;  %v6274_v50 = vld [vmem:[#allocation29_spill] sm:$0xff]  ;;  %v1595_v26 = vmul.f32 %v5345_v52, %v6277_v3 }
 0x33e   : > { %v1641_v25 = vpop.permute.xlu1 %1640  ;;  %3583 = vmatpush3.bf16.xpose.msra.mxu0 %v1921_v59  ;;  %v1592_v28 = vmul.f32 %v5323_v51, %v6274_v50 }
 0x33f   : > { %3613 = vmatpush3.bf16.msra.mxu1 %v6267_v18  ;;  %v1685_v47 = vmul.f32 %v1641_v25, %v5280_v13  ;;  %v1738_v15 = vpack.c.bf16 %v1715_v63, %v1714_v46  ;;  %v1718_v10 = vadd.f32 %v1686_v39, %v1590_v33  ;;  %v1597_v63 = vmul.f32 %v5369_v30, %v6279_v61 }
 0x340   : > { %3614 = vmatprep.subr.bf16.mxu1 %v6270_v32  ;;  %v1647_v19 = vpop.permute.xlu0 %1646 }
 0x341   : > { %v1717_v8 = vadd.f32 %v1685_v47, %v1589_v14  ;;  %3584 = vmatprep.mubr.bf16.mxu0 %v1738_v15  ;;  %v1688_v1 = vmul.f32 %v1647_v19, %v5313_v43  ;;  %v6276_v43 = vld [vmem:[#allocation33_spill] sm:$0xff]  ;;  %v6282_v15 = vld [vmem:[#allocation50_spill] sm:$0xff] }
 0x342   : > { %v1645_v23 = vpop.permute.xlu1 %1644  ;;  %v1594_v58 = vmul.f32 %v5343_v38, %v6276_v43 }
 0x343   : > { %v1739_v45 = vpack.c.bf16 %v1717_v8, %v1716_v49  ;;  %3615 = vmatpush3.bf16.msra.mxu1 %v6270_v32  ;;  %v1687_v13 = vmul.f32 %v1645_v23, %v5300_v7  ;;  %v1720_v7 = vadd.f32 %v1688_v1, %v1592_v28  ;;  %v6283_v23 = vld [vmem:[#allocation53_spill] sm:$0xff] }
 0x344   : > { %3632 = vmatprep.subr.bf16.mxu1 %v6273_v53  ;;  %v1651_v42 = vpop.permute.xlu0 %1650 }
 0x345   : > { %v1719_v0 = vadd.f32 %v1687_v13, %v1591_v56  ;;  %3585 = vmatmul.mubr.bf16.vlgmr.msra.gmra.mrb[32].mxu0 %v1739_v45  ;;  %v1690_v2 = vmul.f32 %v1651_v42, %v5333_v34  ;;  %v6278_v34 = vld [vmem:[#allocation37_spill] sm:$0xff]  ;;  %v5536_v56 = vld [vmem:[%s368_s10] ss:$0 sm:$0xff] }
 0x346   : > { %v1649_v31 = vpop.permute.xlu1 %1648  ;;  %v1596_v46 = vmul.f32 %v5367_v27, %v6278_v34  ;;  %v6281_v27 = vld [vmem:[#allocation45_spill] sm:$0xff] }
 0x347   : > { %v1689_v5 = vmul.f32 %v1649_v31, %v5320_v55  ;;  %v1740_v4 = vpack.c.bf16 %v1719_v0, %v1718_v10  ;;  %v1722_v59 = vadd.f32 %v1690_v2, %v1594_v58  ;;  %v1599_v30 = vmul.f32 %v5391_v29, %v6281_v27 }
 0x348   : > { %v1655_v57 = vpop.permute.xlu0 %1654 }
 0x349   : > { %v1721_v17 = vadd.f32 %v1689_v5, %v1593_v11  ;;  %3588 = vmatprep.mubr.bf16.mxu0 %v1740_v4  ;;  %v1692_v55 = vmul.f32 %v1655_v57, %v5353_v24  ;;  %v6280_v24 = vld [vmem:[#allocation42_spill] sm:$0xff] }
 0x34a   : > { %v1653_v35 = vpop.permute.xlu1 %1652  ;;  %v1598_v14 = vmul.f32 %v5389_v44, %v6280_v24 }
 0x34b   : > { %v1691_v51 = vmul.f32 %v1653_v35, %v5340_v21  ;;  %v1741_v62 = vpack.c.bf16 %v1721_v17, %v1720_v7  ;;  %v1724_v6 = vadd.f32 %v1692_v55, %v1596_v46 }
 0x34c   : > { %v1659_v16 = vpop.permute.xlu0 %1658 }
 0x34d   : > { %v1723_v18 = vadd.f32 %v1691_v51, %v1595_v26  ;;  %3589 = vmatmul.mubr.bf16.gmra.mrb[36].mxu0 %v1741_v62  ;;  %v1694_v21 = vmul.f32 %v1659_v16, %v5379_v22 }
 0x34e   : > { %v1657_v20 = vpop.permute.xlu1 %1656 }
 0x34f   : > { %v1693_v38 = vmul.f32 %v1657_v20, %v5360_v9  ;;  %v1742_v25 = vpack.c.bf16 %v1723_v18, %v1722_v59  ;;  %v1726_v49 = vadd.f32 %v1694_v21, %v1598_v14 }
 0x350   : > { %v1663_v52 = vpop.permute.xlu0 %1662 }
 0x351   : > { %v1725_v37 = vadd.f32 %v1693_v38, %v1597_v63  ;;  %v1696_v41 = vmul.f32 %v1663_v52, %v5399_v12  ;;  %3592 = vmatprep.mubr.bf16.mxu0 %v1742_v25 }
 0x352   : > { %v1661_v47 = vpop.permute.xlu1 %1660 }
 0x353   : > { %v1728_v9 = vadd.f32 %v1696_v41, %v6282_v15  ;;  %v1695_v32 = vmul.f32 %v1661_v47, %v5386_v54  ;;  %v1743_v19 = vpack.c.bf16 %v1725_v37, %v1724_v6  ;;  %v6284_v54 = vlaneseq }
 0x355   : > { %v1727_v22 = vadd.f32 %v1695_v32, %v1599_v30  ;;  %3593 = vmatmul.mubr.bf16.gmra.mrb[40].mxu0 %v1743_v19  ;;  %v5534_v29 = vand.u32 127, %v6284_v54 }
 0x356   : > { %v1665_v39 = vpop.permute.xlu1 %1664 }
 0x357   : > { %v1697_v12 = vmul.f32 %v1665_v39, %v5406_v48  ;;  %v1744_v8 = vpack.c.bf16 %v1727_v22, %v1726_v49  ;;  %v6285_v48 = vld [vmem:[#allocation16_spill] sm:$0xff] }
 0x358   : > { %v5539_v45 = vadd.s32 8, %v6285_v48  ;;  %vm2206_vm0 = vcmp.le.s32.totalorder %v5534_v29, %v6285_v48  ;;  %v5544_v0 = vadd.s32 16, %v6285_v48  ;;  %v5560_v4 = vadd.s32 24, %v6285_v48 }
 0x359   : > { %v1729_v44 = vadd.f32 %v1697_v12, %v6283_v23  ;;  %3596 = vmatprep.mubr.bf16.mxu0 %v1744_v8  ;;  %v5569_v17 = vadd.s32 40, %v6285_v48  ;;  %v5581_v51 = vadd.s32 32, %v6285_v48  ;;  %v5586_v59 = vadd.s32 56, %v6285_v48 }
 0x35a   : > { %vm2207_vm1 = vcmp.le.s32.totalorder %v5534_v29, %v5539_v45  ;;  %vm2208_vm2 = vcmp.le.s32.totalorder %v5534_v29, %v5544_v0  ;;  %vm2209_vm3 = vcmp.le.s32.totalorder %v5534_v29, %v5560_v4  ;;  %v5599_v46 = vadd.s32 48, %v6285_v48 }
 0x35b   : > { %v1745_v40 = vpack.c.bf16 %v1729_v44, %v1728_v9  ;;  %vm2211_vm4 = vcmp.le.s32.totalorder %v5534_v29, %v5569_v17  ;;  %vm2210_vm5 = vcmp.le.s32.totalorder %v5534_v29, %v5581_v51  ;;  %vm2213_vm6 = vcmp.le.s32.totalorder %v5534_v29, %v5586_v59 }
 0x35c   : > { %v5611_v52 = vadd.s32 72, %v6285_v48  ;;  %vm2212_vm7 = vcmp.le.s32.totalorder %v5534_v29, %v5599_v46  ;;  %v5623_v14 = vadd.s32 64, %v6285_v48  ;;  %v5634_v15 = vadd.s32 88, %v6285_v48 }
 0x35d   : > { %3597 = vmatmul.mubr.bf16.gmra.mrb[44].mxu0 %v1745_v40  ;;  %v5647_v22 = vadd.s32 80, %v6285_v48  ;;  %v5659_v44 = vadd.s32 104, %v6285_v48 }
 0x35e   : > { %vm2215_vm8 = vcmp.le.s32.totalorder %v5534_v29, %v5611_v52  ;;  %vm2214_vm9 = vcmp.le.s32.totalorder %v5534_v29, %v5623_v14  ;;  %vm2217_vm10 = vcmp.le.s32.totalorder %v5534_v29, %v5634_v15 }
 0x35f   : > { %vm2216_vm11 = vcmp.le.s32.totalorder %v5534_v29, %v5647_v22  ;;  %vm2219_vm12 = vcmp.le.s32.totalorder %v5534_v29, %v5659_v44 }
 0x3f8   : > { %v3554_v33 = vpop.f32.mrb[64].mxu1 }
 0x3f9   : > { %v1956_v36 = vpop.f32.mrb[65].mxu1  ;;  %v2118_v13 = vmul.f32 0.088388346, %v3554_v33 }
 0x3fa   : > { %v2116_v42 = vmul.f32 0.088388346, %v1956_v36  ;;  %v3555_v10 = vpop.f32.mrb[66].mxu1 }
 0x3fb   : > { %v1959_v1 = vpop.f32.mrb[67].mxu1  ;;  %v2119_v28 = vmul.f32 0.088388346, %v3555_v10  ;;  %v2157_v5 = vadd.f32 %v5536_v56, %v2118_v13 }
 0x3fc   : > { %v2117_v31 = vmul.f32 0.088388346, %v1959_v1  ;;  %v2155_v50 = vadd.f32 %v5536_v56, %v2116_v42  ;;  %v5671_v42 = vadd.s32 96, %v6285_v48 }
 0x3fd   : > { %v5574_v58 = vsel %vm2208_vm2, %v2157_v5, -1e+30  ;;  %v2158_v3 = vadd.f32 %v5536_v56, %v2119_v28 }
 0x3fe   : > { %v5552_v60 = vsel %vm2206_vm0, %v2155_v50, -1e+30  ;;  %v2156_v11 = vadd.f32 %v5536_v56, %v2117_v31  ;;  %v5682_v50 = vadd.s32 120, %v6285_v48  ;;  %vm2218_vm13 = vcmp.le.s32.totalorder %v5534_v29, %v5671_v42 }
 0x3ff   : > { %2286 = vmax.xlane.f32.xlu0 %v5552_v60  ;;  %v5591_v18 = vsel %vm2209_vm3, %v2158_v3, -1e+30 }
 0x400   : > { %v3558_v57 = vpop.f32.mrb[68].mxu1  ;;  %v5565_v7 = vsel %vm2207_vm1, %v2156_v11, -1e+30  ;;  %vm2221_vm14 = vcmp.le.s32.totalorder %v5534_v29, %v5682_v50 }
 0x401   : > { %2288 = vmax.xlane.f32.xlu1 %v5565_v7  ;;  %v1972_v2 = vpop.f32.mrb[69].mxu1  ;;  %v2122_v55 = vmul.f32 0.088388346, %v3558_v57 }
 0x402   : > { %v2120_v35 = vmul.f32 0.088388346, %v1972_v2  ;;  %v3559_v43 = vpop.f32.mrb[70].mxu1  ;;  %v5695_v2 = vadd.s32 112, %v6285_v48 }
 0x403   : > { %2290 = vmax.xlane.f32.xlu0 %v5574_v58  ;;  %v1975_v26 = vpop.f32.mrb[71].mxu1  ;;  %v2123_v62 = vmul.f32 0.088388346, %v3559_v43  ;;  %v2161_v41 = vadd.f32 %v5536_v56, %v2122_v55 }
 0x404   : > { %v2121_v16 = vmul.f32 0.088388346, %v1975_v26  ;;  %v2159_v34 = vadd.f32 %v5536_v56, %v2120_v35  ;;  %vm2220_vm15 = vcmp.le.s32.totalorder %v5534_v29, %v5695_v2 }
 0x405   : > { %v2162_v38 = vadd.f32 %v5536_v56, %v2123_v62  ;;  %v5639_v32 = vsel %vm2212_vm7, %v2161_v41, -1e+30 }
 0x406   : > { %v2160_v20 = vadd.f32 %v5536_v56, %v2121_v16  ;;  %v5616_v37 = vsel %vm2210_vm5, %v2159_v34, -1e+30 }
 0x407   : > { %2292 = vmax.xlane.f32.xlu0 %v5591_v18  ;;  %v5628_v30 = vsel %vm2213_vm6, %v2162_v38, -1e+30 }
 0x408   : > { %v3562_v61 = vpop.f32.mrb[72].mxu1  ;;  %v5604_v63 = vsel %vm2211_vm4, %v2160_v20, -1e+30 }
 0x409   : > { %2296 = vmax.xlane.f32.xlu1 %v5604_v63  ;;  %v1988_v25 = vpop.f32.mrb[73].mxu1  ;;  %v2126_v9 = vmul.f32 0.088388346, %v3562_v61 }
 0x40a   : > { %v2124_v6 = vmul.f32 0.088388346, %v1988_v25  ;;  %v3563_v21 = vpop.f32.mrb[74].mxu1 }
 0x40b   : > { %2294 = vmax.xlane.f32.xlu0 %v5616_v37  ;;  %v1991_v24 = vpop.f32.mrb[75].mxu1  ;;  %v2127_v47 = vmul.f32 0.088388346, %v3563_v21  ;;  %v2165_v36 = vadd.f32 %v5536_v56, %v2126_v9 }
 0x40c   : > { %v2125_v27 = vmul.f32 0.088388346, %v1991_v24  ;;  %v2163_v49 = vadd.f32 %v5536_v56, %v2124_v6 }
 0x40d   : > { %2300 = vmax.xlane.f32.xlu1 %v5628_v30  ;;  %v2166_v8 = vadd.f32 %v5536_v56, %v2127_v47  ;;  %v5687_v11 = vsel %vm2216_vm11, %v2165_v36, -1e+30 }
 0x40e   : > { %v2164_v19 = vadd.f32 %v5536_v56, %v2125_v27  ;;  %v5664_v33 = vsel %vm2214_vm9, %v2163_v49, -1e+30 }
 0x40f   : > { %2298 = vmax.xlane.f32.xlu0 %v5639_v32  ;;  %v5676_v31 = vsel %vm2217_vm10, %v2166_v8, -1e+30 }
 0x410   : > { %v3566_v39 = vpop.f32.mrb[76].mxu1  ;;  %v5652_v12 = vsel %vm2215_vm8, %v2164_v19, -1e+30 }
 0x411   : > { %2304 = vmax.xlane.f32.xlu1 %v5652_v12  ;;  %v2004_v23 = vpop.f32.mrb[77].mxu1  ;;  %v2130_v28 = vmul.f32 0.088388346, %v3566_v39 }
 0x412   : > { %v2128_v40 = vmul.f32 0.088388346, %v2004_v23  ;;  %v3567_v54 = vpop.f32.mrb[78].mxu1 }
 0x413   : > { %2302 = vmax.xlane.f32.xlu0 %v5664_v33  ;;  %v2007_v13 = vpop.f32.mrb[79].mxu1  ;;  %v2131_v10 = vmul.f32 0.088388346, %v3567_v54  ;;  %v2169_v20 = vadd.f32 %v5536_v56, %v2130_v28 }
 0x414   : > { %v2129_v1 = vmul.f32 0.088388346, %v2007_v13  ;;  %v2167_v57 = vadd.f32 %v5536_v56, %v2128_v40 }
 0x415   : > { %2308 = vmax.xlane.f32.xlu1 %v5676_v31  ;;  %v2170_v3 = vadd.f32 %v5536_v56, %v2131_v10  ;;  %v5724_v21 = vsel %vm2220_vm15, %v2169_v20, -1e+30 }
 0x416   : > { %v2168_v5 = vadd.f32 %v5536_v56, %v2129_v1  ;;  %v5709_v55 = vsel %vm2218_vm13, %v2167_v57, -1e+30 }
 0x417   : > { %2306 = vmax.xlane.f32.xlu0 %v5687_v11  ;;  %v5718_v25 = vsel %vm2221_vm14, %v2170_v3, -1e+30 }
 0x418   : > { %v3586_v35 = vpop.f32.mrb[32].mxu0  ;;  %v5700_v43 = vsel %vm2219_vm12, %v2168_v5, -1e+30 }
 0x419   : > { %2312 = vmax.xlane.f32.xlu1 %v5700_v43  ;;  %v2053_v26 = vpop.f32.mrb[33].mxu0  ;;  %v2134_v6 = vmul.f32 0.088388346, %v3586_v35 }
 0x41a   : > { %v2132_v62 = vmul.f32 0.088388346, %v2053_v26  ;;  %v3587_v16 = vpop.f32.mrb[34].mxu0 }
 0x41b   : > { %2310 = vmax.xlane.f32.xlu0 %v5709_v55  ;;  %v2056_v34 = vpop.f32.mrb[35].mxu0  ;;  %v2135_v61 = vmul.f32 0.088388346, %v3587_v16  ;;  %v2173_v49 = vadd.f32 %v5536_v56, %v2134_v6 }
 0x41c   : > { %v2133_v38 = vmul.f32 0.088388346, %v2056_v34  ;;  %v2171_v24 = vadd.f32 %v5536_v56, %v2132_v62 }
 0x41d   : > { %2316 = vmax.xlane.f32.xlu1 %v5718_v25  ;;  %v2174_v47 = vadd.f32 %v5536_v56, %v2135_v61  ;;  %v5754_v48 = vsel %vm2208_vm2, %v2173_v49, -1e+30 }
 0x41e   : > { %v2172_v41 = vadd.f32 %v5536_v56, %v2133_v38  ;;  %v5740_v23 = vsel %vm2206_vm0, %v2171_v24, -1e+30 }
 0x41f   : > { %2314 = vmax.xlane.f32.xlu0 %v5724_v21  ;;  %v5746_v45 = vsel %vm2209_vm3, %v2174_v47, -1e+30 }
 0x420   : > { %v3590_v27 = vpop.f32.mrb[36].mxu0  ;;  %v5733_v9 = vsel %vm2207_vm1, %v2172_v41, -1e+30 }
 0x421   : > { %2320 = vmax.xlane.f32.xlu1 %v5733_v9  ;;  %v2069_v19 = vpop.f32.mrb[37].mxu0  ;;  %v2138_v13 = vmul.f32 0.088388346, %v3590_v27 }
 0x422   : > { %v2136_v39 = vmul.f32 0.088388346, %v2069_v19  ;;  %v3591_v8 = vpop.f32.mrb[38].mxu0 }
 0x423   : > { %2318 = vmax.xlane.f32.xlu0 %v5740_v23  ;;  %v2072_v40 = vpop.f32.mrb[39].mxu0  ;;  %v2139_v54 = vmul.f32 0.088388346, %v3591_v8  ;;  %v2177_v35 = vadd.f32 %v5536_v56, %v2138_v13 }
 0x424   : > { %v2137_v36 = vmul.f32 0.088388346, %v2072_v40  ;;  %v2175_v10 = vadd.f32 %v5536_v56, %v2136_v39 }
 0x425   : > { %2324 = vmax.xlane.f32.xlu1 %v5746_v45  ;;  %v2178_v28 = vadd.f32 %v5536_v56, %v2139_v54  ;;  %v5782_v51 = vsel %vm2212_vm7, %v2177_v35, -1e+30 }
 0x426   : > { %v2176_v1 = vadd.f32 %v5536_v56, %v2137_v36  ;;  %v5768_v0 = vsel %vm2210_vm5, %v2175_v10, -1e+30 }
 0x427   : > { %2322 = vmax.xlane.f32.xlu0 %v5754_v48  ;;  %v5774_v17 = vsel %vm2213_vm6, %v2178_v28, -1e+30 }
 0x428   : > { %v3594_v5 = vpop.f32.mrb[40].mxu0  ;;  %v5761_v4 = vsel %vm2211_vm4, %v2176_v1, -1e+30 }
 0x429   : > { %2328 = vmax.xlane.f32.xlu1 %v5761_v4  ;;  %v2085_v57 = vpop.f32.mrb[41].mxu0  ;;  %v2142_v34 = vmul.f32 0.088388346, %v3594_v5 }
 0x42a   : > { %v2140_v3 = vmul.f32 0.088388346, %v2085_v57  ;;  %v3595_v26 = vpop.f32.mrb[42].mxu0 }
 0x42b   : > { %2326 = vmax.xlane.f32.xlu0 %v5768_v0  ;;  %v2088_v62 = vpop.f32.mrb[43].mxu0  ;;  %v2143_v16 = vmul.f32 0.088388346, %v3595_v26  ;;  %v2181_v27 = vadd.f32 %v5536_v56, %v2142_v34 }
 0x42c   : > { %v2141_v20 = vmul.f32 0.088388346, %v2088_v62  ;;  %v2179_v61 = vadd.f32 %v5536_v56, %v2140_v3 }
 0x42d   : > { %2332 = vmax.xlane.f32.xlu1 %v5774_v17  ;;  %v2182_v6 = vadd.f32 %v5536_v56, %v2143_v16  ;;  %v5811_v13 = vsel %vm2216_vm11, %v2181_v27, -1e+30 }
 0x42e   : > { %v2180_v38 = vadd.f32 %v5536_v56, %v2141_v20  ;;  %v5796_v49 = vsel %vm2214_vm9, %v2179_v61, -1e+30 }
 0x42f   : > { %2330 = vmax.xlane.f32.xlu0 %v5782_v51  ;;  %v5803_v54 = vsel %vm2217_vm10, %v2182_v6, -1e+30 }
 0x430   : > { %v3598_v41 = vpop.f32.mrb[44].mxu0  ;;  %v5789_v59 = vsel %vm2215_vm8, %v2180_v38, -1e+30 }
 0x431   : > { %v2146_v24 = vmul.f32 0.088388346, %v3598_v41  ;;  %2336 = vmax.xlane.f32.xlu1 %v5789_v59  ;;  %v2101_v47 = vpop.f32.mrb[45].mxu0 }
 0x432   : > { %v2144_v19 = vmul.f32 0.088388346, %v2101_v47  ;;  %v3599_v46 = vpop.f32.mrb[46].mxu0 }
 0x433   : > { %v2185_v39 = vadd.f32 %v5536_v56, %v2146_v24  ;;  %v2147_v8 = vmul.f32 0.088388346, %v3599_v46  ;;  %2334 = vmax.xlane.f32.xlu0 %v5796_v49  ;;  %v2104_v52 = vpop.f32.mrb[47].mxu0 }
 0x434   : > { %v2145_v40 = vmul.f32 0.088388346, %v2104_v52  ;;  %v2183_v14 = vadd.f32 %v5536_v56, %v2144_v19 }
 0x435   : > { %v2186_v36 = vadd.f32 %v5536_v56, %v2147_v8  ;;  %2340 = vmax.xlane.f32.xlu1 %v5803_v54 }
 0x436   : > { %v2184_v15 = vadd.f32 %v5536_v56, %v2145_v40  ;;  %v5824_v1 = vsel %vm2218_vm13, %v2183_v14, -1e+30  ;;  %v5836_v56 = vsel %vm2220_vm15, %v2185_v39, -1e+30 }
 0x437   : > { %2338 = vmax.xlane.f32.xlu0 %v5811_v13  ;;  %v5817_v10 = vsel %vm2221_vm14, %v2186_v36, -1e+30 }
 0x438   : > { %v5830_v22 = vsel %vm2219_vm12, %v2184_v15, -1e+30 }
 0x439   : > { %2348 = vmax.xlane.f32.xlu1 %v5817_v10 }
 0x43b   : > { %2342 = vmax.xlane.f32.xlu0 %v5824_v1 }
 0x43d   : > { %2344 = vmax.xlane.f32.xlu1 %v5830_v22 }
 0x43f   : > { %2346 = vmax.xlane.f32.xlu0 %v5836_v56 }
 0x48c   : > { %v2287_v50 = vpop.xlane.xlu0 %2286 }
 0x48d   : > { %v2350_v42 = vsub.f32 %v5552_v60, %v2287_v50 }
 0x48e   : > { %v2289_v28 = vpop.xlane.xlu1 %2288 }
 0x48f   : > { %v2382_v5 = vmul.f32 1.442695, %v2350_v42  ;;  %v2351_v57 = vsub.f32 %v5565_v7, %v2289_v28 }
 0x490   : > { %v2291_v35 = vpop.xlane.xlu0 %2290 }
 0x491   : > { %3984 = vpow2.f32 %v2382_v5  ;;  %v2384_v44 = vmul.f32 1.442695, %v2351_v57  ;;  %v2352_v3 = vsub.f32 %v5574_v58, %v2291_v35 }
 0x493   : > { %3986 = vpow2.f32 %v2384_v44  ;;  %v2386_v26 = vmul.f32 1.442695, %v2352_v3 }
 0x494   : > { %v2293_v62 = vpop.xlane.xlu0 %2292 }
 0x495   : > { %3988 = vpow2.f32 %v2386_v26  ;;  %v2353_v29 = vsub.f32 %v5591_v18, %v2293_v62 }
 0x496   : > { %v2297_v2 = vpop.xlane.xlu1 %2296 }
 0x497   : > { %v2388_v16 = vmul.f32 1.442695, %v2353_v29  ;;  %v2355_v20 = vsub.f32 %v5604_v63, %v2297_v2 }
 0x498   : > { %v2295_v60 = vpop.xlane.xlu0 %2294 }
 0x499   : > { %3990 = vpow2.f32 %v2388_v16  ;;  %v2392_v34 = vmul.f32 1.442695, %v2355_v20  ;;  %v2354_v7 = vsub.f32 %v5616_v37, %v2295_v60 }
 0x49a   : > { %v2301_v61 = vpop.xlane.xlu1 %2300 }
 0x49b   : > { %v5845_v38 = vpop.eup %3984  ;;  %v2390_v6 = vmul.f32 1.442695, %v2354_v7  ;;  %v2357_v58 = vsub.f32 %v5628_v30, %v2301_v61  ;;  %3992 = vpow2.f32 %v2392_v34 }
 0x49c   : > { %v2299_v41 = vpop.xlane.xlu0 %2298  ;;  %2446 = vadd.xlane.f32.xlu0 %v5845_v38 }
 0x49d   : > { %v5849_v18 = vpop.eup %3986  ;;  %3994 = vpow2.f32 %v2390_v6  ;;  %v2396_v24 = vmul.f32 1.442695, %v2357_v58  ;;  %v2356_v63 = vsub.f32 %v5639_v32, %v2299_v41 }
 0x49e   : > { %v2305_v47 = vpop.xlane.xlu1 %2304  ;;  %2448 = vadd.xlane.f32.xlu1 %v5849_v18 }
 0x49f   : > { %v5853_v37 = vpop.eup %3988  ;;  %v2394_v27 = vmul.f32 1.442695, %v2356_v63  ;;  %v2359_v19 = vsub.f32 %v5652_v12, %v2305_v47  ;;  %3996 = vpow2.f32 %v2396_v24 }
 0x4a0   : > { %v2303_v30 = vpop.xlane.xlu0 %2302  ;;  %2450 = vadd.xlane.f32.xlu0 %v5853_v37 }
 0x4a1   : > { %3998 = vpow2.f32 %v2394_v27  ;;  %v2400_v46 = vmul.f32 1.442695, %v2359_v19  ;;  %v2358_v39 = vsub.f32 %v5664_v33, %v2303_v30 }
 0x4a2   : > { %v2309_v8 = vpop.xlane.xlu1 %2308 }
 0x4a3   : > { %v5858_v52 = vpop.eup %3990  ;;  %v2398_v32 = vmul.f32 1.442695, %v2358_v39  ;;  %v2361_v40 = vsub.f32 %v5676_v31, %v2309_v8  ;;  %4000 = vpow2.f32 %v2400_v46 }
 0x4a4   : > { %v2307_v36 = vpop.xlane.xlu0 %2306  ;;  %2452 = vadd.xlane.f32.xlu1 %v5858_v52 }
 0x4a5   : > { %4002 = vpow2.f32 %v2398_v32  ;;  %v2404_v12 = vmul.f32 1.442695, %v2361_v40  ;;  %v2360_v14 = vsub.f32 %v5687_v11, %v2307_v36  ;;  %v5863_v15 = vpop.eup %3992 }
 0x4a6   : > { %v2313_v50 = vpop.xlane.xlu1 %2312 }
 0x4a7   : > { %v5865_v42 = vpop.eup %3994  ;;  %v2402_v33 = vmul.f32 1.442695, %v2360_v14  ;;  %v2363_v28 = vsub.f32 %v5700_v43, %v2313_v50  ;;  %4004 = vpow2.f32 %v2404_v12 }
 0x4a8   : > { %v2311_v5 = vpop.xlane.xlu0 %2310  ;;  %2454 = vadd.xlane.f32.xlu0 %v5865_v42  ;;  %2456 = vadd.xlane.f32.xlu1 %v5863_v15 }
 0x4a9   : > { %4006 = vpow2.f32 %v2402_v33  ;;  %v2408_v31 = vmul.f32 1.442695, %v2363_v28  ;;  %v2362_v57 = vsub.f32 %v5709_v55, %v2311_v5  ;;  %v5871_v35 = vpop.eup %3996 }
 0x4aa   : > { %v2317_v11 = vpop.xlane.xlu1 %2316 }
 0x4ab   : > { %v5873_v44 = vpop.eup %3998  ;;  %v2406_v3 = vmul.f32 1.442695, %v2362_v57  ;;  %v2365_v26 = vsub.f32 %v5718_v25, %v2317_v11  ;;  %4008 = vpow2.f32 %v2408_v31 }
 0x4ac   : > { %v2315_v43 = vpop.xlane.xlu0 %2314  ;;  %2458 = vadd.xlane.f32.xlu0 %v5873_v44  ;;  %2460 = vadd.xlane.f32.xlu1 %v5871_v35 }
 0x4ad   : > { %4010 = vpow2.f32 %v2406_v3  ;;  %v2412_v62 = vmul.f32 1.442695, %v2365_v26  ;;  %v2364_v29 = vsub.f32 %v5724_v21, %v2315_v43  ;;  %v5879_v2 = vpop.eup %4000 }
 0x4ae   : > { %v2321_v55 = vpop.xlane.xlu1 %2320 }
 0x4af   : > { %v5881_v16 = vpop.eup %4002  ;;  %v2410_v20 = vmul.f32 1.442695, %v2364_v29  ;;  %v2367_v60 = vsub.f32 %v5733_v9, %v2321_v55  ;;  %4012 = vpow2.f32 %v2412_v62 }
 0x4b0   : > { %v2319_v25 = vpop.xlane.xlu0 %2318  ;;  %2462 = vadd.xlane.f32.xlu0 %v5881_v16  ;;  %2464 = vadd.xlane.f32.xlu1 %v5879_v2 }
 0x4b1   : > { %4014 = vpow2.f32 %v2410_v20  ;;  %v2416_v34 = vmul.f32 1.442695, %v2367_v60  ;;  %v2366_v7 = vsub.f32 %v5740_v23, %v2319_v25  ;;  %v5887_v61 = vpop.eup %4004 }
 0x4b2   : > { %v2325_v21 = vpop.xlane.xlu1 %2324 }
 0x4b3   : > { %v5889_v6 = vpop.eup %4006  ;;  %v2414_v58 = vmul.f32 1.442695, %v2366_v7  ;;  %v2369_v41 = vsub.f32 %v5746_v45, %v2325_v21  ;;  %4016 = vpow2.f32 %v2416_v34 }
 0x4b4   : > { %v2323_v9 = vpop.xlane.xlu0 %2322  ;;  %2466 = vadd.xlane.f32.xlu0 %v5889_v6  ;;  %2468 = vadd.xlane.f32.xlu1 %v5887_v61 }
 0x4b5   : > { %4018 = vpow2.f32 %v2414_v58  ;;  %v2420_v24 = vmul.f32 1.442695, %v2369_v41  ;;  %v2368_v63 = vsub.f32 %v5754_v48, %v2323_v9  ;;  %v5895_v47 = vpop.eup %4008 }
 0x4b6   : > { %v2329_v23 = vpop.xlane.xlu1 %2328 }
 0x4b7   : > { %v5897_v27 = vpop.eup %4010  ;;  %v2418_v19 = vmul.f32 1.442695, %v2368_v63  ;;  %v2371_v30 = vsub.f32 %v5761_v4, %v2329_v23  ;;  %4020 = vpow2.f32 %v2420_v24 }
 0x4b8   : > { %v2327_v45 = vpop.xlane.xlu0 %2326  ;;  %2470 = vadd.xlane.f32.xlu0 %v5897_v27  ;;  %2472 = vadd.xlane.f32.xlu1 %v5895_v47 }
 0x4b9   : > { %4022 = vpow2.f32 %v2418_v19  ;;  %v2424_v46 = vmul.f32 1.442695, %v2371_v30  ;;  %v2370_v39 = vsub.f32 %v5768_v0, %v2327_v45  ;;  %v5903_v8 = vpop.eup %4012 }
 0x4ba   : > { %v2333_v48 = vpop.xlane.xlu1 %2332 }
 0x4bb   : > { %v5905_v32 = vpop.eup %4014  ;;  %v2422_v40 = vmul.f32 1.442695, %v2370_v39  ;;  %v2373_v36 = vsub.f32 %v5774_v17, %v2333_v48  ;;  %4024 = vpow2.f32 %v2424_v46  ;;  %v3904_v48 = vld [vmem:[#allocation10] ss:$8 sps:$4 sm:$0xff]  }
 0x4bc   : > { %v2331_v4 = vpop.xlane.xlu0 %2330  ;;  %2474 = vadd.xlane.f32.xlu0 %v5905_v32  ;;  %2476 = vadd.xlane.f32.xlu1 %v5903_v8 }
 0x4bd   : > { %4026 = vpow2.f32 %v2422_v40  ;;  %v2428_v12 = vmul.f32 1.442695, %v2373_v36  ;;  %v2372_v14 = vsub.f32 %v5782_v51, %v2331_v4  ;;  %v5911_v50 = vpop.eup %4016  ;;  %v3906_v40 = vld [vmem:[#allocation10 + $0x4] ss:$8 sps:$4 sm:$0xff]   ;;  %v3909_v36 = vld [vmem:[#allocation10 + $0x14] ss:$8 sps:$4 sm:$0xff]  }
 0x4be   : > { %v2337_v0 = vpop.xlane.xlu1 %2336  ;;  %3008 = vmatprep.subr.bf16.mxu0 %v3906_v40  ;;  %v3907_v4 = vld [vmem:[#allocation10 + $0x10] ss:$8 sps:$4 sm:$0xff]  }
 0x4bf   : > { %v5913_v33 = vpop.eup %4018  ;;  %v2426_v28 = vmul.f32 1.442695, %v2372_v14  ;;  %v2375_v5 = vsub.f32 %v5789_v59, %v2337_v0  ;;  %4028 = vpow2.f32 %v2428_v12  ;;  %3009 = vmatpush1.bf16.msra.mxu0 %v3904_v48  ;;  %v3912_v12 = vld [vmem:[#allocation10 + $0x24] ss:$8 sps:$4 sm:$0xff]   ;;  %v3910_v14 = vld [vmem:[#allocation10 + $0x20] ss:$8 sps:$4 sm:$0xff]  }
 0x4c0   : > { %v2335_v17 = vpop.xlane.xlu0 %2334  ;;  %2478 = vadd.xlane.f32.xlu0 %v5913_v33  ;;  %2480 = vadd.xlane.f32.xlu1 %v5911_v50  ;;  %v3915_v0 = vld [vmem:[#allocation10 + $0x34] ss:$8 sps:$4 sm:$0xff]  }
 0x4c1   : > { %4030 = vpow2.f32 %v2426_v28  ;;  %v2432_v31 = vmul.f32 1.442695, %v2375_v5  ;;  %v2374_v57 = vsub.f32 %v5796_v49, %v2335_v17  ;;  %v5919_v11 = vpop.eup %4020  ;;  %3010 = vmatprep.subr.bf16.mxu0 %v3909_v36  ;;  %v3913_v28 = vld [vmem:[#allocation10 + $0x30] ss:$8 sps:$4 sm:$0xff]   ;;  %v3918_v5 = vld [vmem:[#allocation10 + $0x44] ss:$8 sps:$4 sm:$0xff]  }
 0x4c2   : > { %v2341_v51 = vpop.xlane.xlu1 %2340  ;;  %v3916_v17 = vld [vmem:[#allocation10 + $0x40] ss:$8 sps:$4 sm:$0xff]  }
 0x4c3   : > { %v5921_v3 = vpop.eup %4022  ;;  %v2430_v26 = vmul.f32 1.442695, %v2374_v57  ;;  %v2377_v43 = vsub.f32 %v5803_v54, %v2341_v51  ;;  %4032 = vpow2.f32 %v2432_v31  ;;  %3011 = vmatpush1.bf16.msra.mxu0 %v3907_v4  ;;  %v3921_v31 = vld [vmem:[#allocation10 + $0x54] ss:$8 sps:$4 sm:$0xff]   ;;  %v3919_v57 = vld [vmem:[#allocation10 + $0x50] ss:$8 sps:$4 sm:$0xff]  }
 0x4c4   : > { %v2339_v59 = vpop.xlane.xlu0 %2338  ;;  %2482 = vadd.xlane.f32.xlu0 %v5921_v3  ;;  %2484 = vadd.xlane.f32.xlu1 %v5919_v11  ;;  %v3924_v51 = vld [vmem:[#allocation10 + $0x64] ss:$8 sps:$4 sm:$0xff]  }
 0x4c5   : > { %4034 = vpow2.f32 %v2430_v26  ;;  %v2436_v62 = vmul.f32 1.442695, %v2377_v43  ;;  %v2376_v29 = vsub.f32 %v5811_v13, %v2339_v59  ;;  %v5927_v55 = vpop.eup %4024  ;;  %3012 = vmatprep.subr.bf16.mxu0 %v3912_v12  ;;  %v3922_v26 = vld [vmem:[#allocation10 + $0x60] ss:$8 sps:$4 sm:$0xff]  }
 0x4c6   : > { %v2349_v49 = vpop.xlane.xlu1 %2348 }
 0x4c7   : > { %v5929_v20 = vpop.eup %4026  ;;  %v2434_v60 = vmul.f32 1.442695, %v2376_v29  ;;  %4036 = vpow2.f32 %v2436_v62  ;;  %v2381_v13 = vsub.f32 %v5817_v10, %v2349_v49  ;;  %3013 = vmatpush1.bf16.msra.mxu0 %v3910_v14 }
 0x4c8   : > { %2486 = vadd.xlane.f32.xlu0 %v5929_v20  ;;  %v2343_v54 = vpop.xlane.xlu0 %2342  ;;  %2488 = vadd.xlane.f32.xlu1 %v5927_v55 }
 0x4c9   : > { %4038 = vpow2.f32 %v2434_v60  ;;  %v2378_v25 = vsub.f32 %v5824_v1, %v2343_v54  ;;  %v5934_v34 = vpop.eup %4028  ;;  %v2444_v19 = vmul.f32 1.442695, %v2381_v13  ;;  %3014 = vmatprep.subr.bf16.mxu0 %v3915_v0 }
 0x4ca   : > { %v2345_v7 = vpop.xlane.xlu1 %2344 }
 0x4cb   : > { %v5936_v21 = vpop.eup %4030  ;;  %v2438_v58 = vmul.f32 1.442695, %v2378_v25  ;;  %v2379_v41 = vsub.f32 %v5830_v22, %v2345_v7  ;;  %3015 = vmatpush1.bf16.msra.mxu0 %v3913_v28 }
 0x4cc   : > { %2490 = vadd.xlane.f32.xlu0 %v5936_v21  ;;  %v2347_v9 = vpop.xlane.xlu0 %2346  ;;  %2492 = vadd.xlane.f32.xlu1 %v5934_v34 }
 0x4cd   : > { %4040 = vpow2.f32 %v2438_v58  ;;  %v2440_v24 = vmul.f32 1.442695, %v2379_v41  ;;  %v2380_v63 = vsub.f32 %v5836_v56, %v2347_v9  ;;  %v5943_v1 = vpop.eup %4032  ;;  %3016 = vmatprep.subr.bf16.mxu0 %v3918_v5 }
 0x4cf   : > { %v5945_v23 = vpop.eup %4034  ;;  %4042 = vpow2.f32 %v2440_v24  ;;  %v2442_v30 = vmul.f32 1.442695, %v2380_v63  ;;  %3017 = vmatpush1.bf16.msra.mxu0 %v3916_v17 }
 0x4d0   : > { %2494 = vadd.xlane.f32.xlu0 %v5945_v23  ;;  %2496 = vadd.xlane.f32.xlu1 %v5943_v1 }
 0x4d1   : > { %4044 = vpow2.f32 %v2442_v30  ;;  %v5949_v10 = vpop.eup %4036  ;;  %3018 = vmatprep.subr.bf16.mxu0 %v3921_v31 }
 0x4d2   : > { %4046 = vpow2.f32 %v2444_v19 }
 0x4d3   : > { %v5951_v22 = vpop.eup %4038  ;;  %3019 = vmatpush1.bf16.msra.mxu0 %v3919_v57 }
 0x4d4   : > { %2498 = vadd.xlane.f32.xlu0 %v5951_v22  ;;  %2500 = vadd.xlane.f32.xlu1 %v5949_v10 }
 0x4d5   : > { %3020 = vmatprep.subr.bf16.mxu0 %v3924_v51 }
 0x4d7   : > { %v5955_v56 = vpop.eup %4040  ;;  %3021 = vmatpush1.bf16.msra.mxu0 %v3922_v26 }
 0x4d8   : > { %2502 = vadd.xlane.f32.xlu0 %v5955_v56 }
 0x4d9   : > { %v5958_v45 = vpop.eup %4042 }
 0x4da   : > { %2504 = vadd.xlane.f32.xlu1 %v5958_v45 }
 0x4db   : > { %v5961_v46 = vpop.eup %4044 }
 0x4dc   : > { %2506 = vadd.xlane.f32.xlu0 %v5961_v46  ;;  %v5964_v39 = vpop.eup %4046 }
 0x4de   : > { %2508 = vadd.xlane.f32.xlu1 %v5964_v39 }
 0x529   : > { %v2447_v43 = vpop.xlane.xlu0 %2446 }
 0x52a   : > { %4048 = vrcp.f32 %v2447_v43 }
 0x52b   : > { %v2449_v59 = vpop.xlane.xlu1 %2448 }
 0x52c   : > { %4050 = vrcp.f32 %v2449_v59 }
 0x52d   : > { %v2451_v62 = vpop.xlane.xlu0 %2450 }
 0x52e   : > { %4052 = vrcp.f32 %v2451_v62 }
 0x531   : > { %v2453_v29 = vpop.xlane.xlu1 %2452 }
 0x532   : > { %4054 = vrcp.f32 %v2453_v29 }
 0x534   : > { %v4049_v49 = vpop.eup %4048 }
 0x535   : > { %v2455_v60 = vpop.xlane.xlu0 %2454  ;;  %v2457_v54 = vpop.xlane.xlu1 %2456  ;;  %v2542_v7 = vmul.f32 %v4049_v49, %v5845_v38  ;;  %v6288_v49 = vld [vmem:[#allocation32_spill] sm:$0xff] }
 0x536   : > { %v4051_v25 = vpop.eup %4050  ;;  %4056 = vrcp.f32 %v2455_v60 }
 0x537   : > { %4058 = vrcp.f32 %v2457_v54  ;;  %v2543_v13 = vmul.f32 %v4051_v25, %v5849_v18 }
 0x538   : > { %v4053_v24 = vpop.eup %4052 }
 0x539   : > { %v2459_v58 = vpop.xlane.xlu0 %2458  ;;  %v2461_v41 = vpop.xlane.xlu1 %2460  ;;  %v2574_v9 = vpack.c.bf16 %v2543_v13, %v2542_v7  ;;  %v2544_v19 = vmul.f32 %v4053_v24, %v5853_v37  ;;  %v6286_v37 = vld [vmem:[#allocation24_spill] sm:$0xff] }
 0x53a   : > { %4060 = vrcp.f32 %v2459_v58  ;;  %v6289_v13 = vld [vmem:[#allocation36_spill] sm:$0xff] }
 0x53b   : > { %4062 = vrcp.f32 %v2461_v41  ;;  %3616 = vmatprep.mubr.bf16.mxu1 %v2574_v9 }
 0x53c   : > { %v4055_v63 = vpop.eup %4054 }
 0x53d   : > { %v2545_v30 = vmul.f32 %v4055_v63, %v5858_v52  ;;  %v2463_v48 = vpop.xlane.xlu0 %2462  ;;  %v2465_v40 = vpop.xlane.xlu1 %2464 }
 0x53e   : > { %4064 = vrcp.f32 %v2463_v48 }
 0x53f   : > { %4066 = vrcp.f32 %v2465_v40  ;;  %v2575_v36 = vpack.c.bf16 %v2545_v30, %v2544_v19  ;;  %v6290_v19 = vld [vmem:[#allocation40_spill] sm:$0xff] }
 0x540   : > { %v4057_v38 = vpop.eup %4056 }
 0x541   : > { %v4059_v4 = vpop.eup %4058  ;;  %v2467_v18 = vpop.xlane.xlu0 %2466  ;;  %3617 = vmatmul.mubr.bf16.vlgmr.msra.gmra.mrb[80].mxu1 %v2575_v36  ;;  %v2546_v14 = vmul.f32 %v4057_v38, %v5865_v42 }
 0x542   : > { %v2469_v12 = vpop.xlane.xlu1 %2468  ;;  %4068 = vrcp.f32 %v2467_v18  ;;  %3633 = vmatpush3.bf16.msra.mxu1 %v6273_v53  ;;  %v2547_v0 = vmul.f32 %v4059_v4, %v5863_v15  ;;  %v6287_v53 = vld [vmem:[#allocation28_spill] sm:$0xff]  ;;  %v6291_v4 = vld [vmem:[#allocation46_spill] sm:$0xff] }
 0x543   : > { %4070 = vrcp.f32 %v2469_v12  ;;  %3634 = vmatprep.subr.bf16.mxu1 %v6286_v37 }
 0x544   : > { %v4061_v52 = vpop.eup %4060  ;;  %v2576_v28 = vpack.c.bf16 %v2547_v0, %v2546_v14 }
 0x545   : > { %v4063_v5 = vpop.eup %4062  ;;  %v2471_v17 = vpop.xlane.xlu0 %2470  ;;  %v2548_v57 = vmul.f32 %v4061_v52, %v5873_v44  ;;  %v6292_v52 = vld [vmem:[#allocation54_spill] sm:$0xff] }
 0x546   : > { %v2473_v31 = vpop.xlane.xlu1 %2472  ;;  %4072 = vrcp.f32 %v2471_v17  ;;  %3620 = vmatprep.mubr.bf16.mxu1 %v2576_v28  ;;  %3635 = vmatpush3.bf16.msra.mxu1 %v6286_v37  ;;  %v2549_v42 = vmul.f32 %v4063_v5, %v5871_v35 }
 0x547   : > { %4074 = vrcp.f32 %v2473_v31  ;;  %3636 = vmatprep.subr.bf16.mxu1 %v6287_v53 }
 0x548   : > { %v4065_v15 = vpop.eup %4064  ;;  %v2577_v51 = vpack.c.bf16 %v2549_v42, %v2548_v57 }
 0x549   : > { %v4067_v26 = vpop.eup %4066  ;;  %v2475_v43 = vpop.xlane.xlu0 %2474  ;;  %v2550_v62 = vmul.f32 %v4065_v15, %v5881_v16 }
 0x54a   : > { %v2477_v59 = vpop.xlane.xlu1 %2476  ;;  %4076 = vrcp.f32 %v2475_v43  ;;  %3621 = vmatmul.mubr.bf16.gmra.mrb[84].mxu1 %v2577_v51  ;;  %v2551_v44 = vmul.f32 %v4067_v26, %v5879_v2 }
 0x54b   : > { %3637 = vmatpush3.bf16.msra.mxu1 %v6287_v53  ;;  %4078 = vrcp.f32 %v2477_v59 }
 0x54c   : > { %v4069_v29 = vpop.eup %4068  ;;  %3638 = vmatprep.subr.bf16.mxu1 %v6288_v49  ;;  %v2578_v35 = vpack.c.bf16 %v2551_v44, %v2550_v62 }
 0x54d   : > { %v4071_v60 = vpop.eup %4070  ;;  %v2479_v54 = vpop.xlane.xlu0 %2478  ;;  %v2552_v7 = vmul.f32 %v4069_v29, %v5889_v6 }
 0x54e   : > { %v2481_v25 = vpop.xlane.xlu1 %2480  ;;  %4080 = vrcp.f32 %v2479_v54  ;;  %3624 = vmatprep.mubr.bf16.mxu1 %v2578_v35  ;;  %v2553_v16 = vmul.f32 %v4071_v60, %v5887_v61 }
 0x54f   : > { %3639 = vmatpush3.bf16.msra.mxu1 %v6288_v49  ;;  %4082 = vrcp.f32 %v2481_v25 }
 0x550   : > { %v4073_v2 = vpop.eup %4072  ;;  %3640 = vmatprep.subr.bf16.mxu1 %v6289_v13  ;;  %v2579_v58 = vpack.c.bf16 %v2553_v16, %v2552_v7 }
 0x551   : > { %v4075_v41 = vpop.eup %4074  ;;  %v2483_v9 = vpop.xlane.xlu0 %2482  ;;  %v2554_v63 = vmul.f32 %v4073_v2, %v5897_v27 }
 0x552   : > { %v2485_v24 = vpop.xlane.xlu1 %2484  ;;  %4084 = vrcp.f32 %v2483_v9  ;;  %3625 = vmatmul.mubr.bf16.gmra.mrb[88].mxu1 %v2579_v58  ;;  %v2555_v6 = vmul.f32 %v4075_v41, %v5895_v47 }
 0x553   : > { %3641 = vmatpush3.bf16.msra.mxu1 %v6289_v13  ;;  %4086 = vrcp.f32 %v2485_v24 }
 0x554   : > { %v4077_v61 = vpop.eup %4076  ;;  %3642 = vmatprep.subr.bf16.mxu1 %v6290_v19  ;;  %v2580_v30 = vpack.c.bf16 %v2555_v6, %v2554_v63 }
 0x555   : > { %v4079_v48 = vpop.eup %4078  ;;  %v2487_v40 = vpop.xlane.xlu0 %2486  ;;  %v2556_v38 = vmul.f32 %v4077_v61, %v5905_v32 }
 0x556   : > { %v2489_v36 = vpop.xlane.xlu1 %2488  ;;  %4088 = vrcp.f32 %v2487_v40  ;;  %3628 = vmatprep.mubr.bf16.mxu1 %v2580_v30  ;;  %v2557_v27 = vmul.f32 %v4079_v48, %v5903_v8  ;;  %v3927_v30 = vld [vmem:[#allocation10 + $0x74] ss:$8 sps:$4 sm:$0xff]   ;;  %v3930_v48 = vld [vmem:[#allocation10 + $0x84] ss:$8 sps:$4 sm:$0xff]   ;;  %v3928_v40 = vld [vmem:[#allocation10 + $0x80] ss:$8 sps:$4 sm:$0xff]  }
 0x557   : > { %3643 = vmatpush3.bf16.msra.mxu1 %v6290_v19  ;;  %4090 = vrcp.f32 %v2489_v36  ;;  %3022 = vmatprep.subr.bf16.mxu0 %v3927_v30  ;;  %v3936_v36 = vld [vmem:[#allocation10 + $0xa4] ss:$8 sps:$4 sm:$0xff]  }
 0x558   : > { %v4081_v47 = vpop.eup %4080  ;;  %3644 = vmatprep.subr.bf16.mxu1 %v6291_v4  ;;  %v2581_v18 = vpack.c.bf16 %v2557_v27, %v2556_v38  ;;  %v3934_v38 = vld [vmem:[#allocation10 + $0xa0] ss:$8 sps:$4 sm:$0xff]   ;;  %v3942_v27 = vld [vmem:[#allocation10 + $0xc4] ss:$8 sps:$4 sm:$0xff]  }
 0x559   : > { %v4083_v12 = vpop.eup %4082  ;;  %v2491_v14 = vpop.xlane.xlu0 %2490  ;;  %v2558_v37 = vmul.f32 %v4081_v47, %v5913_v33  ;;  %v3940_v47 = vld [vmem:[#allocation10 + $0xc0] ss:$8 sps:$4 sm:$0xff]  }
 0x55a   : > { %v2493_v0 = vpop.xlane.xlu1 %2492  ;;  %4092 = vrcp.f32 %v2491_v14  ;;  %3629 = vmatmul.mubr.bf16.gmra.mrb[92].mxu1 %v2581_v18  ;;  %v2559_v32 = vmul.f32 %v4083_v12, %v5911_v50  ;;  %v3943_v18 = vld [vmem:[#allocation10 + $0xd0] ss:$8 sps:$4 sm:$0xff]   ;;  %v3948_v12 = vld [vmem:[#allocation10 + $0xe4] ss:$8 sps:$4 sm:$0xff]   ;;  %v3946_v14 = vld [vmem:[#allocation10 + $0xe0] ss:$8 sps:$4 sm:$0xff]  }
 0x55b   : > { %3645 = vmatpush3.bf16.msra.mxu1 %v6291_v4  ;;  %4094 = vrcp.f32 %v2493_v0  ;;  %v3945_v4 = vld [vmem:[#allocation10 + $0xd4] ss:$8 sps:$4 sm:$0xff]  }
 0x55c   : > { %v4085_v8 = vpop.eup %4084  ;;  %3646 = vmatprep.subr.bf16.mxu1 %v6292_v52  ;;  %v2582_v28 = vpack.c.bf16 %v2559_v32, %v2558_v37  ;;  %v3951_v0 = vld [vmem:[#allocation10 + $0xf4] ss:$8 sps:$4 sm:$0xff]   ;;  %v3949_v37 = vld [vmem:[#allocation10 + $0xf0] ss:$8 sps:$4 sm:$0xff]  }
 0x55d   : > { %v4087_v5 = vpop.eup %4086  ;;  %v2560_v17 = vmul.f32 %v4085_v8, %v5921_v3  ;;  %v2495_v31 = vpop.xlane.xlu0 %2494 }
 0x55e   : > { %v2497_v57 = vpop.xlane.xlu1 %2496  ;;  %v2561_v42 = vmul.f32 %v4087_v5, %v5919_v11  ;;  %4096 = vrcp.f32 %v2495_v31  ;;  %3648 = vmatprep.mubr.bf16.mxu1 %v2582_v28 }
 0x55f   : > { %3647 = vmatpush3.bf16.msra.mxu1 %v6292_v52  ;;  %4098 = vrcp.f32 %v2497_v57 }
 0x560   : > { %v4089_v50 = vpop.eup %4088  ;;  %v2583_v33 = vpack.c.bf16 %v2561_v42, %v2560_v17 }
 0x561   : > { %v4091_v53 = vpop.eup %4090  ;;  %v2499_v15 = vpop.xlane.xlu0 %2498  ;;  %v2562_v26 = vmul.f32 %v4089_v50, %v5929_v20 }
 0x562   : > { %v2501_v51 = vpop.xlane.xlu1 %2500  ;;  %4100 = vrcp.f32 %v2499_v15  ;;  %3649 = vmatmul.mubr.bf16.vlgmr.msra.gmra.mrb[96].mxu1 %v2583_v33  ;;  %v2563_v3 = vmul.f32 %v4091_v53, %v5927_v55 }
 0x563   : > { %4102 = vrcp.f32 %v2501_v51 }
 0x564   : > { %v4093_v43 = vpop.eup %4092  ;;  %v2584_v59 = vpack.c.bf16 %v2563_v3, %v2562_v26 }
 0x565   : > { %v4095_v11 = vpop.eup %4094  ;;  %v2503_v62 = vpop.xlane.xlu0 %2502  ;;  %v2564_v44 = vmul.f32 %v4093_v43, %v5936_v21 }
 0x566   : > { %4104 = vrcp.f32 %v2503_v62  ;;  %3652 = vmatprep.mubr.bf16.mxu1 %v2584_v59  ;;  %v2565_v29 = vmul.f32 %v4095_v11, %v5934_v34 }
 0x567   : > { %v2505_v49 = vpop.xlane.xlu1 %2504 }
 0x568   : > { %v4097_v35 = vpop.eup %4096  ;;  %4106 = vrcp.f32 %v2505_v49  ;;  %v2585_v60 = vpack.c.bf16 %v2565_v29, %v2564_v44 }
 0x569   : > { %v4099_v20 = vpop.eup %4098  ;;  %v2507_v54 = vpop.xlane.xlu0 %2506  ;;  %v2566_v25 = vmul.f32 %v4097_v35, %v5945_v23 }
 0x56a   : > { %4108 = vrcp.f32 %v2507_v54  ;;  %3653 = vmatmul.mubr.bf16.gmra.mrb[100].mxu1 %v2585_v60  ;;  %v2567_v55 = vmul.f32 %v4099_v20, %v5943_v1 }
 0x56b   : > { %v2509_v7 = vpop.xlane.xlu1 %2508 }
 0x56c   : > { %v4101_v16 = vpop.eup %4100  ;;  %4110 = vrcp.f32 %v2509_v7  ;;  %v2586_v21 = vpack.c.bf16 %v2567_v55, %v2566_v25 }
 0x56d   : > { %v4103_v2 = vpop.eup %4102  ;;  %v2568_v13 = vmul.f32 %v4101_v16, %v5951_v22 }
 0x56e   : > { %3656 = vmatprep.mubr.bf16.mxu1 %v2586_v21  ;;  %v2569_v34 = vmul.f32 %v4103_v2, %v5949_v10  ;;  %v3925_v10 = vld [vmem:[#allocation10 + $0x70] ss:$8 sps:$4 sm:$0xff]  }
 0x56f   : > { %3023 = vmatpush1.bf16.msra.mxu0 %v3925_v10 }
 0x570   : > { %v4105_v58 = vpop.eup %4104  ;;  %v2587_v41 = vpack.c.bf16 %v2569_v34, %v2568_v13  ;;  %3024 = vmatprep.subr.bf16.mxu0 %v3930_v48 }
 0x571   : > { %v2570_v23 = vmul.f32 %v4105_v58, %v5955_v56  ;;  %v3933_v56 = vld [vmem:[#allocation10 + $0x94] ss:$8 sps:$4 sm:$0xff]  }
 0x572   : > { %v4107_v9 = vpop.eup %4106  ;;  %3657 = vmatmul.mubr.bf16.gmra.mrb[104].mxu1 %v2587_v41 }
 0x573   : > { %v2571_v24 = vmul.f32 %v4107_v9, %v5958_v45  ;;  %3025 = vmatpush1.bf16.msra.mxu0 %v3928_v40  ;;  %v3931_v45 = vld [vmem:[#allocation10 + $0x90] ss:$8 sps:$4 sm:$0xff]   ;;  %v4112_v40 = vld [vmem:[%s4647_s21] sm:$0xff] }
 0x574   : > { %v4109_v63 = vpop.eup %4108  ;;  %3026 = vmatprep.subr.bf16.mxu0 %v3933_v56 }
 0x575   : > { %v2588_v1 = vpack.c.bf16 %v2571_v24, %v2570_v23  ;;  %v2572_v61 = vmul.f32 %v4109_v63, %v5961_v46  ;;  %v3939_v46 = vld [vmem:[#allocation10 + $0xb4] ss:$8 sps:$4 sm:$0xff]  }
 0x576   : > { %v4111_v6 = vpop.eup %4110 }
 0x577   : > { %3660 = vmatprep.mubr.bf16.mxu1 %v2588_v1  ;;  %v2573_v19 = vmul.f32 %v4111_v6, %v5964_v39  ;;  %3027 = vmatpush1.bf16.msra.mxu0 %v3931_v45  ;;  %v3937_v39 = vld [vmem:[#allocation10 + $0xb0] ss:$8 sps:$4 sm:$0xff]  }
 0x578   : > { %3028 = vmatprep.subr.bf16.mxu0 %v3936_v36  ;;  %v4113_v36 = vld [vmem:[%s4647_s21 + $0x8] sm:$0xff] }
 0x579   : > { %v2589_v22 = vpack.c.bf16 %v2573_v19, %v2572_v61 }
 0x57b   : > { %3661 = vmatmul.mubr.bf16.gmra.mrb[108].mxu1 %v2589_v22  ;;  %3029 = vmatpush1.bf16.msra.mxu0 %v3934_v38 }
 0x57c   : > { %3030 = vmatprep.subr.bf16.mxu0 %v3939_v46 }
 0x57f   : > { %3031 = vmatpush1.bf16.msra.mxu0 %v3937_v39  ;;  %v4114_v39 = vld [vmem:[%s4647_s21 + $0x10] sm:$0xff] }
 0x580   : > { %3032 = vmatprep.subr.bf16.mxu0 %v3942_v27 }
 0x583   : > { %3033 = vmatpush1.bf16.msra.mxu0 %v3940_v47 }
 0x584   : > { %3034 = vmatprep.subr.bf16.mxu0 %v3945_v4  ;;  %v4115_v4 = vld [vmem:[%s4647_s21 + $0x18] sm:$0xff] }
 0x587   : > { %3035 = vmatpush1.bf16.msra.mxu0 %v3943_v18 }
 0x588   : > { %3036 = vmatprep.subr.bf16.mxu0 %v3948_v12 }
 0x58b   : > { %3037 = vmatpush1.bf16.msra.mxu0 %v3946_v14  ;;  %v4116_v14 = vld [vmem:[%s4647_s21 + $0x20] sm:$0xff] }
 0x58c   : > { %3038 = vmatprep.subr.bf16.mxu0 %v3951_v0 }
 0x58f   : > { %3039 = vmatpush1.bf16.msra.mxu0 %v3949_v37 }
 0x614   : > { %v3618_v32 = vpop.f32.mrb[80].mxu1 }
 0x615   : > { %v2640_v8 = vpop.f32.mrb[81].mxu1 }
 0x616   : > { %v3619_v52 = vpop.f32.mrb[82].mxu1 }
 0x617   : > { %v2802_v28 = vpack.c.bf16 %v3619_v52, %v3618_v32  ;;  %v2643_v5 = vpop.f32.mrb[83].mxu1  ;;  %v4117_v32 = vld [vmem:[%s4647_s21 + $0x28] sm:$0xff] }
 0x618   : > { %v2800_v17 = vpack.c.bf16 %v2643_v5, %v2640_v8 }
 0x61d   : > { %v3622_v31 = vpop.f32.mrb[84].mxu1 }
 0x61e   : > { %v2656_v57 = vpop.f32.mrb[85].mxu1 }
 0x61f   : > { %v3623_v42 = vpop.f32.mrb[86].mxu1 }
 0x620   : > { %v2806_v50 = vpack.c.bf16 %v3623_v42, %v3622_v31  ;;  %v2659_v33 = vpop.f32.mrb[87].mxu1  ;;  %v4119_v31 = vld [vmem:[%s4647_s21 + $0x38] sm:$0xff] }
 0x621   : > { %v2804_v53 = vpack.c.bf16 %v2659_v33, %v2656_v57 }
 0x625   : > { %v3626_v15 = vpop.f32.mrb[88].mxu1 }
 0x626   : > { %v2672_v51 = vpop.f32.mrb[89].mxu1 }
 0x627   : > { %v3627_v26 = vpop.f32.mrb[90].mxu1 }
 0x628   : > { %v2810_v3 = vpack.c.bf16 %v3627_v26, %v3626_v15  ;;  %v2675_v43 = vpop.f32.mrb[91].mxu1  ;;  %v4121_v15 = vld [vmem:[%s4647_s21 + $0x48] sm:$0xff] }
 0x629   : > { %v2808_v59 = vpack.c.bf16 %v2675_v43, %v2672_v51 }
 0x62d   : > { %v3630_v11 = vpop.f32.mrb[92].mxu1 }
 0x62e   : > { %v2688_v62 = vpop.f32.mrb[93].mxu1 }
 0x62f   : > { %v3631_v44 = vpop.f32.mrb[94].mxu1 }
 0x630   : > { %v2814_v29 = vpack.c.bf16 %v3631_v44, %v3630_v11  ;;  %v2691_v49 = vpop.f32.mrb[95].mxu1  ;;  %v4123_v11 = vld [vmem:[%s4647_s21 + $0x58] sm:$0xff] }
 0x631   : > { %v2812_v35 = vpack.c.bf16 %v2691_v49, %v2688_v62 }
 0x635   : > { %v3650_v60 = vpop.f32.mrb[96].mxu1 }
 0x636   : > { %v2737_v20 = vpop.f32.mrb[97].mxu1 }
 0x637   : > { %v3651_v54 = vpop.f32.mrb[98].mxu1 }
 0x638   : > { %v2803_v25 = vpack.c.bf16 %v3651_v54, %v3650_v60  ;;  %v2740_v55 = vpop.f32.mrb[99].mxu1  ;;  %v4125_v60 = vld [vmem:[%s4647_s21 + $0x68] sm:$0xff] }
 0x639   : > { %v2801_v7 = vpack.c.bf16 %v2740_v55, %v2737_v20 }
 0x63b   : > { %3040 = vmatprep.mubr.bf16.mxu0 %v2801_v7 }
 0x63c   : > { %3041 = vmatmul.mubr.bf16.vlgmr.msra.gmra.mrb[48].mxu0 %v2800_v17 }
 0x63d   : > { %v3654_v16 = vpop.f32.mrb[100].mxu1  ;;  %3050 = vmatprep.mubr.bf16.mxu0 %v2803_v25  ;;  %v4126_v25 = vld [vmem:[%s4647_s21 + $0x70] sm:$0xff] }
 0x63e   : > { %v2753_v21 = vpop.f32.mrb[101].mxu1 }
 0x63f   : > { %v3655_v2 = vpop.f32.mrb[102].mxu1 }
 0x640   : > { %v2807_v13 = vpack.c.bf16 %v3655_v2, %v3654_v16  ;;  %v2756_v34 = vpop.f32.mrb[103].mxu1  ;;  %v4127_v16 = vld [vmem:[%s4647_s21 + $0x78] sm:$0xff] }
 0x641   : > { %v2805_v58 = vpack.c.bf16 %v2756_v34, %v2753_v21 }
 0x644   : > { %3051 = vmatmul.mubr.bf16.gmra.mrb[52].mxu0 %v2802_v28  ;;  %v4118_v28 = vld [vmem:[%s4647_s21 + $0x30] sm:$0xff] }
 0x645   : > { %v3658_v41 = vpop.f32.mrb[104].mxu1  ;;  %3060 = vmatprep.mubr.bf16.mxu0 %v2805_v58 }
 0x646   : > { %v2769_v9 = vpop.f32.mrb[105].mxu1 }
 0x647   : > { %v3659_v23 = vpop.f32.mrb[106].mxu1 }
 0x648   : > { %v2811_v24 = vpack.c.bf16 %v3659_v23, %v3658_v41  ;;  %v2772_v63 = vpop.f32.mrb[107].mxu1  ;;  %v4129_v41 = vld [vmem:[%s4647_s21 + $0x88] sm:$0xff] }
 0x649   : > { %v2809_v1 = vpack.c.bf16 %v2772_v63, %v2769_v9 }
 0x64c   : > { %3061 = vmatmul.mubr.bf16.gmra.mrb[56].mxu0 %v2804_v53 }
 0x64d   : > { %3070 = vmatprep.mubr.bf16.mxu0 %v2807_v13  ;;  %v4128_v13 = vld [vmem:[%s4647_s21 + $0x80] sm:$0xff] }
 0x64e   : > { %v3662_v6 = vpop.f32.mrb[108].mxu1 }
 0x64f   : > { %v2785_v61 = vpop.f32.mrb[109].mxu1 }
 0x650   : > { %v3663_v19 = vpop.f32.mrb[110].mxu1 }
 0x651   : > { %v2815_v22 = vpack.c.bf16 %v3663_v19, %v3662_v6  ;;  %v2788_v30 = vpop.f32.mrb[111].mxu1  ;;  %v4131_v6 = vld [vmem:[%s4647_s21 + $0x98] sm:$0xff] }
 0x652   : > { %v2813_v10 = vpack.c.bf16 %v2788_v30, %v2785_v61 }
 0x654   : > { %3071 = vmatmul.mubr.bf16.gmra.mrb[60].mxu0 %v2806_v50  ;;  %v4120_v50 = vld [vmem:[%s4647_s21 + $0x40] sm:$0xff] }
 0x655   : > { %3080 = vmatprep.mubr.bf16.mxu0 %v2809_v1 }
 0x65c   : > { %3081 = vmatmul.mubr.bf16.gmra.mrb[64].mxu0 %v2808_v59 }
 0x65d   : > { %3090 = vmatprep.mubr.bf16.mxu0 %v2811_v24  ;;  %v4130_v24 = vld [vmem:[%s4647_s21 + $0x90] sm:$0xff] }
 0x664   : > { %3091 = vmatmul.mubr.bf16.gmra.mrb[68].mxu0 %v2810_v3  ;;  %v4122_v3 = vld [vmem:[%s4647_s21 + $0x50] sm:$0xff] }
 0x665   : > { %3100 = vmatprep.mubr.bf16.mxu0 %v2813_v10 }
 0x66c   : > { %3101 = vmatmul.mubr.bf16.gmra.mrb[72].mxu0 %v2812_v35 }
 0x66d   : > { %3110 = vmatprep.mubr.bf16.mxu0 %v2815_v22  ;;  %v4132_v22 = vld [vmem:[%s4647_s21 + $0xa0] sm:$0xff] }
 0x674   : > { %3111 = vmatmul.mubr.bf16.gmra.mrb[76].mxu0 %v2814_v29  ;;  %v4124_v29 = vld [vmem:[%s4647_s21 + $0x60] sm:$0xff] }
 0x70f   : > { %v3042_v48 = vpop.f32.mrb[48].mxu0 }
 0x710   : > { %v3121_v56 = vadd.f32 %v4112_v40, %v3042_v48  ;;  %v3044_v45 = vpop.f32.mrb[49].mxu0  ;;  %v4133_v48 = vld [vmem:[%s4647_s21 + $0xa8] sm:$0xff] }
 0x711   : > { %v3122_v38 = vadd.f32 %v4113_v36, %v3044_v45  ;;  %v3046_v46 = vpop.f32.mrb[50].mxu0  ;;  %v4134_v45 = vld [vmem:[%s4647_s21 + $0xb0] sm:$0xff] }
 0x712   : > { %3153 = vst [vmem:[%s6018_s16] sm:$0xff] %v3121_v56  ;;  %v3123_v27 = vadd.f32 %v4114_v39, %v3046_v46  ;;  %v3048_v47 = vpop.f32.mrb[51].mxu0  ;;  %v4135_v46 = vld [vmem:[%s4647_s21 + $0xb8] sm:$0xff] }
 0x713   : > { %3154 = vst [vmem:[%s6018_s16 + $0x8] sm:$0xff] %v3122_v38  ;;  %v3124_v18 = vadd.f32 %v4115_v4, %v3048_v47  ;;  %v4136_v47 = vld [vmem:[%s4647_s21 + $0xc0] sm:$0xff] }
 0x714   : > { %3155 = vst [vmem:[%s6018_s16 + $0x10] sm:$0xff] %v3123_v27 }
 0x715   : > { %3156 = vst [vmem:[%s6018_s16 + $0x18] sm:$0xff] %v3124_v18 }
 0x717   : > { %v3052_v12 = vpop.f32.mrb[52].mxu0 }
 0x718   : > { %v3125_v0 = vadd.f32 %v4116_v14, %v3052_v12  ;;  %v3054_v37 = vpop.f32.mrb[53].mxu0  ;;  %v4137_v12 = vld [vmem:[%s4647_s21 + $0xc8] sm:$0xff] }
 0x719   : > { %v3126_v8 = vadd.f32 %v4117_v32, %v3054_v37  ;;  %v3056_v52 = vpop.f32.mrb[54].mxu0  ;;  %v4138_v37 = vld [vmem:[%s4647_s21 + $0xd0] sm:$0xff] }
 0x71a   : > { %3157 = vst [vmem:[%s6018_s16 + $0x20] sm:$0xff] %v3125_v0  ;;  %v3127_v5 = vadd.f32 %v4118_v28, %v3056_v52  ;;  %v3058_v17 = vpop.f32.mrb[55].mxu0  ;;  %v4139_v52 = vld [vmem:[%s4647_s21 + $0xd8] sm:$0xff] }
 0x71b   : > { %3158 = vst [vmem:[%s6018_s16 + $0x28] sm:$0xff] %v3126_v8  ;;  %v3128_v57 = vadd.f32 %v4119_v31, %v3058_v17  ;;  %v4140_v17 = vld [vmem:[%s4647_s21 + $0xe0] sm:$0xff] }
 0x71c   : > { %3159 = vst [vmem:[%s6018_s16 + $0x30] sm:$0xff] %v3127_v5 }
 0x71d   : > { %3160 = vst [vmem:[%s6018_s16 + $0x38] sm:$0xff] %v3128_v57 }
 0x71f   : > { %v3062_v42 = vpop.f32.mrb[56].mxu0 }
 0x720   : > { %v3129_v33 = vadd.f32 %v4120_v50, %v3062_v42  ;;  %v3064_v53 = vpop.f32.mrb[57].mxu0  ;;  %v4141_v42 = vld [vmem:[%s4647_s21 + $0xe8] sm:$0xff] }
 0x721   : > { %v3130_v51 = vadd.f32 %v4121_v15, %v3064_v53  ;;  %v3066_v26 = vpop.f32.mrb[58].mxu0  ;;  %v4142_v53 = vld [vmem:[%s4647_s21 + $0xf0] sm:$0xff] }
 0x722   : > { %3161 = vst [vmem:[%s6018_s16 + $0x40] sm:$0xff] %v3129_v33  ;;  %v3131_v43 = vadd.f32 %v4122_v3, %v3066_v26  ;;  %v3068_v59 = vpop.f32.mrb[59].mxu0  ;;  %v4143_v26 = vld [vmem:[%s4647_s21 + $0xf8] sm:$0xff] }
 0x723   : > { %3162 = vst [vmem:[%s6018_s16 + $0x48] sm:$0xff] %v3130_v51  ;;  %v3132_v62 = vadd.f32 %v4123_v11, %v3068_v59 }
 0x724   : > { %3163 = vst [vmem:[%s6018_s16 + $0x50] sm:$0xff] %v3131_v43 }
 0x725   : > { %3164 = vst [vmem:[%s6018_s16 + $0x58] sm:$0xff] %v3132_v62 }
 0x727   : > { %v3072_v44 = vpop.f32.mrb[60].mxu0 }
 0x728   : > { %v3133_v49 = vadd.f32 %v4124_v29, %v3072_v44  ;;  %v3074_v35 = vpop.f32.mrb[61].mxu0 }
 0x729   : > { %v3134_v20 = vadd.f32 %v4125_v60, %v3074_v35  ;;  %v3076_v54 = vpop.f32.mrb[62].mxu0 }
 0x72a   : > { %3165 = vst [vmem:[%s6018_s16 + $0x60] sm:$0xff] %v3133_v49  ;;  %v3135_v55 = vadd.f32 %v4126_v25, %v3076_v54  ;;  %v3078_v7 = vpop.f32.mrb[63].mxu0 }
 0x72b   : > { %3166 = vst [vmem:[%s6018_s16 + $0x68] sm:$0xff] %v3134_v20  ;;  %v3136_v21 = vadd.f32 %v4127_v16, %v3078_v7 }
 0x72c   : > { %3167 = vst [vmem:[%s6018_s16 + $0x70] sm:$0xff] %v3135_v55 }
 0x72d   : > { %3168 = vst [vmem:[%s6018_s16 + $0x78] sm:$0xff] %v3136_v21 }
 0x72f   : > { %v3082_v2 = vpop.f32.mrb[64].mxu0 }
 0x730   : > { %v3137_v34 = vadd.f32 %v4128_v13, %v3082_v2  ;;  %v3084_v58 = vpop.f32.mrb[65].mxu0 }
 0x731   : > { %v3138_v9 = vadd.f32 %v4129_v41, %v3084_v58  ;;  %v3086_v23 = vpop.f32.mrb[66].mxu0 }
 0x732   : > { %3169 = vst [vmem:[%s6018_s16 + $0x80] sm:$0xff] %v3137_v34  ;;  %v3139_v63 = vadd.f32 %v4130_v24, %v3086_v23  ;;  %v3088_v1 = vpop.f32.mrb[67].mxu0 }
 0x733   : > { %3170 = vst [vmem:[%s6018_s16 + $0x88] sm:$0xff] %v3138_v9  ;;  %v3140_v61 = vadd.f32 %v4131_v6, %v3088_v1 }
 0x734   : > { %3171 = vst [vmem:[%s6018_s16 + $0x90] sm:$0xff] %v3139_v63 }
 0x735   : > { %3172 = vst [vmem:[%s6018_s16 + $0x98] sm:$0xff] %v3140_v61 }
 0x737   : > { %v3092_v19 = vpop.f32.mrb[68].mxu0 }
 0x738   : > { %v3141_v30 = vadd.f32 %v4132_v22, %v3092_v19  ;;  %v3094_v10 = vpop.f32.mrb[69].mxu0 }
 0x739   : > { %v3142_v40 = vadd.f32 %v4133_v48, %v3094_v10  ;;  %v3096_v56 = vpop.f32.mrb[70].mxu0 }
 0x73a   : > { %3173 = vst [vmem:[%s6018_s16 + $0xa0] sm:$0xff] %v3141_v30  ;;  %v3143_v36 = vadd.f32 %v4134_v45, %v3096_v56  ;;  %v3098_v38 = vpop.f32.mrb[71].mxu0 }
 0x73b   : > { %3174 = vst [vmem:[%s6018_s16 + $0xa8] sm:$0xff] %v3142_v40  ;;  %v3144_v39 = vadd.f32 %v4135_v46, %v3098_v38 }
 0x73c   : > { %3175 = vst [vmem:[%s6018_s16 + $0xb0] sm:$0xff] %v3143_v36 }
 0x73d   : > { %3176 = vst [vmem:[%s6018_s16 + $0xb8] sm:$0xff] %v3144_v39 }
 0x73f   : > { %v3102_v27 = vpop.f32.mrb[72].mxu0 }
 0x740   : > { %v3145_v4 = vadd.f32 %v4136_v47, %v3102_v27  ;;  %v3104_v18 = vpop.f32.mrb[73].mxu0 }
 0x741   : > { %v3146_v14 = vadd.f32 %v4137_v12, %v3104_v18  ;;  %v3106_v0 = vpop.f32.mrb[74].mxu0 }
 0x742   : > { %3177 = vst [vmem:[%s6018_s16 + $0xc0] sm:$0xff] %v3145_v4  ;;  %v3147_v32 = vadd.f32 %v4138_v37, %v3106_v0  ;;  %v3108_v8 = vpop.f32.mrb[75].mxu0 }
 0x743   : > { %3178 = vst [vmem:[%s6018_s16 + $0xc8] sm:$0xff] %v3146_v14  ;;  %v3148_v28 = vadd.f32 %v4139_v52, %v3108_v8 }
 0x744   : > { %3179 = vst [vmem:[%s6018_s16 + $0xd0] sm:$0xff] %v3147_v32 }
 0x745   : > { %3180 = vst [vmem:[%s6018_s16 + $0xd8] sm:$0xff] %v3148_v28 }
 0x747   : > { %v3112_v5 = vpop.f32.mrb[76].mxu0 }
 0x748   : > { %v3149_v31 = vadd.f32 %v4140_v17, %v3112_v5  ;;  %v3114_v57 = vpop.f32.mrb[77].mxu0 }
 0x749   : > { %v3150_v50 = vadd.f32 %v4141_v42, %v3114_v57  ;;  %v3116_v33 = vpop.f32.mrb[78].mxu0 }
 0x74a   : > { %3181 = vst [vmem:[%s6018_s16 + $0xe0] sm:$0xff] %v3149_v31  ;;  %v3151_v15 = vadd.f32 %v4142_v53, %v3116_v33  ;;  %v3118_v51 = vpop.f32.mrb[79].mxu0 }
 0x74b   : > { %3182 = vst [vmem:[%s6018_s16 + $0xe8] sm:$0xff] %v3150_v50  ;;  %v3152_v3 = vadd.f32 %v4143_v26, %v3118_v51 }
 0x74c   : > { %3183 = vst [vmem:[%s6018_s16 + $0xf0] sm:$0xff] %v3151_v15 }
 0x74d   : > { %3184 = vst [vmem:[%s6018_s16 + $0xf8] sm:$0xff] %v3152_v3 }
 0x74e   : > { %4299 = shalt.err (!%p4296_p9)
}
 0x74f   : > { %s4300_s21 = scalar_lea.hbm %s6083_s2, 4096  ;;  %s4304_s10 = scalar_lea.hbm %s6140_s7, 8192 }
 0x750   : > { %p4301_p0 = scmp.ne.s32.totalorder %s6083_s2, %s4300_s21  ;;  %p4305_p4 = scmp.lt.u32.totalorder %s6083_s2, %s6140_s7 }
 0x751   : > { %p4306_p8 = scmp.lt.u32.totalorder %s4304_s10, %s4300_s21  ;;  %p4308_p5 = scmp.lt.u32.totalorder %s4300_s21, %s6083_s2 }
 0x752   : > { %p4302_p11 = pnand %p4301_p0, %p4592_p3 }
 0x753   : > { %p4307_p10 = por %p4306_p8, %p4305_p4 }
 0x754   : > { %p4303_p6 = pneg %p4302_p11 }
 0x755   : > { %p4309_p7 = por %p4308_p5, %p4307_p10 }
 0x757   : > { %p4310_p12 = pnand %p4309_p7, %p4303_p6 }
 0x759   : > { %4313 = shalt.err (!%p4310_p12)
}
 0x75a   : > { %s4375_s29 = smov 256   ;;  %s4376_s22 = smov 16  }
 0x75b   : > { %3682 = dma.vmem_to_hbm [thread:$0]  (%p4592_p3), %s6085_s15, 4096, %s6083_s2, %s3186_s28, %s4375_s29, %s4375_s29, %s4376_s22  }
 0x75c PF: > { %s3214_s30 = sand.u32 1, %s4348_s24   ;;  %p6293_p1 = scmp.ne.s32.totalorder %s6193_s8, 0 }
 0x75d   : > { %p6294_p2 = scmp.ge.s32.totalorder %s4360_s27, 2  ;;  %s3215_s9 = scalar_lea.sflag [#allocation4], %s3214_s30 }
 0x75f   : > { %p3702_p13 = pnand %p6294_p2, %p6293_p1 }
 0x761   : > { %4343 = dma.done.wait (!%p3702_p13), %s3215_s9, 4096  }
 0x762   : > { %4345 = vsyncadd (!%p3702_p13), %s3215_s9, 4294963200  ;;  %p22_p9 = scmp.ge.s32.totalorder %s4579_s12, 4   ;;  %s6295_s24 = smov %s4352_s25 }
 0x763   : > { %s6296_s25 = smov %s4356_s26  ;;  %s6297_s26 = smov %s4588_s17 }
 0x764   : > { %s6298_s27 = smov %s4579_s12  ;;  %24 = sbr.rel (!%p22_p9) target bundleno = 9 (0x9), region = 112 }
 0x76b   :  { %3220 = vsyncpa [#allocation3], 1 }
 0x76c   :  { %3222 = vsyncpa [#allocation3 + $0x1], 1 }
 0x76d   :  { %3223 = vsyncpa [#allocation6], 1 }
 0x76e   :  { %3224 = vsyncpa [#allocation9], 1 }
 0x76f   :  { %3225 = vsyncpa [#allocation4], 1 }
 0x770   :  { %3227 = vsyncpa [#allocation4 + $0x1], 1 }

</bundles_post_ra>
